<compile_context>
chip_gen: v7x
topology: tpu7x:2x2x1
jax: 0.10.0
libtpu: 0.0.40
codegen_flags: <defaults>
</compile_context>

<pallas_src>
import functools

import numpy as np
import jax
import jax.numpy as jnp
from jax import lax
from jax.experimental import pallas as pl
from jax.experimental.pallas import tpu as pltpu


def _bilinear_channel_matrix(c_in, c_out):
    """(c_in, c_out) matrix M s.t. pool @ M == F.interpolate(..., 'bilinear',
    align_corners=False) along the channel axis (width axis keeps its size)."""
    m = np.zeros((c_in, c_out), dtype=np.float32)
    scale = c_in / c_out
    for j in range(c_out):
        src = (j + 0.5) * scale - 0.5
        src = max(src, 0.0)
        i0 = min(int(np.floor(src)), c_in - 1)
        i1 = min(i0 + 1, c_in - 1)
        l1 = src - i0 if i1 > i0 else 0.0
        m[i0, j] += 1.0 - l1
        m[i1, j] += l1
    return jnp.asarray(m)


def _flex2d_kernel(*refs, c_in, c_out, k, kk, tm, m_valid, m_pad, ho, wo,
                   h, w, stride, padding, use_interp):
    if use_interp:
        patch_ref, w_ref, b_ref, interp_ref, out_ref, cnt_ref = refs
    else:
        patch_ref, w_ref, b_ref, out_ref, cnt_ref = refs

    patch = patch_ref[...]                                # (tm, kk*c_in) bf16

    # --- Conv2d as an im2col matmul (MXU, bf16 inputs, f32 accumulation) ---
    conv = jnp.dot(patch, w_ref[...],
                   preferred_element_type=jnp.float32) + b_ref[...]

    # --- MaxPool2d over the k*k taps (channels contiguous on lanes, f32) ---
    pf = patch.astype(jnp.float32)
    if padding > 0:
        r = pl.program_id(0) * tm + lax.broadcasted_iota(jnp.int32, (tm, 1), 0)
        wo_i = r % wo
        ho_i = (r // wo) % ho
    pool = None
    for q in range(kk):
        tap = pf[:, q * c_in:(q + 1) * c_in]
        if padding > 0:
            # shared buffer is zero-padded for the conv; mask pad taps for pool
            kh, kw = q // k, q % k
            hin = ho_i * stride - padding + kh
            win = wo_i * stride - padding + kw
            valid = (hin >= 0) & (hin < h) & (win >= 0) & (win < w)
            tap = jnp.where(valid, tap, -1e30)
        pool = tap if pool is None else jnp.maximum(pool, tap)

    # --- channel_interpolate: bilinear C_in -> C_out as a tiny matmul ---
    if use_interp:
        pool_i = jnp.dot(pool, interp_ref[...],
                         preferred_element_type=jnp.float32)
    else:
        pool_i = pool                                     # identity interp

    # --- channel_wise_maxpool + per-tile conv-win partial count ---
    out_ref[...] = jnp.maximum(pool_i, conv)
    wins = conv > pool_i                 # torch.max ties -> index 0 (pool branch)
    if m_pad != m_valid:                 # exclude zero-padded M rows from count
        row = pl.program_id(0) * tm + lax.broadcasted_iota(jnp.int32, (tm, 1), 0)
        wins = jnp.logical_and(wins, row < m_valid)
    cnt_ref[0, 0] = jnp.sum(wins.astype(jnp.int32))


def flex2d_forward(x, weight, bias, *, kernel_size, stride=1, padding=0, tm=512):
    B, C_in, H, W = x.shape
    C_out = weight.shape[0]
    k, s, p = kernel_size, stride, padding
    Ho = (H + 2 * p - k) // s + 1
    Wo = (W + 2 * p - k) // s + 1
    kk = k * k
    M = B * Ho * Wo

    # VMEM budget for the (double-buffered) patch + out tiles: keep the row
    # tile comfortably inside the 32 MiB default scoped VMEM (v7x: 64 MiB phys).
    tm = max(128, tm)
    while tm > 128 and 2 * tm * (kk * C_in * 2 + C_out * 4) > (8 << 20):
        tm //= 2

    M_pad = ((M + tm - 1) // tm) * tm
    num_tiles = M_pad // tm

    # Single shared im2col buffer, (kh, kw, c) minor order, bf16.
    xp = jnp.pad(x, ((0, 0), (0, 0), (p, p), (p, p)))
    cols = [xp[:, :, i:i + s * Ho:s, j:j + s * Wo:s]
            for i in range(k) for j in range(k)]           # kk x (B, C, Ho, Wo)
    patch = (jnp.stack(cols, axis=0)                       # (kk, B, C, Ho, Wo)
             .transpose(1, 3, 4, 0, 2)                     # (B, Ho, Wo, kk, C)
             .reshape(M, kk * C_in))
    patch = jnp.pad(patch, ((0, M_pad - M), (0, 0))).astype(jnp.bfloat16)

    # Weight rows permuted to the same (kh, kw, c) order; bf16 for the MXU.
    w_mat = (weight.transpose(2, 3, 1, 0)
             .reshape(kk * C_in, C_out).astype(jnp.bfloat16))
    b_row = bias.reshape(1, C_out).astype(jnp.float32)

    use_interp = (C_in != C_out)
    inputs = [patch, w_mat, b_row]
    in_specs = [
        pl.BlockSpec((tm, kk * C_in), lambda i: (i, 0)),
        pl.BlockSpec((kk * C_in, C_out), lambda i: (0, 0)),
        pl.BlockSpec((1, C_out), lambda i: (0, 0)),
    ]
    if use_interp:
        inputs.append(_bilinear_channel_matrix(C_in, C_out))   # (C_in, C_out) f32
        in_specs.append(pl.BlockSpec((C_in, C_out), lambda i: (0, 0)))

    kernel = functools.partial(
        _flex2d_kernel, c_in=C_in, c_out=C_out, k=k, kk=kk, tm=tm,
        m_valid=M, m_pad=M_pad, ho=Ho, wo=Wo, h=H, w=W,
        stride=s, padding=p, use_interp=use_interp)

    out_flat, cnt_part = pl.pallas_call(
        kernel,
        out_shape=(jax.ShapeDtypeStruct((M_pad, C_out), jnp.float32),
                   jax.ShapeDtypeStruct((num_tiles, 1), jnp.int32)),
        grid_spec=pltpu.PrefetchScalarGridSpec(
            num_scalar_prefetch=0,
            grid=(num_tiles,),
            in_specs=in_specs,
            out_specs=(
                pl.BlockSpec((tm, C_out), lambda i: (i, 0)),
                pl.BlockSpec((1, 1), lambda i: (i, 0),
                             memory_space=pltpu.MemorySpace.SMEM),
            ),
        ),
        compiler_params=pltpu.CompilerParams(
            dimension_semantics=("parallel",)),   # no cross-step state -> megacore OK
    )(*inputs)

    out = out_flat[:M].reshape(B, Ho, Wo, C_out).transpose(0, 3, 1, 2)  # NCHW
    conv_ratio = jnp.sum(cnt_part).astype(jnp.float32) / float(M * C_out)
    return out, conv_ratio


def flex2d_reference(x, weight, bias, *, kernel_size, stride=1, padding=0):
    """Pure-JAX (f32) reference mirroring the PyTorch forward pass."""
    k, s, p = kernel_size, stride, padding
    C_in = x.shape[1]
    C_out = weight.shape[0]
    conv = lax.conv_general_dilated(
        x, weight, (s, s), [(p, p), (p, p)],
        dimension_numbers=('NCHW', 'OIHW', 'NCHW')) + bias[None, :, None, None]
    pool = lax.reduce_window(x, -jnp.inf, lax.max,
                             (1, 1, k, k), (1, 1, s, s),
                             [(0, 0), (0, 0), (p, p), (p, p)])
    interp = _bilinear_channel_matrix(C_in, C_out)
    pool_i = jnp.einsum('bchw,co->bohw', pool, interp)
    out = jnp.maximum(pool_i, conv)
    ratio = jnp.mean((conv > pool_i).astype(jnp.float32))
    return out, ratio


if __name__ == "__main__":
    B, C_in, C_out, H, W = 2, 4, 8, 16, 16
    kernel_size, stride, padding = 3, 1, 0

    key = jax.random.PRNGKey(0)
    k1, k2, k3 = jax.random.split(key, 3)
    bound = 1.0 / np.sqrt(C_in * kernel_size * kernel_size)
    weight = jax.random.uniform(k1, (C_out, C_in, kernel_size, kernel_size),
                                jnp.float32, -bound, bound)
    bias = jax.random.uniform(k2, (C_out,), jnp.float32, -bound, bound)
    x = jax.random.normal(k3, (B, C_in, H, W), jnp.float32)

    # The kernel consumes bf16 patches/weights (MXU-native, halves HBM input
    # bytes). Pre-round test inputs to the bf16 grid so the kernel's bf16 cast
    # is lossless and it can be checked tightly against the f32 reference.
    x = x.astype(jnp.bfloat16).astype(jnp.float32)
    weight = weight.astype(jnp.bfloat16).astype(jnp.float32)

    out, conv_ratio = flex2d_forward(
        x, weight, bias, kernel_size=kernel_size, stride=stride, padding=padding)
    out = jax.block_until_ready(out)
    conv_ratio = jax.block_until_ready(conv_ratio)

    ref_out, ref_ratio = flex2d_reference(
        x, weight, bias, kernel_size=kernel_size, stride=stride, padding=padding)

    assert out.shape == (B, C_out, H - kernel_size + 1, W - kernel_size + 1)
    np.testing.assert_allclose(np.asarray(out), np.asarray(ref_out),
                               rtol=1e-3, atol=1e-3)
    assert abs(float(conv_ratio) - float(ref_ratio)) < 1e-2

    print("KERNEL_OK")
</pallas_src>

<mosaic_0001>
module attributes {stable_mosaic.version = 11 : i64} {
  func.func @_flex2d_kernel(%arg0: i32, %arg1: memref<512x36xbf16, #tpu.memory_space<vmem>>, %arg2: memref<36x8xbf16, #tpu.memory_space<vmem>>, %arg3: memref<1x8xf32, #tpu.memory_space<vmem>>, %arg4: memref<4x8xf32, #tpu.memory_space<vmem>>, %arg5: memref<512x8xf32, #tpu.memory_space<vmem>>, %arg6: memref<1x1xi32, #tpu.memory_space<smem>>) attributes {dimension_semantics = [#tpu.dimension_semantics<parallel>], iteration_bounds = array<i64: 1>, scalar_prefetch = 0 : i64, scratch_operands = 0 : i64, tpu.core_type = #tpu.core_type<tc>, window_params = [{transform_indices = @transform_0, window_bounds = array<i64: 512, 36>}, {pipeline_mode = #tpu.pipeline_mode<synchronous>, transform_indices = @transform_1, window_bounds = array<i64: 36, 8>}, {pipeline_mode = #tpu.pipeline_mode<synchronous>, transform_indices = @transform_2, window_bounds = array<i64: 1, 8>}, {pipeline_mode = #tpu.pipeline_mode<synchronous>, transform_indices = @transform_3, window_bounds = array<i64: 4, 8>}, {transform_indices = @transform_4, window_bounds = array<i64: 512, 8>}, {transform_indices = @transform_5, window_bounds = array<i64: 1, 1>}]} {
    %c0 = arith.constant 0 : index
    %c0_0 = arith.constant 0 : index
    %0 = vector.load %arg1[%c0, %c0_0] : memref<512x36xbf16, #tpu.memory_space<vmem>>, vector<512x36xbf16>
    %c0_1 = arith.constant 0 : index
    %c0_2 = arith.constant 0 : index
    %1 = vector.load %arg2[%c0_1, %c0_2] : memref<36x8xbf16, #tpu.memory_space<vmem>>, vector<36x8xbf16>
    %cst = arith.constant dense<0.000000e+00> : vector<512x8xf32>
    %2 = tpu.matmul %0, %1, %cst {dimension_numbers = #tpu.dot_dimension_numbers<[1], [0], [0], [1], [0, 0, 1, 1], [], []>} : vector<512x36xbf16>, vector<36x8xbf16>, vector<512x8xf32> -> vector<512x8xf32>
    %c0_3 = arith.constant 0 : index
    %c0_4 = arith.constant 0 : index
    %3 = vector.load %arg3[%c0_3, %c0_4] : memref<1x8xf32, #tpu.memory_space<vmem>>, vector<1x8xf32>
    %4 = vector.broadcast %3 : vector<1x8xf32> to vector<512x8xf32>
    %5 = arith.addf %2, %4 : vector<512x8xf32>
    %6 = arith.extf %0 : vector<512x36xbf16> to vector<512x36xf32>
    %7 = vector.extract_strided_slice %6 {offsets = [0, 0], sizes = [512, 4], strides = [1, 1]} : vector<512x36xf32> to vector<512x4xf32>
    %8 = vector.extract_strided_slice %6 {offsets = [0, 4], sizes = [512, 4], strides = [1, 1]} : vector<512x36xf32> to vector<512x4xf32>
    %9 = arith.maximumf %7, %8 : vector<512x4xf32>
    %10 = vector.extract_strided_slice %6 {offsets = [0, 8], sizes = [512, 4], strides = [1, 1]} : vector<512x36xf32> to vector<512x4xf32>
    %11 = arith.maximumf %9, %10 : vector<512x4xf32>
    %12 = vector.extract_strided_slice %6 {offsets = [0, 12], sizes = [512, 4], strides = [1, 1]} : vector<512x36xf32> to vector<512x4xf32>
    %13 = arith.maximumf %11, %12 : vector<512x4xf32>
    %14 = vector.extract_strided_slice %6 {offsets = [0, 16], sizes = [512, 4], strides = [1, 1]} : vector<512x36xf32> to vector<512x4xf32>
    %15 = arith.maximumf %13, %14 : vector<512x4xf32>
    %16 = vector.extract_strided_slice %6 {offsets = [0, 20], sizes = [512, 4], strides = [1, 1]} : vector<512x36xf32> to vector<512x4xf32>
    %17 = arith.maximumf %15, %16 : vector<512x4xf32>
    %18 = vector.extract_strided_slice %6 {offsets = [0, 24], sizes = [512, 4], strides = [1, 1]} : vector<512x36xf32> to vector<512x4xf32>
    %19 = arith.maximumf %17, %18 : vector<512x4xf32>
    %20 = vector.extract_strided_slice %6 {offsets = [0, 28], sizes = [512, 4], strides = [1, 1]} : vector<512x36xf32> to vector<512x4xf32>
    %21 = arith.maximumf %19, %20 : vector<512x4xf32>
    %22 = vector.extract_strided_slice %6 {offsets = [0, 32], sizes = [512, 4], strides = [1, 1]} : vector<512x36xf32> to vector<512x4xf32>
    %23 = arith.maximumf %21, %22 : vector<512x4xf32>
    %c0_5 = arith.constant 0 : index
    %c0_6 = arith.constant 0 : index
    %24 = vector.load %arg4[%c0_5, %c0_6] : memref<4x8xf32, #tpu.memory_space<vmem>>, vector<4x8xf32>
    %cst_7 = arith.constant dense<0.000000e+00> : vector<512x8xf32>
    %25 = tpu.matmul %23, %24, %cst_7 {dimension_numbers = #tpu.dot_dimension_numbers<[1], [0], [0], [1], [0, 0, 1, 1], [], []>} : vector<512x4xf32>, vector<4x8xf32>, vector<512x8xf32> -> vector<512x8xf32>
    %26 = arith.maximumf %25, %5 : vector<512x8xf32>
    %c0_8 = arith.constant 0 : index
    %c0_9 = arith.constant 0 : index
    %27 = vector.load %arg5[%c0_8, %c0_9] : memref<512x8xf32, #tpu.memory_space<vmem>>, vector<512x8xf32>
    tpu.vector_store %arg5[%c0_8, %c0_9], %26 {strides = array<i32>} : memref<512x8xf32, #tpu.memory_space<vmem>>, vector<512x8xf32>,
    %28 = arith.cmpf ogt, %5, %25 : vector<512x8xf32>
    %c512_i32 = arith.constant 512 : i32
    %29 = arith.muli %arg0, %c512_i32 : i32
    %30 = tpu.iota {dimensions = array<i32: 0>} : vector<512x1xi32>
    %31 = vector.broadcast %29 : i32 to vector<512x1xi32>
    %32 = arith.addi %31, %30 : vector<512x1xi32>
    %c392_i32 = arith.constant 392 : i32
    %33 = vector.broadcast %c392_i32 : i32 to vector<512x1xi32>
    %34 = arith.cmpi slt, %32, %33 : vector<512x1xi32>
    %35 = vector.broadcast %34 : vector<512x1xi1> to vector<512x8xi1>
    %36 = arith.andi %28, %35 : vector<512x8xi1>
    %37 = arith.extui %36 : vector<512x8xi1> to vector<512x8xi32>
    %38 = vector.shape_cast %37 : vector<512x8xi32> to vector<1x512x8xi32>
    %cst_10 = arith.constant dense<0> : vector<1xi32>
    %39 = vector.multi_reduction <add>, %38, %cst_10 [1, 2] : vector<1x512x8xi32> to vector<1xi32>
    %40 = vector.shape_cast %39 : vector<1xi32> to vector<1x1x1xi32>
    %41 = vector.extract %40[0, 0, 0] : i32 from vector<1x1x1xi32>
    %c0_11 = arith.constant 0 : index
    %c0_12 = arith.constant 0 : index
    %42 = memref.load %arg6[%c0_11, %c0_12] : memref<1x1xi32, #tpu.memory_space<smem>>
    memref.store %41, %arg6[%c0_11, %c0_12] : memref<1x1xi32, #tpu.memory_space<smem>>
    return
  }
  func.func @transform_0(%arg0: i32) -> (i32, i32) {
    %c0_i32 = arith.constant 0 : i32
    %c0_i32_0 = arith.constant 0 : i32
    return %arg0, %c0_i32 : i32, i32
  }
  func.func @transform_1(%arg0: i32) -> (i32, i32) {
    %c0_i32 = arith.constant 0 : i32
    %c0_i32_0 = arith.constant 0 : i32
    %c0_i32_1 = arith.constant 0 : i32
    return %c0_i32, %c0_i32_0 : i32, i32
  }
  func.func @transform_2(%arg0: i32) -> (i32, i32) {
    %c0_i32 = arith.constant 0 : i32
    %c0_i32_0 = arith.constant 0 : i32
    %c0_i32_1 = arith.constant 0 : i32
    return %c0_i32, %c0_i32_0 : i32, i32
  }
  func.func @transform_3(%arg0: i32) -> (i32, i32) {
    %c0_i32 = arith.constant 0 : i32
    %c0_i32_0 = arith.constant 0 : i32
    %c0_i32_1 = arith.constant 0 : i32
    return %c0_i32, %c0_i32_0 : i32, i32
  }
  func.func @transform_4(%arg0: i32) -> (i32, i32) {
    %c0_i32 = arith.constant 0 : i32
    %c0_i32_0 = arith.constant 0 : i32
    return %arg0, %c0_i32 : i32, i32
  }
  func.func @transform_5(%arg0: i32) -> (i32, i32) {
    %c0_i32 = arith.constant 0 : i32
    %c0_i32_0 = arith.constant 0 : i32
    return %arg0, %c0_i32 : i32, i32
  }
}

</mosaic_0001>

<bundles_post_ra>
// kernel: tpu_custom_call.1
= control target key start
LH: loop header
LB: loop body
LE: loop exit
PB: predicated region body
PF: predicated region fallthrough
CT: control target
= control target key end

     0   :  { %s6024_s30 = smov 124   ;;  %s8815_s0 = inlined_call_operand.vmem [shape: bf16[512,36], index: 0, kind: input, shape index: {}]   ;;  %s8816_s1 = inlined_call_operand.vmem [shape: bf16[36,8], index: 1, kind: input, shape index: {}]   ;;  %s8817_s2 = inlined_call_operand.vmem [shape: f32[1,8], index: 2, kind: input, shape index: {}]   ;;  %s8818_s3 = inlined_call_operand.vmem [shape: f32[4,8], index: 3, kind: input, shape index: {}]   ;;  %s8819_s4 = inlined_call_operand.vmem [shape: f32[512,8], index: 4, kind: output, shape index: {0}]   ;;  %s8820_s5 = inlined_call_operand.hbm [shape: s32[1,1], index: 5, kind: output, shape index: {1}]  }
   0x1   :  { %v6067_v0 = vld [vmem:[%s8815_s0 + $0x10] sm:$0xff]   ;;  %v6072_v1 = vld [vmem:[%s8815_s0] sm:$0xff]   ;;  %v6077_v2 = vld [vmem:[%s8815_s0 + $0x18] sm:$0xff]  }
   0x2   :  { %v8869_v3 = vunpack.c.l.bf16 %v6067_v0  ;;  %v8872_v4 = vunpack.c.h.bf16 %v6067_v0  ;;  %v8865_v5 = vunpack.c.l.bf16 %v6072_v1  ;;  %v8868_v6 = vunpack.c.h.bf16 %v6072_v1  ;;  %v6086_v7 = vld [vmem:[%s8815_s0 + $0x8] sm:$0xff]   ;;  %v6100_v13 = vld [vmem:[%s8815_s0 + $0x20] sm:$0xff]   ;;  %v6137_v22 = vld [vmem:[%s8815_s0 + $0x38] sm:$0xff]  }
   0x3   :  { %v6091_v8 = vld [vmem:[%s8815_s0 + $0x28] sm:$0xff]   ;;  %v8859_v9 = vunpack.c.l.bf16 %v6077_v2  ;;  %v8864_v10 = vunpack.c.h.bf16 %v6077_v2  ;;  %v8857_v11 = vunpack.c.l.bf16 %v6086_v7  ;;  %v8858_v12 = vunpack.c.h.bf16 %v6086_v7  ;;  %v6142_v23 = vld [vmem:[%s8815_s0 + $0x30] sm:$0xff]   ;;  %v6172_v31 = vld [vmem:[%s8815_s0 + $0x40] sm:$0xff]  }
   0x4   :  { %v6106_v14 = vpack.i.bf16 %v8872_v4, %v8869_v3  ;;  %v6112_v15 = vpack.i.bf16 %v8868_v6, %v8865_v5  ;;  %v8853_v16 = vunpack.c.l.bf16 %v6091_v8  ;;  %v8856_v17 = vunpack.c.h.bf16 %v6091_v8  ;;  %v6167_v30 = vld [vmem:[%s8815_s0 + $0x48] sm:$0xff]   ;;  %v6197_v38 = vld [vmem:[%s8815_s0 + $0x58] sm:$0xff]  }
   0x5   :  { %v6124_v18 = vpack.i.bf16 %v8864_v10, %v8859_v9  ;;  %v6130_v19 = vpack.i.bf16 %v8858_v12, %v8857_v11  ;;  %v8849_v20 = vunpack.c.l.bf16 %v6100_v13  ;;  %v8852_v21 = vunpack.c.h.bf16 %v6100_v13 }
   0x6   :  { %4655 = vrot.lane.b32.xlu1 %v6106_v14, %s6024_s30  ;;  %4645 = vrot.lane.b32.xlu0 %v6112_v15, %s6024_s30  ;;  %v6148_v24 = vpack.i.bf16 %v8856_v17, %v8853_v16  ;;  %v8843_v25 = vunpack.c.l.bf16 %v6137_v22  ;;  %v8848_v27 = vunpack.c.h.bf16 %v6137_v22  ;;  %v8841_v28 = vunpack.c.l.bf16 %v6142_v23 }
   0x7   :  { %v6159_v26 = vpack.i.bf16 %v8852_v21, %v8849_v20  ;;  %v8842_v29 = vunpack.c.h.bf16 %v6142_v23  ;;  %v8837_v32 = vunpack.c.l.bf16 %v6167_v30  ;;  %v8840_v33 = vunpack.c.h.bf16 %v6167_v30 }
   0x8   :  { %v6184_v34 = vpack.i.bf16 %v8848_v27, %v8843_v25  ;;  %v8833_v36 = vunpack.c.l.bf16 %v6172_v31  ;;  %v8836_v37 = vunpack.c.h.bf16 %v6172_v31 }
   0x9   :  { %v6190_v35 = vpack.i.bf16 %v8842_v29, %v8841_v28 }
   0xa   :  { %4660 = vrot.lane.b32.xlu1 %v6124_v18, %s6024_s30  ;;  %4650 = vrot.lane.b32.xlu0 %v6130_v19, %s6024_s30 }
   0xe   :  { %4670 = vrot.lane.b32.xlu1 %v6148_v24, %s6024_s30  ;;  %4665 = vrot.lane.b32.xlu0 %v6159_v26, %s6024_s30 }
   0xf   :  { %11 = vsyncpa [#allocation3], 0  ;;  %v6202_v39 = vld [vmem:[%s8815_s0 + $0x50] sm:$0xff]   ;;  %v6208_v40 = vpack.i.bf16 %v8840_v33, %v8837_v32  ;;  %v8827_v41 = vunpack.c.l.bf16 %v6197_v38  ;;  %v6219_v42 = vpack.i.bf16 %v8836_v37, %v8833_v36  ;;  %v8832_v43 = vunpack.c.h.bf16 %v6197_v38  ;;  %v6227_v46 = vld [vmem:[%s8815_s0 + $0x68] sm:$0xff]   ;;  %s6025_s10 = smov 120   ;;  %s6027_s11 = smov 112  }
  0x10   :  { %v8825_v44 = vunpack.c.l.bf16 %v6202_v39  ;;  %v8826_v45 = vunpack.c.h.bf16 %v6202_v39  ;;  %9050 = vst [vmem:[#allocation5_spill] sm:$0xff] %v6227_v46  ;;  %v6232_v47 = vld [vmem:[%s8815_s0 + $0x60] sm:$0xff]   ;;  %v8821_v48 = vunpack.c.l.bf16 %v6227_v46  ;;  %v8824_v49 = vunpack.c.h.bf16 %v6227_v46  ;;  %v6257_v54 = vld [vmem:[%s8815_s0 + $0x78] sm:$0xff]   ;;  %v6262_v55 = vld [vmem:[%s8815_s0 + $0x70] sm:$0xff]   ;;  %s6028_s19 = smov 104   ;;  %s6029_s20 = smov 108  }
  0x11   :  { %9051 = vst [vmem:[#allocation6_spill] sm:$0xff] %v6232_v47  ;;  %v6244_v50 = vpack.i.bf16 %v8832_v43, %v8827_v41  ;;  %v8822_v52 = vunpack.c.l.bf16 %v6232_v47  ;;  %v8823_v53 = vunpack.c.h.bf16 %v6232_v47  ;;  %9052 = vst [vmem:[#allocation7_spill] sm:$0xff] %v6257_v54  ;;  %v8828_v57 = vunpack.c.l.bf16 %v6257_v54  ;;  %v6287_v62 = vld [vmem:[%s8815_s0 + $0x88] sm:$0xff]   ;;  %v6292_v63 = vld [vmem:[%s8815_s0 + $0x80] sm:$0xff]   ;;  %s6031_s21 = smov 96   ;;  %s6012_s15 = scalar_lea.hbm %s8820_s5, 16 }
  0x12   :  { %4680 = vrot.lane.b32.xlu1 %v6184_v34, %s6024_s30  ;;  %4675 = vrot.lane.b32.xlu0 %v6190_v35, %s6024_s30  ;;  %v6250_v51 = vpack.i.bf16 %v8826_v45, %v8825_v44  ;;  %9053 = vst [vmem:[#allocation8_spill] sm:$0xff] %v6262_v55  ;;  %v6268_v56 = vpack.i.bf16 %v8824_v49, %v8821_v48  ;;  %v8831_v59 = vunpack.c.h.bf16 %v6257_v54  ;;  %v8829_v60 = vunpack.c.l.bf16 %v6262_v55  ;;  %v6317_v41 = vld [vmem:[%s8815_s0 + $0x98] sm:$0xff]   ;;  %v6352_v37 = vld [vmem:[%s8815_s0 + $0xa0] sm:$0xff]   ;;  %p6013_p0 = scmp.ne.s32.totalorder %s8820_s5, %s6012_s15  ;;  %p6016_p1 = scmp.lt.u32.totalorder %s6012_s15, %s8820_s5 }
  0x13   :  { %v6279_v58 = vpack.i.bf16 %v8823_v53, %v8822_v52  ;;  %v8830_v61 = vunpack.c.h.bf16 %v6262_v55  ;;  %9054 = vst [vmem:[#allocation9_spill] sm:$0xff] %v6287_v62  ;;  %9055 = vst [vmem:[#allocation10_spill] sm:$0xff] %v6292_v63  ;;  %v8834_v48 = vunpack.c.l.bf16 %v6287_v62  ;;  %v8835_v52 = vunpack.c.h.bf16 %v6287_v62  ;;  %v6377_v25 = vld [vmem:[%s8815_s0 + $0xb8] sm:$0xff]   ;;  %v6412_v21 = vld [vmem:[%s8815_s0 + $0xc0] sm:$0xff]  }
  0x14   :  { %v6304_v53 = vpack.i.bf16 %v8831_v59, %v8828_v57  ;;  %v8838_v44 = vunpack.c.l.bf16 %v6292_v63  ;;  %v8839_v45 = vunpack.c.h.bf16 %v6292_v63  ;;  %9056 = vst [vmem:[#allocation11_spill] sm:$0xff] %v6317_v41  ;;  %v6322_v57 = vld [vmem:[%s8815_s0 + $0x90] sm:$0xff]   ;;  %v8847_v43 = vunpack.c.h.bf16 %v6317_v41  ;;  %9059 = vst [vmem:[#allocation14_spill] sm:$0xff] %v6352_v37  ;;  %v6437_v9 = vld [vmem:[%s8815_s0 + $0xd8] sm:$0xff]   ;;  %p6018_p2 = pnand %p6016_p1, %p6013_p0 }
  0x15   :  { %v6310_v49 = vpack.i.bf16 %v8830_v61, %v8829_v60  ;;  %9057 = vst [vmem:[#allocation12_spill] sm:$0xff] %v6322_v57  ;;  %v6328_v60 = vpack.i.bf16 %v8835_v52, %v8834_v48  ;;  %v8844_v61 = vunpack.c.l.bf16 %v6317_v41  ;;  %v8845_v36 = vunpack.c.l.bf16 %v6322_v57  ;;  %v6347_v52 = vld [vmem:[%s8815_s0 + $0xa8] sm:$0xff]   ;;  %9061 = vst [vmem:[#allocation16_spill] sm:$0xff] %v6377_v25  ;;  %v6472_v6 = vld [vmem:[%s8815_s0 + $0xe0] sm:$0xff]  }
  0x16   :  { %4690 = vrot.lane.b32.xlu1 %v6208_v40, %s6024_s30  ;;  %4685 = vrot.lane.b32.xlu0 %v6219_v42, %s6024_s30  ;;  %v6339_v59 = vpack.i.bf16 %v8839_v45, %v8838_v44  ;;  %v8846_v48 = vunpack.c.h.bf16 %v6322_v57  ;;  %9058 = vst [vmem:[#allocation13_spill] sm:$0xff] %v6347_v52  ;;  %v8850_v32 = vunpack.c.l.bf16 %v6347_v52  ;;  %v8851_v44 = vunpack.c.h.bf16 %v6347_v52  ;;  %9066 = vst [vmem:[#allocation21_spill] sm:$0xff] %v6412_v21 }
  0x17   :  { %v6364_v45 = vpack.i.bf16 %v8847_v43, %v8844_v61  ;;  %v8854_v28 = vunpack.c.l.bf16 %v6352_v37  ;;  %v8855_v29 = vunpack.c.h.bf16 %v6352_v37  ;;  %v6382_v61 = vld [vmem:[%s8815_s0 + $0xb0] sm:$0xff]   ;;  %v8863_v27 = vunpack.c.h.bf16 %v6377_v25  ;;  %9069 = vst [vmem:[#allocation24_spill] sm:$0xff] %v6437_v9  ;;  %9074 = vst [vmem:[#allocation29_spill] sm:$0xff] %v6472_v6 }
  0x18   :  { %v6370_v33 = vpack.i.bf16 %v8846_v48, %v8845_v36  ;;  %9062 = vst [vmem:[#allocation17_spill] sm:$0xff] %v6382_v61  ;;  %v6388_v36 = vpack.i.bf16 %v8851_v44, %v8850_v32  ;;  %v8860_v48 = vunpack.c.l.bf16 %v6377_v25  ;;  %v8861_v20 = vunpack.c.l.bf16 %v6382_v61  ;;  %v6407_v44 = vld [vmem:[%s8815_s0 + $0xc8] sm:$0xff]  }
  0x19   :  { %9060 = vst [vmem:[#allocation15_spill] sm:$0xff] %v6364_v45  ;;  %v6399_v43 = vpack.i.bf16 %v8855_v29, %v8854_v28  ;;  %v8862_v32 = vunpack.c.h.bf16 %v6382_v61  ;;  %9065 = vst [vmem:[#allocation20_spill] sm:$0xff] %v6407_v44  ;;  %v8866_v16 = vunpack.c.l.bf16 %v6407_v44  ;;  %v8867_v28 = vunpack.c.h.bf16 %v6407_v44 }
  0x1a   :  { %4700 = vrot.lane.b32.xlu1 %v6244_v50, %s6024_s30  ;;  %4695 = vrot.lane.b32.xlu0 %v6250_v51, %s6024_s30  ;;  %9063 = vst [vmem:[#allocation18_spill] sm:$0xff] %v6388_v36  ;;  %v6424_v29 = vpack.i.bf16 %v8863_v27, %v8860_v48  ;;  %v8870_v11 = vunpack.c.l.bf16 %v6412_v21  ;;  %v8871_v12 = vunpack.c.h.bf16 %v6412_v21  ;;  %v6442_v48 = vld [vmem:[%s8815_s0 + $0xd0] sm:$0xff]   ;;  %v8876_v10 = vunpack.c.h.bf16 %v6437_v9  ;;  %v6497_v21 = vld [vmem:[%s8815_s0 + $0xf8] sm:$0xff]  }
  0x1b   :  { %9064 = vst [vmem:[#allocation19_spill] sm:$0xff] %v6399_v43  ;;  %v6430_v17 = vpack.i.bf16 %v8862_v32, %v8861_v20  ;;  %9070 = vst [vmem:[#allocation25_spill] sm:$0xff] %v6442_v48  ;;  %v6448_v20 = vpack.i.bf16 %v8867_v28, %v8866_v16  ;;  %v8875_v32 = vunpack.c.l.bf16 %v6437_v9  ;;  %v8879_v5 = vunpack.c.l.bf16 %v6442_v48  ;;  %v6467_v28 = vld [vmem:[%s8815_s0 + $0xe8] sm:$0xff]  }
  0x1c   :  { %9067 = vst [vmem:[#allocation22_spill] sm:$0xff] %v6424_v29  ;;  %v6459_v27 = vpack.i.bf16 %v8871_v12, %v8870_v11  ;;  %v8880_v16 = vunpack.c.h.bf16 %v6442_v48  ;;  %9073 = vst [vmem:[#allocation28_spill] sm:$0xff] %v6467_v28  ;;  %v8887_v11 = vunpack.c.l.bf16 %v6472_v6  ;;  %v8892_v3 = vunpack.c.h.bf16 %v6472_v6 }
  0x1d   :  { %9068 = vst [vmem:[#allocation23_spill] sm:$0xff] %v6430_v17  ;;  %9071 = vst [vmem:[#allocation26_spill] sm:$0xff] %v6448_v20  ;;  %v6484_v12 = vpack.i.bf16 %v8876_v10, %v8875_v32  ;;  %v6502_v32 = vld [vmem:[%s8815_s0 + $0xf0] sm:$0xff]   ;;  %v9079_v10 = vunpack.c.l.bf16 %v6467_v28  ;;  %v9080_v48 = vunpack.c.h.bf16 %v6467_v28  ;;  %v8891_v44 = vunpack.c.h.bf16 %v6497_v21 }
  0x1e   :  { %4710 = vrot.lane.b32.xlu1 %v6268_v56, %s6024_s30  ;;  %4705 = vrot.lane.b32.xlu0 %v6279_v58, %s6024_s30  ;;  %9072 = vst [vmem:[#allocation27_spill] sm:$0xff] %v6459_v27  ;;  %v6490_v4 = vpack.i.bf16 %v8880_v16, %v8879_v5  ;;  %9077 = vst [vmem:[#allocation32_spill] sm:$0xff] %v6497_v21  ;;  %v8890_v16 = vunpack.c.l.bf16 %v6497_v21  ;;  %v6519_v9 = vpack.i.bf16 %v8892_v3, %v8887_v11  ;;  %vm369_vm0 = vcmask 1041408  }
  0x1f   :  { %9075 = vst [vmem:[#allocation30_spill] sm:$0xff] %v6484_v12  ;;  %9078 = vst [vmem:[#allocation33_spill] sm:$0xff] %v6502_v32  ;;  %v6508_v5 = vpack.i.bf16 %v9080_v48, %v9079_v10  ;;  %v8888_v28 = vunpack.c.l.bf16 %v6502_v32  ;;  %v8889_v10 = vunpack.c.h.bf16 %v6502_v32  ;;  %vm272_vm1 = vcmask 293888  }
  0x20   :  { %9076 = vst [vmem:[#allocation31_spill] sm:$0xff] %v6490_v4  ;;  %9082 = vst [vmem:[#allocation35_spill] sm:$0xff] %v6519_v9  ;;  %v6532_v48 = vpack.i.bf16 %v8891_v44, %v8890_v16  ;;  %4469 = vmatprep.mubr.msk.bf16.mxu0 %vm272_vm1, %v6072_v1  ;;  %vm3032_vm2 = vcmask 1043456   ;;  %vm2839_vm3 = vcmask 31744   ;;  %vm3485_vm4 = vcmask 64512  }
  0x21   :  { %9081 = vst [vmem:[#allocation34_spill] sm:$0xff] %v6508_v5  ;;  %v6538_v11 = vpack.i.bf16 %v8889_v10, %v8888_v28 }
  0x22   :  { %4720 = vrot.lane.b32.xlu1 %v6304_v53, %s6024_s30  ;;  %4715 = vrot.lane.b32.xlu0 %v6310_v49, %s6024_s30  ;;  %9083 = vst [vmem:[#allocation36_spill] sm:$0xff] %v6532_v48 }
  0x23   :  { %9084 = vst [vmem:[#allocation37_spill] sm:$0xff] %v6538_v11 }
  0x26   :  { %4730 = vrot.lane.b32.xlu1 %v6328_v60, %s6024_s30  ;;  %4725 = vrot.lane.b32.xlu0 %v6339_v59, %s6024_s30 }
  0x2a   :  { %4740 = vrot.lane.b32.xlu1 %v6364_v45, %s6024_s30  ;;  %4735 = vrot.lane.b32.xlu0 %v6370_v33, %s6024_s30 }
  0x2e   :  { %4750 = vrot.lane.b32.xlu1 %v6388_v36, %s6024_s30  ;;  %4745 = vrot.lane.b32.xlu0 %v6399_v43, %s6024_s30 }
  0x32   :  { %4760 = vrot.lane.b32.xlu1 %v6424_v29, %s6024_s30  ;;  %4755 = vrot.lane.b32.xlu0 %v6430_v17, %s6024_s30 }
  0x36   :  { %4770 = vrot.lane.b32.xlu1 %v6448_v20, %s6024_s30  ;;  %4765 = vrot.lane.b32.xlu0 %v6459_v27, %s6024_s30 }
  0x3a   :  { %4780 = vrot.lane.b32.xlu1 %v6484_v12, %s6024_s30  ;;  %4775 = vrot.lane.b32.xlu0 %v6490_v4, %s6024_s30 }
  0x3e   :  { %4790 = vrot.lane.b32.xlu1 %v6508_v5, %s6024_s30  ;;  %4785 = vrot.lane.b32.xlu0 %v6519_v9, %s6024_s30 }
  0x42   :  { %4800 = vrot.lane.b32.xlu1 %v6532_v48, %s6024_s30  ;;  %4795 = vrot.lane.b32.xlu0 %v6538_v11, %s6024_s30  ;;  %s6026_s30 = smov 116  }
  0x46   :  { %4810 = vrot.lane.b32.xlu1 %v6130_v19, %s6025_s10  ;;  %4805 = vrot.lane.b32.xlu0 %v6112_v15, %s6025_s10 }
  0x4a   :  { %4820 = vrot.lane.b32.xlu1 %v6124_v18, %s6025_s10  ;;  %4815 = vrot.lane.b32.xlu0 %v6106_v14, %s6025_s10 }
  0x4e   :  { %4830 = vrot.lane.b32.xlu1 %v6148_v24, %s6025_s10  ;;  %4825 = vrot.lane.b32.xlu0 %v6159_v26, %s6025_s10 }
  0x52   :  { %4840 = vrot.lane.b32.xlu1 %v6184_v34, %s6025_s10  ;;  %4835 = vrot.lane.b32.xlu0 %v6190_v35, %s6025_s10 }
  0x56   :  { %4850 = vrot.lane.b32.xlu1 %v6208_v40, %s6025_s10  ;;  %4845 = vrot.lane.b32.xlu0 %v6219_v42, %s6025_s10 }
  0x5a   :  { %4860 = vrot.lane.b32.xlu1 %v6244_v50, %s6025_s10  ;;  %4855 = vrot.lane.b32.xlu0 %v6250_v51, %s6025_s10 }
  0x5e   :  { %4870 = vrot.lane.b32.xlu1 %v6268_v56, %s6025_s10  ;;  %4865 = vrot.lane.b32.xlu0 %v6279_v58, %s6025_s10 }
  0x62   :  { %4880 = vrot.lane.b32.xlu1 %v6304_v53, %s6025_s10  ;;  %4875 = vrot.lane.b32.xlu0 %v6310_v49, %s6025_s10 }
  0x66   :  { %4890 = vrot.lane.b32.xlu1 %v6328_v60, %s6025_s10  ;;  %4885 = vrot.lane.b32.xlu0 %v6339_v59, %s6025_s10 }
  0x6a   :  { %4900 = vrot.lane.b32.xlu1 %v6364_v45, %s6025_s10  ;;  %4895 = vrot.lane.b32.xlu0 %v6370_v33, %s6025_s10 }
  0x6e   :  { %4910 = vrot.lane.b32.xlu1 %v6388_v36, %s6025_s10  ;;  %4905 = vrot.lane.b32.xlu0 %v6399_v43, %s6025_s10 }
  0x72   :  { %4920 = vrot.lane.b32.xlu1 %v6424_v29, %s6025_s10  ;;  %4915 = vrot.lane.b32.xlu0 %v6430_v17, %s6025_s10 }
  0x76   :  { %4930 = vrot.lane.b32.xlu1 %v6448_v20, %s6025_s10  ;;  %4925 = vrot.lane.b32.xlu0 %v6459_v27, %s6025_s10 }
  0x78   :  { %v6596_v28 = vpop.permute.xlu1 %4655  ;;  %v6598_v10 = vpop.permute.xlu0 %4645 }
  0x7a   :  { %4940 = vrot.lane.b32.xlu1 %v6484_v12, %s6025_s10  ;;  %4935 = vrot.lane.b32.xlu0 %v6490_v4, %s6025_s10 }
  0x7c   :  { %v6604_v16 = vpop.permute.xlu1 %4660  ;;  %v6606_v44 = vpop.permute.xlu0 %4650 }
  0x7e   :  { %4950 = vrot.lane.b32.xlu1 %v6508_v5, %s6025_s10  ;;  %4945 = vrot.lane.b32.xlu0 %v6519_v9, %s6025_s10 }
  0x80   :  { %v6612_v3 = vpop.permute.xlu1 %4670  ;;  %v6614_v32 = vpop.permute.xlu0 %4665 }
  0x82   :  { %4960 = vrot.lane.b32.xlu1 %v6532_v48, %s6025_s10  ;;  %4955 = vrot.lane.b32.xlu0 %v6538_v11, %s6025_s10 }
  0x84   :  { %v6620_v21 = vpop.permute.xlu1 %4680  ;;  %v6622_v6 = vpop.permute.xlu0 %4675 }
  0x86   :  { %4970 = vrot.lane.b32.xlu1 %v6130_v19, %s6026_s30  ;;  %4965 = vrot.lane.b32.xlu0 %v6112_v15, %s6026_s30 }
  0x88   :  { %v6628_v61 = vpop.permute.xlu1 %4690  ;;  %v6630_v25 = vpop.permute.xlu0 %4685 }
  0x8a   :  { %4980 = vrot.lane.b32.xlu1 %v6124_v18, %s6026_s30  ;;  %4975 = vrot.lane.b32.xlu0 %v6106_v14, %s6026_s30 }
  0x8c   :  { %v6636_v37 = vpop.permute.xlu1 %4700  ;;  %v6638_v52 = vpop.permute.xlu0 %4695 }
  0x8e   :  { %4990 = vrot.lane.b32.xlu1 %v6148_v24, %s6026_s30  ;;  %4985 = vrot.lane.b32.xlu0 %v6159_v26, %s6026_s30 }
  0x90   :  { %v6644_v57 = vpop.permute.xlu1 %4710  ;;  %v6646_v41 = vpop.permute.xlu0 %4705 }
  0x92   :  { %5000 = vrot.lane.b32.xlu1 %v6184_v34, %s6026_s30  ;;  %4995 = vrot.lane.b32.xlu0 %v6190_v35, %s6026_s30 }
  0x94   :  { %v6652_v63 = vpop.permute.xlu1 %4720  ;;  %v6654_v62 = vpop.permute.xlu0 %4715 }
  0x95   :  { %9085 = vst [vmem:[#allocation38_spill] sm:$0xff] %v6654_v62 }
  0x96   :  { %5010 = vrot.lane.b32.xlu1 %v6208_v40, %s6026_s30  ;;  %5005 = vrot.lane.b32.xlu0 %v6219_v42, %s6026_s30 }
  0x98   :  { %v6660_v55 = vpop.permute.xlu1 %4730  ;;  %v6662_v54 = vpop.permute.xlu0 %4725 }
  0x99   :  { %9086 = vst [vmem:[#allocation39_spill] sm:$0xff] %v6660_v55  ;;  %9087 = vst [vmem:[#allocation40_spill] sm:$0xff] %v6662_v54 }
  0x9a   :  { %5020 = vrot.lane.b32.xlu1 %v6244_v50, %s6026_s30  ;;  %5015 = vrot.lane.b32.xlu0 %v6250_v51, %s6026_s30 }
  0x9c   :  { %v6668_v47 = vpop.permute.xlu1 %4740  ;;  %v6670_v46 = vpop.permute.xlu0 %4735 }
  0x9d   :  { %9088 = vst [vmem:[#allocation41_spill] sm:$0xff] %v6668_v47  ;;  %9089 = vst [vmem:[#allocation42_spill] sm:$0xff] %v6670_v46 }
  0x9e   :  { %5030 = vrot.lane.b32.xlu1 %v6268_v56, %s6026_s30  ;;  %5025 = vrot.lane.b32.xlu0 %v6279_v58, %s6026_s30 }
  0xa0   :  { %v6676_v62 = vpop.permute.xlu1 %4750  ;;  %v6678_v55 = vpop.permute.xlu0 %4745 }
  0xa1   :  { %9090 = vst [vmem:[#allocation43_spill] sm:$0xff] %v6676_v62  ;;  %9091 = vst [vmem:[#allocation44_spill] sm:$0xff] %v6678_v55 }
  0xa2   :  { %5040 = vrot.lane.b32.xlu1 %v6304_v53, %s6026_s30  ;;  %5035 = vrot.lane.b32.xlu0 %v6310_v49, %s6026_s30 }
  0xa4   :  { %v6684_v54 = vpop.permute.xlu1 %4760  ;;  %v6686_v47 = vpop.permute.xlu0 %4755 }
  0xa5   :  { %9092 = vst [vmem:[#allocation45_spill] sm:$0xff] %v6684_v54  ;;  %9093 = vst [vmem:[#allocation46_spill] sm:$0xff] %v6686_v47 }
  0xa6   :  { %5050 = vrot.lane.b32.xlu1 %v6328_v60, %s6026_s30  ;;  %5045 = vrot.lane.b32.xlu0 %v6339_v59, %s6026_s30 }
  0xa8   :  { %v6692_v46 = vpop.permute.xlu1 %4770  ;;  %v6694_v62 = vpop.permute.xlu0 %4765 }
  0xa9   :  { %9094 = vst [vmem:[#allocation47_spill] sm:$0xff] %v6692_v46  ;;  %9095 = vst [vmem:[#allocation48_spill] sm:$0xff] %v6694_v62 }
  0xaa   :  { %5060 = vrot.lane.b32.xlu1 %v6364_v45, %s6026_s30  ;;  %5055 = vrot.lane.b32.xlu0 %v6370_v33, %s6026_s30 }
  0xac   :  { %v6700_v55 = vpop.permute.xlu1 %4780  ;;  %v6702_v54 = vpop.permute.xlu0 %4775 }
  0xad   :  { %9096 = vst [vmem:[#allocation49_spill] sm:$0xff] %v6700_v55  ;;  %9097 = vst [vmem:[#allocation50_spill] sm:$0xff] %v6702_v54 }
  0xae   :  { %5070 = vrot.lane.b32.xlu1 %v6388_v36, %s6026_s30  ;;  %5065 = vrot.lane.b32.xlu0 %v6399_v43, %s6026_s30 }
  0xb0   :  { %v6708_v47 = vpop.permute.xlu1 %4790  ;;  %v6710_v46 = vpop.permute.xlu0 %4785 }
  0xb1   :  { %9098 = vst [vmem:[#allocation51_spill] sm:$0xff] %v6708_v47  ;;  %9099 = vst [vmem:[#allocation52_spill] sm:$0xff] %v6710_v46 }
  0xb2   :  { %5080 = vrot.lane.b32.xlu1 %v6424_v29, %s6026_s30  ;;  %5075 = vrot.lane.b32.xlu0 %v6430_v17, %s6026_s30 }
  0xb4   :  { %v6716_v62 = vpop.permute.xlu1 %4800  ;;  %v6718_v55 = vpop.permute.xlu0 %4795 }
  0xb5   :  { %9100 = vst [vmem:[#allocation53_spill] sm:$0xff] %v6716_v62  ;;  %9101 = vst [vmem:[#allocation54_spill] sm:$0xff] %v6718_v55 }
  0xb6   :  { %5090 = vrot.lane.b32.xlu1 %v6448_v20, %s6026_s30  ;;  %5085 = vrot.lane.b32.xlu0 %v6459_v27, %s6026_s30 }
  0xb8   :  { %v6724_v54 = vpop.permute.xlu1 %4810  ;;  %v6726_v47 = vpop.permute.xlu0 %4805 }
  0xb9   :  { %9102 = vst [vmem:[#allocation55_spill] sm:$0xff] %v6724_v54  ;;  %9103 = vst [vmem:[#allocation56_spill] sm:$0xff] %v6726_v47 }
  0xba   :  { %5100 = vrot.lane.b32.xlu1 %v6484_v12, %s6026_s30  ;;  %5095 = vrot.lane.b32.xlu0 %v6490_v4, %s6026_s30 }
  0xbc   :  { %v6732_v46 = vpop.permute.xlu1 %4820  ;;  %v6734_v62 = vpop.permute.xlu0 %4815 }
  0xbd   :  { %9104 = vst [vmem:[#allocation57_spill] sm:$0xff] %v6732_v46  ;;  %9105 = vst [vmem:[#allocation58_spill] sm:$0xff] %v6734_v62 }
  0xbe   :  { %5110 = vrot.lane.b32.xlu1 %v6508_v5, %s6026_s30  ;;  %5105 = vrot.lane.b32.xlu0 %v6519_v9, %s6026_s30 }
  0xc0   :  { %v6740_v55 = vpop.permute.xlu1 %4830  ;;  %v6742_v54 = vpop.permute.xlu0 %4825 }
  0xc1   :  { %9106 = vst [vmem:[#allocation59_spill] sm:$0xff] %v6740_v55  ;;  %9107 = vst [vmem:[#allocation60_spill] sm:$0xff] %v6742_v54 }
  0xc2   :  { %5120 = vrot.lane.b32.xlu1 %v6532_v48, %s6026_s30  ;;  %5115 = vrot.lane.b32.xlu0 %v6538_v11, %s6026_s30 }
  0xc4   :  { %v6748_v47 = vpop.permute.xlu1 %4840  ;;  %v6750_v46 = vpop.permute.xlu0 %4835 }
  0xc5   :  { %9108 = vst [vmem:[#allocation61_spill] sm:$0xff] %v6748_v47  ;;  %9109 = vst [vmem:[#allocation62_spill] sm:$0xff] %v6750_v46 }
  0xc6   :  { %5130 = vrot.lane.b32.xlu1 %v6130_v19, %s6027_s11  ;;  %5125 = vrot.lane.b32.xlu0 %v6112_v15, %s6027_s11 }
  0xc8   :  { %v6756_v55 = vpop.permute.xlu1 %4850  ;;  %v6758_v54 = vpop.permute.xlu0 %4845 }
  0xc9   :  { %9110 = vst [vmem:[#allocation63_spill] sm:$0xff] %v6756_v55  ;;  %9111 = vst [vmem:[#allocation64_spill] sm:$0xff] %v6758_v54 }
  0xca   :  { %5140 = vrot.lane.b32.xlu1 %v6124_v18, %s6027_s11  ;;  %5135 = vrot.lane.b32.xlu0 %v6106_v14, %s6027_s11 }
  0xcc   :  { %v6764_v47 = vpop.permute.xlu1 %4860  ;;  %v6766_v46 = vpop.permute.xlu0 %4855 }
  0xcd   :  { %9112 = vst [vmem:[#allocation65_spill] sm:$0xff] %v6764_v47  ;;  %9113 = vst [vmem:[#allocation66_spill] sm:$0xff] %v6766_v46 }
  0xce   :  { %5150 = vrot.lane.b32.xlu1 %v6148_v24, %s6027_s11  ;;  %5145 = vrot.lane.b32.xlu0 %v6159_v26, %s6027_s11 }
  0xd0   :  { %v6772_v62 = vpop.permute.xlu1 %4870  ;;  %v6774_v55 = vpop.permute.xlu0 %4865 }
  0xd1   :  { %9114 = vst [vmem:[#allocation67_spill] sm:$0xff] %v6772_v62  ;;  %9115 = vst [vmem:[#allocation68_spill] sm:$0xff] %v6774_v55 }
  0xd2   :  { %5160 = vrot.lane.b32.xlu1 %v6184_v34, %s6027_s11  ;;  %5155 = vrot.lane.b32.xlu0 %v6190_v35, %s6027_s11 }
  0xd4   :  { %v6780_v54 = vpop.permute.xlu1 %4880  ;;  %v6782_v47 = vpop.permute.xlu0 %4875 }
  0xd5   :  { %9116 = vst [vmem:[#allocation69_spill] sm:$0xff] %v6780_v54  ;;  %9117 = vst [vmem:[#allocation70_spill] sm:$0xff] %v6782_v47 }
  0xd6   :  { %5170 = vrot.lane.b32.xlu1 %v6208_v40, %s6027_s11  ;;  %5165 = vrot.lane.b32.xlu0 %v6219_v42, %s6027_s11 }
  0xd8   :  { %v6788_v46 = vpop.permute.xlu1 %4890  ;;  %v6790_v62 = vpop.permute.xlu0 %4885 }
  0xd9   :  { %9118 = vst [vmem:[#allocation71_spill] sm:$0xff] %v6788_v46  ;;  %9119 = vst [vmem:[#allocation72_spill] sm:$0xff] %v6790_v62 }
  0xda   :  { %5180 = vrot.lane.b32.xlu1 %v6244_v50, %s6027_s11  ;;  %5175 = vrot.lane.b32.xlu0 %v6250_v51, %s6027_s11 }
  0xdc   :  { %v6796_v55 = vpop.permute.xlu1 %4900  ;;  %v6798_v54 = vpop.permute.xlu0 %4895 }
  0xdd   :  { %9120 = vst [vmem:[#allocation73_spill] sm:$0xff] %v6796_v55  ;;  %9121 = vst [vmem:[#allocation74_spill] sm:$0xff] %v6798_v54 }
  0xde   :  { %5190 = vrot.lane.b32.xlu1 %v6268_v56, %s6027_s11  ;;  %5185 = vrot.lane.b32.xlu0 %v6279_v58, %s6027_s11 }
  0xe0   :  { %v6804_v47 = vpop.permute.xlu1 %4910  ;;  %v6806_v46 = vpop.permute.xlu0 %4905 }
  0xe1   :  { %9122 = vst [vmem:[#allocation75_spill] sm:$0xff] %v6804_v47  ;;  %9123 = vst [vmem:[#allocation76_spill] sm:$0xff] %v6806_v46 }
  0xe2   :  { %5200 = vrot.lane.b32.xlu1 %v6304_v53, %s6027_s11  ;;  %5195 = vrot.lane.b32.xlu0 %v6310_v49, %s6027_s11 }
  0xe4   :  { %v6812_v62 = vpop.permute.xlu1 %4920  ;;  %v6814_v55 = vpop.permute.xlu0 %4915 }
  0xe5   :  { %9124 = vst [vmem:[#allocation77_spill] sm:$0xff] %v6812_v62  ;;  %9125 = vst [vmem:[#allocation78_spill] sm:$0xff] %v6814_v55 }
  0xe6   :  { %5210 = vrot.lane.b32.xlu1 %v6328_v60, %s6027_s11  ;;  %5205 = vrot.lane.b32.xlu0 %v6339_v59, %s6027_s11 }
  0xe8   :  { %v6820_v54 = vpop.permute.xlu1 %4930  ;;  %v6822_v47 = vpop.permute.xlu0 %4925 }
  0xe9   :  { %9126 = vst [vmem:[#allocation79_spill] sm:$0xff] %v6820_v54  ;;  %9127 = vst [vmem:[#allocation80_spill] sm:$0xff] %v6822_v47 }
  0xea   :  { %5220 = vrot.lane.b32.xlu1 %v6364_v45, %s6027_s11  ;;  %5215 = vrot.lane.b32.xlu0 %v6370_v33, %s6027_s11  ;;  %v9174_v45 = vunpack.c.h.bf16 %v6077_v2 }
  0xec   :  { %v6828_v46 = vpop.permute.xlu1 %4940  ;;  %v6830_v62 = vpop.permute.xlu0 %4935 }
  0xed   :  { %9128 = vst [vmem:[#allocation81_spill] sm:$0xff] %v6828_v46  ;;  %9129 = vst [vmem:[#allocation82_spill] sm:$0xff] %v6830_v62  ;;  %v5924_v62 = vld [vmem:[%s8816_s1] sm:$0xff]  }
  0xee   :  { %5230 = vrot.lane.b32.xlu1 %v6388_v36, %s6027_s11  ;;  %5225 = vrot.lane.b32.xlu0 %v6399_v43, %s6027_s11  ;;  %v4653_v36 = vunpack.i.h.bf16 %v6606_v44 }
  0xef   :  { %4463 = vmatprep.subr.bf16.mxu0 %v5924_v62 }
  0xf0   :  { %v6836_v55 = vpop.permute.xlu1 %4950  ;;  %v6838_v54 = vpop.permute.xlu0 %4945  ;;  %4464 = vmatpush3.bf16.msra.mxu0 %v5924_v62  ;;  %v5926_v62 = vld [vmem:[%s8816_s1 + $0x10] ss:$0 sps:$4 sm:$0x33]  }
  0xf1   :  { %9130 = vst [vmem:[#allocation83_spill] sm:$0xff] %v6836_v55  ;;  %9131 = vst [vmem:[#allocation84_spill] sm:$0xff] %v6838_v54  ;;  %v5925_v54 = vld [vmem:[%s8816_s1 + $0x8] sm:$0xff]  }
  0xf2   :  { %5240 = vrot.lane.b32.xlu1 %v6424_v29, %s6027_s11  ;;  %5235 = vrot.lane.b32.xlu0 %v6430_v17, %s6027_s11 }
  0xf3   :  { %4465 = vmatprep.subr.bf16.mxu0 %v5925_v54 }
  0xf4   :  { %v6847_v46 = vpop.permute.xlu1 %4960  ;;  %v6849_v47 = vpop.permute.xlu0 %4955  ;;  %4466 = vmatpush3.bf16.msra.mxu0 %v5925_v54  ;;  %v371_v54 = vsel %vm369_vm0, %v5926_v62, 0 }
  0xf5   :  { %9132 = vst [vmem:[#allocation85_spill] sm:$0xff] %v6847_v46  ;;  %9133 = vst [vmem:[#allocation86_spill] sm:$0xff] %v6849_v47  ;;  %4631 = vmatprep.subr.msk.bf16.mxu0 %vm369_vm0, %v5926_v62 }
  0xf6   :  { %5250 = vrot.lane.b32.xlu1 %v6448_v20, %s6027_s11  ;;  %5245 = vrot.lane.b32.xlu0 %v6459_v27, %s6027_s11 }
  0xf8   :  { %v6858_v55 = vpop.permute.xlu1 %4970  ;;  %v6860_v29 = vpop.permute.xlu0 %4965  ;;  %4468 = vmatpush3.bf16.msra.mxu0 %v371_v54 }
  0xfa   :  { %5260 = vrot.lane.b32.xlu1 %v6484_v12, %s6027_s11  ;;  %5255 = vrot.lane.b32.xlu0 %v6490_v4, %s6027_s11 }
  0xfb   :  { %4470 = vmatmul.mubr.msk.bf16.vlgmr.msra.gmra.mrb[0].mxu0 %vm272_vm1, %v6086_v7 }
  0xfc   :  { %v6866_v47 = vpop.permute.xlu1 %4980  ;;  %v6868_v46 = vpop.permute.xlu0 %4975  ;;  %4473 = vmatprep.mubr.msk.bf16.mxu0 %vm272_vm1, %v6067_v0 }
  0xfe   :  { %5270 = vrot.lane.b32.xlu1 %v6508_v5, %s6027_s11  ;;  %5265 = vrot.lane.b32.xlu0 %v6519_v9, %s6027_s11  ;;  %v2838_v5 = vld [vmem:[%s8818_s3] sm:$0xf]  ;;  %s6030_s3 = smov 100  }
  0xff   :  { %4533 = vmatprep.subr.msk.mxu1 %vm3032_vm2, %v2838_v5 }
 0x100   :  { %v6877_v12 = vpop.permute.xlu1 %4990  ;;  %v6879_v4 = vpop.permute.xlu0 %4985  ;;  %4534 = vmatpush3.msk.msra.mxu1 %vm3032_vm2, %v2838_v5 }
 0x101   :  { %9134 = vst [vmem:[#allocation87_spill] sm:$0xff] %v6877_v12 }
 0x102   :  { %5280 = vrot.lane.b32.xlu1 %v6532_v48, %s6027_s11  ;;  %5275 = vrot.lane.b32.xlu0 %v6538_v11, %s6027_s11 }
 0x103   :  { %4474 = vmatmul.mubr.msk.bf16.gmra.mrb[4].mxu0 %vm272_vm1, %v6077_v2 }
 0x104   :  { %v6890_v9 = vpop.permute.xlu1 %5000  ;;  %v6892_v20 = vpop.permute.xlu0 %4995  ;;  %4477 = vmatprep.mubr.msk.bf16.mxu0 %vm272_vm1, %v6100_v13 }
 0x105   :  { %9135 = vst [vmem:[#allocation88_spill] sm:$0xff] %v6890_v9  ;;  %9136 = vst [vmem:[#allocation89_spill] sm:$0xff] %v6892_v20  ;;  %v4673_v9 = vunpack.i.h.bf16 %v6612_v3  ;;  %v9173_v20 = vunpack.c.l.bf16 %v6072_v1 }
 0x106   :  { %5290 = vrot.lane.b32.xlu1 %v6112_v15, %s6028_s19  ;;  %5285 = vrot.lane.b32.xlu0 %v6112_v15, %s6029_s20 }
 0x108   :  { %v6900_v62 = vpop.permute.xlu1 %5010  ;;  %v6902_v54 = vpop.permute.xlu0 %5005 }
 0x109   :  { %9137 = vst [vmem:[#allocation90_spill] sm:$0xff] %v6900_v62  ;;  %9138 = vst [vmem:[#allocation91_spill] sm:$0xff] %v6902_v54  ;;  %v4663_v54 = vunpack.i.h.bf16 %v6604_v16 }
 0x10a   :  { %5300 = vrot.lane.b32.xlu1 %v6112_v15, %s6030_s3  ;;  %5295 = vrot.lane.b32.xlu0 %v6130_v19, %s6029_s20 }
 0x10b   :  { %4478 = vmatmul.mubr.msk.bf16.gmra.mrb[8].mxu0 %vm272_vm1, %v6091_v8 }
 0x10c   :  { %v6908_v48 = vpop.permute.xlu1 %5020  ;;  %v6910_v11 = vpop.permute.xlu0 %5015  ;;  %4481 = vmatprep.mubr.msk.bf16.mxu0 %vm272_vm1, %v6142_v23 }
 0x10d   :  { %9139 = vst [vmem:[#allocation92_spill] sm:$0xff] %v6908_v48  ;;  %9140 = vst [vmem:[#allocation93_spill] sm:$0xff] %v6910_v11 }
 0x10e   :  { %5310 = vrot.lane.b32.xlu1 %v6112_v15, %s6031_s21  ;;  %5305 = vrot.lane.b32.xlu0 %v6130_v19, %s6028_s19 }
 0x110   :  { %v6916_v5 = vpop.permute.xlu1 %5030  ;;  %v6918_v27 = vpop.permute.xlu0 %5025 }
 0x111   :  { %9141 = vst [vmem:[#allocation94_spill] sm:$0xff] %v6916_v5  ;;  %9142 = vst [vmem:[#allocation95_spill] sm:$0xff] %v6918_v27 }
 0x112   :  { %5320 = vrot.lane.b32.xlu1 %v6130_v19, %s6030_s3  ;;  %5315 = vrot.lane.b32.xlu0 %v6106_v14, %s6029_s20 }
 0x113   :  { %4482 = vmatmul.mubr.msk.bf16.gmra.mrb[12].mxu0 %vm272_vm1, %v6137_v22 }
 0x114   :  { %v6926_v48 = vpop.permute.xlu1 %5040  ;;  %v6928_v11 = vpop.permute.xlu0 %5035 }
 0x115   :  { %9143 = vst [vmem:[#allocation96_spill] sm:$0xff] %v6926_v48  ;;  %9144 = vst [vmem:[#allocation97_spill] sm:$0xff] %v6928_v11 }
 0x116   :  { %5330 = vrot.lane.b32.xlu1 %v6130_v19, %s6031_s21  ;;  %5325 = vrot.lane.b32.xlu0 %v6106_v14, %s6028_s19 }
 0x118   :  { %v6936_v15 = vpop.permute.xlu1 %5050  ;;  %v6938_v5 = vpop.permute.xlu0 %5045 }
 0x119   :  { %9145 = vst [vmem:[#allocation98_spill] sm:$0xff] %v6936_v15  ;;  %9146 = vst [vmem:[#allocation99_spill] sm:$0xff] %v6938_v5 }
 0x11a   :  { %5340 = vrot.lane.b32.xlu1 %v6106_v14, %s6030_s3  ;;  %5335 = vrot.lane.b32.xlu0 %v6124_v18, %s6029_s20 }
 0x11c   :  { %v6944_v48 = vpop.permute.xlu1 %5060  ;;  %v6946_v11 = vpop.permute.xlu0 %5055 }
 0x11d   :  { %9147 = vst [vmem:[#allocation100_spill] sm:$0xff] %v6944_v48  ;;  %9148 = vst [vmem:[#allocation101_spill] sm:$0xff] %v6946_v11 }
 0x11e   :  { %5350 = vrot.lane.b32.xlu1 %v6106_v14, %s6031_s21  ;;  %5345 = vrot.lane.b32.xlu0 %v6124_v18, %s6028_s19 }
 0x120   :  { %v6952_v19 = vpop.permute.xlu1 %5070  ;;  %v6954_v15 = vpop.permute.xlu0 %5065 }
 0x121   :  { %9149 = vst [vmem:[#allocation102_spill] sm:$0xff] %v6952_v19  ;;  %9150 = vst [vmem:[#allocation103_spill] sm:$0xff] %v6954_v15  ;;  %v5988_v15 = vld [vmem:[%s8815_s0 + $0x48] sm:$0xff]  }
 0x122   :  { %5360 = vrot.lane.b32.xlu1 %v6124_v18, %s6030_s3  ;;  %5355 = vrot.lane.b32.xlu0 %v6159_v26, %s6029_s20 }
 0x124   :  { %v6962_v48 = vpop.permute.xlu1 %5080  ;;  %v6964_v11 = vpop.permute.xlu0 %5075 }
 0x125   :  { %9151 = vst [vmem:[#allocation104_spill] sm:$0xff] %v6962_v48  ;;  %9152 = vst [vmem:[#allocation105_spill] sm:$0xff] %v6964_v11 }
 0x126   :  { %5370 = vrot.lane.b32.xlu1 %v6124_v18, %s6031_s21  ;;  %5365 = vrot.lane.b32.xlu0 %v6159_v26, %s6028_s19 }
 0x128   :  { %v6972_v14 = vpop.permute.xlu1 %5090  ;;  %v6974_v19 = vpop.permute.xlu0 %5085 }
 0x129   :  { %9153 = vst [vmem:[#allocation106_spill] sm:$0xff] %v6972_v14  ;;  %9154 = vst [vmem:[#allocation107_spill] sm:$0xff] %v6974_v19  ;;  %v5987_v19 = vld [vmem:[%s8815_s0 + $0x40] sm:$0xff]  }
 0x12a   :  { %5380 = vrot.lane.b32.xlu1 %v6159_v26, %s6030_s3  ;;  %5375 = vrot.lane.b32.xlu0 %v6148_v24, %s6029_s20 }
 0x12b   :  { %4485 = vmatprep.mubr.msk.bf16.mxu0 %vm272_vm1, %v5987_v19 }
 0x12c   :  { %v6980_v48 = vpop.permute.xlu1 %5100  ;;  %v6982_v11 = vpop.permute.xlu0 %5095  ;;  %4486 = vmatmul.mubr.msk.bf16.gmra.mrb[16].mxu0 %vm272_vm1, %v5988_v15  ;;  %v4657_v15 = vunpack.i.l.bf16 %v6596_v28 }
 0x12d   :  { %9155 = vst [vmem:[#allocation108_spill] sm:$0xff] %v6980_v48  ;;  %9156 = vst [vmem:[#allocation109_spill] sm:$0xff] %v6982_v11 }
 0x12e   :  { %5390 = vrot.lane.b32.xlu1 %v6159_v26, %s6031_s21  ;;  %5385 = vrot.lane.b32.xlu0 %v6148_v24, %s6028_s19 }
 0x130   :  { %v6988_v18 = vpop.permute.xlu1 %5110  ;;  %v6990_v14 = vpop.permute.xlu0 %5105 }
 0x131   :  { %9157 = vst [vmem:[#allocation110_spill] sm:$0xff] %v6988_v18  ;;  %9158 = vst [vmem:[#allocation111_spill] sm:$0xff] %v6990_v14 }
 0x132   :  { %5400 = vrot.lane.b32.xlu1 %v6148_v24, %s6030_s3  ;;  %5395 = vrot.lane.b32.xlu0 %v6190_v35, %s6029_s20 }
 0x134   :  { %v6998_v48 = vpop.permute.xlu1 %5120  ;;  %v7000_v11 = vpop.permute.xlu0 %5115 }
 0x135   :  { %9159 = vst [vmem:[#allocation112_spill] sm:$0xff] %v6998_v48  ;;  %9160 = vst [vmem:[#allocation113_spill] sm:$0xff] %v7000_v11 }
 0x136   :  { %5410 = vrot.lane.b32.xlu1 %v6148_v24, %s6031_s21  ;;  %5405 = vrot.lane.b32.xlu0 %v6190_v35, %s6028_s19 }
 0x138   :  { %v7008_v26 = vpop.permute.xlu1 %5130  ;;  %v7010_v14 = vpop.permute.xlu0 %5125 }
 0x13a   :  { %5420 = vrot.lane.b32.xlu1 %v6190_v35, %s6030_s3  ;;  %5415 = vrot.lane.b32.xlu0 %v6184_v34, %s6029_s20 }
 0x13c   :  { %v7016_v11 = vpop.permute.xlu1 %5140  ;;  %v7018_v48 = vpop.permute.xlu0 %5135 }
 0x13e   :  { %5430 = vrot.lane.b32.xlu1 %v6190_v35, %s6031_s21  ;;  %5425 = vrot.lane.b32.xlu0 %v6184_v34, %s6028_s19 }
 0x140   :  { %v7024_v24 = vpop.permute.xlu1 %5150  ;;  %v7026_v18 = vpop.permute.xlu0 %5145 }
 0x141   :  { %9161 = vst [vmem:[#allocation114_spill] sm:$0xff] %v7024_v24 }
 0x142   :  { %5440 = vrot.lane.b32.xlu1 %v6184_v34, %s6030_s3  ;;  %5435 = vrot.lane.b32.xlu0 %v6219_v42, %s6029_s20 }
 0x144   :  { %v7039_v35 = vpop.permute.xlu1 %5160  ;;  %v7041_v5 = vpop.permute.xlu0 %5155 }
 0x145   :  { %9162 = vst [vmem:[#allocation115_spill] sm:$0xff] %v7039_v35  ;;  %9163 = vst [vmem:[#allocation116_spill] sm:$0xff] %v7041_v5 }
 0x146   :  { %5450 = vrot.lane.b32.xlu1 %v6184_v34, %s6031_s21  ;;  %5445 = vrot.lane.b32.xlu0 %v6219_v42, %s6028_s19  ;;  %v4658_v34 = vunpack.i.h.bf16 %v6596_v28  ;;  %v4662_v28 = vunpack.i.l.bf16 %v6604_v16  ;;  %v9171_v16 = vunpack.c.l.bf16 %v6067_v0 }
 0x148   :  { %v7048_v27 = vpop.permute.xlu1 %5170  ;;  %v7050_v62 = vpop.permute.xlu0 %5165  ;;  %v7094_v5 = vmax.f32 %v9171_v16, %v4657_v15 }
 0x149   :  { %9164 = vst [vmem:[#allocation117_spill] sm:$0xff] %v7048_v27  ;;  %9165 = vst [vmem:[#allocation118_spill] sm:$0xff] %v7050_v62  ;;  %v4648_v27 = vunpack.i.h.bf16 %v6598_v10  ;;  %v4647_v62 = vunpack.i.l.bf16 %v6598_v10  ;;  %v4652_v10 = vunpack.i.l.bf16 %v6606_v44  ;;  %v9172_v44 = vunpack.c.h.bf16 %v6072_v1 }
 0x14a   :  { %5460 = vrot.lane.b32.xlu1 %v6219_v42, %s6030_s3  ;;  %5455 = vrot.lane.b32.xlu0 %v6208_v40, %s6029_s20  ;;  %v9179_v1 = vunpack.c.l.bf16 %v6086_v7 }
 0x14b   :  { %v7098_v43 = vmax.f32 %v9172_v44, %v4648_v27  ;;  %v7102_v24 = vmax.f32 %v9173_v20, %v4647_v62  ;;  %v9178_v27 = vunpack.c.h.bf16 %v6086_v7  ;;  %v4668_v62 = vunpack.i.h.bf16 %v6614_v32 }
 0x14c   :  { %v7056_v19 = vpop.permute.xlu1 %5180  ;;  %v7058_v17 = vpop.permute.xlu0 %5175  ;;  %v7123_v20 = vmax.f32 %v9179_v1, %v4652_v10  ;;  %v4683_v7 = vunpack.i.h.bf16 %v6620_v21  ;;  %v4692_v10 = vunpack.i.l.bf16 %v6628_v61  ;;  %v9184_v1 = vunpack.c.h.bf16 %v6100_v13 }
 0x14d   :  { %9166 = vst [vmem:[#allocation119_spill] sm:$0xff] %v7056_v19  ;;  %9167 = vst [vmem:[#allocation120_spill] sm:$0xff] %v7058_v17  ;;  %v5990_v17 = vld [vmem:[%s8815_s0 + $0x58] sm:$0xff]  }
 0x14e   :  { %5470 = vrot.lane.b32.xlu1 %v6219_v42, %s6031_s21  ;;  %5465 = vrot.lane.b32.xlu0 %v6208_v40, %s6028_s19  ;;  %v5989_v42 = vld [vmem:[%s8815_s0 + $0x50] sm:$0xff]  }
 0x14f   :  { %4489 = vmatprep.mubr.msk.bf16.mxu0 %vm272_vm1, %v5989_v42  ;;  %v7119_v42 = vmax.f32 %v9178_v27, %v4653_v36  ;;  %v4682_v36 = vunpack.i.l.bf16 %v6620_v21  ;;  %v4687_v21 = vunpack.i.l.bf16 %v6630_v25  ;;  %v4703_v27 = vunpack.i.h.bf16 %v6636_v37 }
 0x150   :  { %v7069_v35 = vpop.permute.xlu1 %5190  ;;  %v7071_v19 = vpop.permute.xlu0 %5185  ;;  %4490 = vmatmul.mubr.msk.bf16.gmra.mrb[20].mxu0 %vm272_vm1, %v5990_v17 }
 0x151   :  { %9168 = vst [vmem:[#allocation121_spill] sm:$0xff] %v7069_v35  ;;  %9169 = vst [vmem:[#allocation122_spill] sm:$0xff] %v7071_v19  ;;  %v9170_v35 = vunpack.c.h.bf16 %v6067_v0  ;;  %v9177_v0 = vunpack.c.l.bf16 %v6077_v2  ;;  %v9180_v2 = vunpack.c.h.bf16 %v6091_v8 }
 0x152   :  { %5480 = vrot.lane.b32.xlu1 %v6208_v40, %s6030_s3  ;;  %5475 = vrot.lane.b32.xlu0 %v6250_v51, %s6029_s20 }
 0x153   :  { %v7088_v19 = vmax.f32 %v9170_v35, %v4658_v34  ;;  %v7106_v35 = vmax.f32 %v9174_v45, %v4663_v54  ;;  %v7115_v15 = vmax.f32 %v9177_v0, %v4662_v28  ;;  %v4672_v45 = vunpack.i.l.bf16 %v6612_v3 }
 0x154   :  { %v7108_v34 = vpop.permute.xlu1 %5200  ;;  %v7110_v12 = vpop.permute.xlu0 %5195  ;;  %v4667_v54 = vunpack.i.l.bf16 %v6614_v32  ;;  %v7134_v17 = vmax.f32 %v9180_v2, %v4673_v9  ;;  %v4678_v3 = vunpack.i.h.bf16 %v6622_v6  ;;  %v4677_v28 = vunpack.i.l.bf16 %v6622_v6 }
 0x155   :  { %9175 = vst [vmem:[#allocation123_spill] sm:$0xff] %v7108_v34  ;;  %9176 = vst [vmem:[#allocation124_spill] sm:$0xff] %v7110_v12  ;;  %v4693_v32 = vunpack.i.h.bf16 %v6628_v61  ;;  %v9183_v9 = vunpack.c.l.bf16 %v6091_v8  ;;  %v4702_v6 = vunpack.i.l.bf16 %v6636_v37  ;;  %v7156_v2 = vmax.f32 %v9184_v1, %v4668_v62 }
 0x156   :  { %5490 = vrot.lane.b32.xlu1 %v6208_v40, %s6031_s21  ;;  %5485 = vrot.lane.b32.xlu0 %v6250_v51, %s6028_s19  ;;  %v4688_v40 = vunpack.i.h.bf16 %v6630_v25  ;;  %v4698_v61 = vunpack.i.h.bf16 %v6638_v52  ;;  %v9185_v8 = vunpack.c.l.bf16 %v6100_v13  ;;  %v9186_v25 = vunpack.c.h.bf16 %v6137_v22 }
 0x157   :  { %v7149_v0 = vmax.f32 %v9183_v9, %v4672_v45  ;;  %v9187_v37 = vunpack.c.l.bf16 %v6137_v22  ;;  %v9188_v1 = vunpack.c.h.bf16 %v6142_v23  ;;  %v9190_v13 = vunpack.c.h.bf16 %v6167_v30 }
 0x158   :  { %v7143_v16 = vpop.permute.xlu1 %5210  ;;  %v7145_v44 = vpop.permute.xlu0 %5205  ;;  %v7165_v45 = vmax.f32 %v9185_v8, %v4667_v54  ;;  %v7169_v9 = vmax.f32 %v9186_v25, %v4683_v7  ;;  %v9191_v8 = vunpack.c.l.bf16 %v6167_v30  ;;  %v9192_v22 = vunpack.c.h.bf16 %v6172_v31 }
 0x159   :  { %9181 = vst [vmem:[#allocation125_spill] sm:$0xff] %v7143_v16  ;;  %9182 = vst [vmem:[#allocation126_spill] sm:$0xff] %v7145_v44  ;;  %v7173_v62 = vmax.f32 %v9187_v37, %v4682_v36  ;;  %v7177_v16 = vmax.f32 %v9188_v1, %v4678_v3  ;;  %v9189_v44 = vunpack.c.l.bf16 %v6142_v23  ;;  %v7185_v54 = vmax.f32 %v9190_v13, %v4693_v32 }
 0x15a   :  { %5500 = vrot.lane.b32.xlu1 %v6250_v51, %s6030_s3  ;;  %5495 = vrot.lane.b32.xlu0 %v6244_v50, %s6029_s20  ;;  %v7189_v7 = vmax.f32 %v9191_v8, %v4692_v10  ;;  %v7193_v36 = vmax.f32 %v9192_v22, %v4688_v40  ;;  %v9196_v23 = vunpack.c.l.bf16 %v6172_v31  ;;  %v9199_v30 = vunpack.c.l.bf16 %v6197_v38 }
 0x15b   :  { %v7181_v34 = vmax.f32 %v9189_v44, %v4677_v28  ;;  %v9197_v44 = vunpack.c.h.bf16 %v6197_v38  ;;  %v4697_v37 = vunpack.i.l.bf16 %v6638_v52  ;;  %v9201_v40 = vunpack.c.h.bf16 %v6202_v39 }
 0x15c   :  { %9193 = vst [vmem:[#allocation127_spill] sm:$0xff] %v7193_v36  ;;  %v7195_v25 = vpop.permute.xlu1 %5220  ;;  %v7197_v3 = vpop.permute.xlu0 %5215  ;;  %v7201_v28 = vmax.f32 %v9196_v23, %v4687_v21  ;;  %v7209_v10 = vmax.f32 %v9199_v30, %v4702_v6  ;;  %v4713_v13 = vunpack.i.h.bf16 %v6644_v57  ;;  %v4712_v31 = vunpack.i.l.bf16 %v6644_v57  ;;  %v9203_v6 = vld [vmem:[#allocation38_spill] sm:$0xff] }
 0x15d   :  { %9194 = vst [vmem:[#allocation128_spill] sm:$0xff] %v7195_v25  ;;  %9195 = vst [vmem:[#allocation129_spill] sm:$0xff] %v7197_v3  ;;  %v7205_v32 = vmax.f32 %v9197_v44, %v4703_v27  ;;  %v7214_v1 = vmax.f32 %v9201_v40, %v4698_v61  ;;  %v4708_v38 = vunpack.i.h.bf16 %v6646_v41  ;;  %v4707_v21 = vunpack.i.l.bf16 %v6646_v41  ;;  %v5992_v57 = vld [vmem:[%s8815_s0 + $0x68] sm:$0xff]   ;;  %v9208_v44 = vld [vmem:[#allocation39_spill] sm:$0xff] }
 0x15e   :  { %9200 = vst [vmem:[#allocation131_spill] sm:$0xff] %v7209_v10  ;;  %5510 = vrot.lane.b32.xlu1 %v6250_v51, %s6031_s21  ;;  %5505 = vrot.lane.b32.xlu0 %v6244_v50, %s6028_s19  ;;  %v4723_v52 = vunpack.i.h.bf16 %v6652_v63  ;;  %v4722_v27 = vunpack.i.l.bf16 %v6652_v63  ;;  %v4718_v61 = vunpack.i.h.bf16 %v9203_v6  ;;  %v5991_v51 = vld [vmem:[%s8815_s0 + $0x60] sm:$0xff]   ;;  %v9206_v41 = vunpack.c.l.bf16 %v6202_v39  ;;  %v9212_v3 = vld [vmem:[#allocation40_spill] sm:$0xff]  ;;  %v9219_v10 = vld [vmem:[#allocation7_spill] sm:$0xff] }
 0x15f   :  { %9198 = vst [vmem:[#allocation130_spill] sm:$0xff] %v7205_v32  ;;  %9202 = vst [vmem:[#allocation132_spill] sm:$0xff] %v7214_v1  ;;  %v4717_v63 = vunpack.i.l.bf16 %v9203_v6  ;;  %v4733_v30 = vunpack.i.h.bf16 %v9208_v44  ;;  %v4732_v40 = vunpack.i.l.bf16 %v9208_v44  ;;  %v4728_v12 = vunpack.i.h.bf16 %v9212_v3  ;;  %v9214_v6 = vld [vmem:[#allocation6_spill] sm:$0xff]  ;;  %4493 = vmatprep.mubr.msk.bf16.mxu0 %vm272_vm1, %v5991_v51 }
 0x160   :  { %v7227_v8 = vpop.permute.xlu1 %5230  ;;  %v7229_v22 = vpop.permute.xlu0 %5225  ;;  %v7239_v23 = vmax.f32 %v9206_v41, %v4697_v37  ;;  %v9215_v41 = vunpack.c.h.bf16 %v9214_v6  ;;  %v4727_v44 = vunpack.i.l.bf16 %v9212_v3  ;;  %v9220_v32 = vunpack.c.h.bf16 %v9219_v10  ;;  %4494 = vmatmul.mubr.msk.bf16.gmra.mrb[24].mxu0 %vm272_vm1, %v5992_v57 }
 0x161   :  { %9204 = vst [vmem:[#allocation38_spill] sm:$0xff] %v7227_v8  ;;  %9205 = vst [vmem:[#allocation133_spill] sm:$0xff] %v7229_v22  ;;  %v9209_v8 = vld [vmem:[#allocation5_spill] sm:$0xff] }
 0x162   :  { %9207 = vst [vmem:[#allocation134_spill] sm:$0xff] %v7239_v23  ;;  %v9210_v22 = vunpack.c.h.bf16 %v9209_v8  ;;  %5520 = vrot.lane.b32.xlu1 %v6244_v50, %s6030_s3  ;;  %5515 = vrot.lane.b32.xlu0 %v6279_v58, %s6029_s20  ;;  %v9213_v39 = vunpack.c.l.bf16 %v9209_v8  ;;  %v7259_v1 = vmax.f32 %v9215_v41, %v4708_v38  ;;  %v7270_v36 = vmax.f32 %v9220_v32, %v4723_v52  ;;  %v9224_v38 = vld [vmem:[#allocation8_spill] sm:$0xff]  ;;  %v9230_v32 = vld [vmem:[#allocation9_spill] sm:$0xff] }
 0x163   :  { %v9231_v52 = vunpack.c.h.bf16 %v9230_v32 }
 0x164   :  { %v7246_v25 = vmax.f32 %v9210_v22, %v4713_v13  ;;  %v7255_v37 = vmax.f32 %v9213_v39, %v4712_v31  ;;  %9216 = vst [vmem:[#allocation5_spill] sm:$0xff] %v7259_v1  ;;  %v9217_v13 = vld [vmem:[#allocation41_spill] sm:$0xff]  ;;  %9221 = vst [vmem:[#allocation40_spill] sm:$0xff] %v7270_v36  ;;  %v9222_v31 = vunpack.c.l.bf16 %v9219_v10  ;;  %v9225_v39 = vunpack.c.h.bf16 %v9224_v38  ;;  %v7280_v3 = vpop.permute.xlu1 %5240  ;;  %v7282_v1 = vpop.permute.xlu0 %5235 }
 0x165   :  { %v4743_v22 = vunpack.i.h.bf16 %v9217_v13  ;;  %9227 = vst [vmem:[#allocation7_spill] sm:$0xff] %v7280_v3  ;;  %9228 = vst [vmem:[#allocation8_spill] sm:$0xff] %v7282_v1  ;;  %v7291_v51 = vmax.f32 %v9231_v52, %v4733_v30  ;;  %v9233_v10 = vunpack.c.l.bf16 %v9230_v32  ;;  %v9238_v3 = vld [vmem:[#allocation42_spill] sm:$0xff]  ;;  %v9246_v1 = vld [vmem:[#allocation45_spill] sm:$0xff] }
 0x166   :  { %9211 = vst [vmem:[#allocation39_spill] sm:$0xff] %v7246_v25  ;;  %v9218_v25 = vunpack.c.l.bf16 %v9214_v6  ;;  %v7274_v8 = vmax.f32 %v9222_v31, %v4722_v27  ;;  %v7278_v41 = vmax.f32 %v9225_v39, %v4718_v61  ;;  %v4742_v61 = vunpack.i.l.bf16 %v9217_v13  ;;  %v9235_v6 = vld [vmem:[#allocation10_spill] sm:$0xff]  ;;  %5530 = vrot.lane.b32.xlu1 %v6244_v50, %s6031_s21  ;;  %5525 = vrot.lane.b32.xlu0 %v6279_v58, %s6028_s19 }
 0x167   :  { %9232 = vst [vmem:[#allocation9_spill] sm:$0xff] %v7291_v51  ;;  %v7295_v27 = vmax.f32 %v9233_v10, %v4732_v40  ;;  %v9236_v31 = vunpack.c.h.bf16 %v9235_v6  ;;  %v4738_v57 = vunpack.i.h.bf16 %v9238_v3  ;;  %v9241_v40 = vld [vmem:[#allocation11_spill] sm:$0xff]  ;;  %v4737_v13 = vunpack.i.l.bf16 %v9238_v3  ;;  %v9245_v10 = vld [vmem:[#allocation44_spill] sm:$0xff] }
 0x168   :  { %v7266_v23 = vmax.f32 %v9218_v25, %v4707_v21  ;;  %9223 = vst [vmem:[#allocation6_spill] sm:$0xff] %v7274_v8  ;;  %9226 = vst [vmem:[#allocation41_spill] sm:$0xff] %v7278_v41  ;;  %v9229_v25 = vunpack.c.l.bf16 %v9224_v38  ;;  %v9242_v38 = vunpack.c.h.bf16 %v9241_v40  ;;  %v4747_v50 = vunpack.i.l.bf16 %v9245_v10  ;;  %v7321_v51 = vpop.permute.xlu1 %5250 }
 0x169   :  { %9234 = vst [vmem:[#allocation135_spill] sm:$0xff] %v7295_v27  ;;  %v7300_v39 = vmax.f32 %v9236_v31, %v4728_v12  ;;  %v9244_v12 = vld [vmem:[#allocation43_spill] sm:$0xff]  ;;  %v4748_v31 = vunpack.i.h.bf16 %v9245_v10  ;;  %v4763_v27 = vunpack.i.h.bf16 %v9246_v1  ;;  %v4762_v3 = vunpack.i.l.bf16 %v9246_v1  ;;  %v9258_v1 = vld [vmem:[#allocation13_spill] sm:$0xff] }
 0x16a   :  { %v7287_v21 = vmax.f32 %v9229_v25, %v4717_v63  ;;  %v9239_v63 = vunpack.c.l.bf16 %v9235_v6  ;;  %v7313_v25 = vmax.f32 %v9242_v38, %v4743_v22  ;;  %v4753_v32 = vunpack.i.h.bf16 %v9244_v12  ;;  %9247 = vst [vmem:[#allocation43_spill] sm:$0xff] %v7321_v51  ;;  %v9255_v10 = vld [vmem:[#allocation47_spill] sm:$0xff]  ;;  %5540 = vrot.lane.b32.xlu1 %v6279_v58, %s6030_s3  ;;  %5535 = vrot.lane.b32.xlu0 %v6268_v56, %s6029_s20 }
 0x16b   :  { %9237 = vst [vmem:[#allocation10_spill] sm:$0xff] %v7300_v39  ;;  %v4752_v52 = vunpack.i.l.bf16 %v9244_v12  ;;  %v9249_v6 = vunpack.c.l.bf16 %v9241_v40  ;;  %v4773_v8 = vunpack.i.h.bf16 %v9255_v10 }
 0x16c   :  { %v7309_v30 = vmax.f32 %v9239_v63, %v4727_v44  ;;  %9243 = vst [vmem:[#allocation11_spill] sm:$0xff] %v7313_v25  ;;  %v7323_v44 = vpop.permute.xlu0 %5245  ;;  %v9251_v63 = vld [vmem:[#allocation46_spill] sm:$0xff]  ;;  %v9252_v25 = vld [vmem:[#allocation12_spill] sm:$0xff] }
 0x16d   :  { %9248 = vst [vmem:[#allocation44_spill] sm:$0xff] %v7323_v44  ;;  %v7327_v22 = vmax.f32 %v9249_v6, %v4742_v61  ;;  %v4758_v38 = vunpack.i.h.bf16 %v9251_v63  ;;  %v4757_v12 = vunpack.i.l.bf16 %v9251_v63  ;;  %v9253_v39 = vunpack.c.h.bf16 %v9252_v25 }
 0x16e   :  { %9240 = vst [vmem:[#allocation42_spill] sm:$0xff] %v7309_v30  ;;  %v9256_v61 = vunpack.c.l.bf16 %v9252_v25  ;;  %v9259_v6 = vunpack.c.h.bf16 %v9258_v1  ;;  %v4772_v63 = vunpack.i.l.bf16 %v9255_v10  ;;  %v9262_v44 = vunpack.c.l.bf16 %v9258_v1  ;;  %5550 = vrot.lane.b32.xlu1 %v6279_v58, %s6031_s21  ;;  %5545 = vrot.lane.b32.xlu0 %v6268_v56, %s6028_s19 }
 0x16f   :  { %9250 = vst [vmem:[#allocation45_spill] sm:$0xff] %v7327_v22  ;;  %v7334_v30 = vmax.f32 %v9253_v39, %v4738_v57  ;;  %v9261_v39 = vld [vmem:[#allocation48_spill] sm:$0xff] }
 0x170   :  { %v7343_v40 = vmax.f32 %v9256_v61, %v4737_v13  ;;  %v7347_v51 = vmax.f32 %v9259_v6, %v4753_v32  ;;  %v4768_v57 = vunpack.i.h.bf16 %v9261_v39  ;;  %v7353_v22 = vmax.f32 %v9262_v44, %v4752_v52  ;;  %v9267_v61 = vld [vmem:[#allocation16_spill] sm:$0xff]  ;;  %v7367_v6 = vpop.permute.xlu1 %5260  ;;  %v7369_v10 = vpop.permute.xlu0 %5255  ;;  %v9274_v44 = vld [vmem:[#allocation17_spill] sm:$0xff] }
 0x171   :  { %9254 = vst [vmem:[#allocation46_spill] sm:$0xff] %v7334_v30  ;;  %v9264_v30 = vld [vmem:[#allocation14_spill] sm:$0xff]  ;;  %9271 = vst [vmem:[#allocation16_spill] sm:$0xff] %v7369_v10  ;;  %v9272_v1 = vunpack.c.l.bf16 %v9267_v61 }
 0x172   :  { %9257 = vst [vmem:[#allocation12_spill] sm:$0xff] %v7343_v40  ;;  %9260 = vst [vmem:[#allocation47_spill] sm:$0xff] %v7347_v51  ;;  %v9265_v36 = vunpack.c.h.bf16 %v9264_v30  ;;  %v9266_v25 = vunpack.c.l.bf16 %v9264_v30  ;;  %v9268_v40 = vunpack.c.h.bf16 %v9267_v61  ;;  %v9277_v30 = vunpack.c.l.bf16 %v9274_v44  ;;  %5560 = vrot.lane.b32.xlu1 %v6268_v56, %s6030_s3  ;;  %5555 = vrot.lane.b32.xlu0 %v6310_v49, %s6029_s20 }
 0x173   :  { %9263 = vst [vmem:[#allocation13_spill] sm:$0xff] %v7353_v22  ;;  %9270 = vst [vmem:[#allocation14_spill] sm:$0xff] %v7367_v6  ;;  %v7373_v52 = vmax.f32 %v9272_v1, %v4762_v3  ;;  %v9275_v22 = vunpack.c.h.bf16 %v9274_v44  ;;  %v9287_v1 = vld [vmem:[#allocation49_spill] sm:$0xff]  ;;  %v5127_v51 = vunpack.i.l.bf16 %v7010_v14 }
 0x174   :  { %v7357_v41 = vmax.f32 %v9265_v36, %v4748_v31  ;;  %v7361_v13 = vmax.f32 %v9266_v25, %v4747_v50  ;;  %v7365_v32 = vmax.f32 %v9268_v40, %v4763_v27  ;;  %v7381_v31 = vmax.f32 %v9277_v30, %v4757_v12  ;;  %v9279_v27 = vld [vmem:[#allocation20_spill] sm:$0xff]  ;;  %v7404_v58 = vpop.permute.xlu1 %5270  ;;  %v7406_v10 = vpop.permute.xlu0 %5265 }
 0x175   :  { %9273 = vst [vmem:[#allocation136_spill] sm:$0xff] %v7373_v52  ;;  %v7377_v36 = vmax.f32 %v9275_v22, %v4758_v38  ;;  %v4767_v50 = vunpack.i.l.bf16 %v9261_v39  ;;  %v9280_v40 = vunpack.c.h.bf16 %v9279_v27  ;;  %v9282_v3 = vunpack.c.l.bf16 %v9279_v27  ;;  %v9284_v38 = vld [vmem:[#allocation21_spill] sm:$0xff]  ;;  %9290 = vst [vmem:[#allocation49_spill] sm:$0xff] %v7404_v58  ;;  %v9296_v52 = vld [vmem:[#allocation24_spill] sm:$0xff] }
 0x176   :  { %9269 = vst [vmem:[#allocation48_spill] sm:$0xff] %v7365_v32  ;;  %9278 = vst [vmem:[#allocation137_spill] sm:$0xff] %v7381_v31  ;;  %v9285_v61 = vunpack.c.h.bf16 %v9284_v38  ;;  %v4783_v39 = vunpack.i.h.bf16 %v9287_v1  ;;  %v4782_v44 = vunpack.i.l.bf16 %v9287_v1  ;;  %v9292_v27 = vunpack.c.l.bf16 %v9284_v38  ;;  %5570 = vrot.lane.b32.xlu1 %v6268_v56, %s6031_s21  ;;  %5565 = vrot.lane.b32.xlu0 %v6310_v49, %s6028_s19 }
 0x177   :  { %9276 = vst [vmem:[#allocation17_spill] sm:$0xff] %v7377_v36  ;;  %v7386_v25 = vmax.f32 %v9280_v40, %v4773_v8  ;;  %v7394_v22 = vmax.f32 %v9282_v3, %v4772_v63  ;;  %v9288_v8 = vld [vmem:[#allocation55_spill] sm:$0xff]  ;;  %v9289_v40 = vld [vmem:[#allocation56_spill] sm:$0xff]  ;;  %v9297_v38 = vunpack.c.h.bf16 %v9296_v52 }
 0x178   :  { %v7398_v12 = vmax.f32 %v9285_v61, %v4768_v57  ;;  %v4812_v30 = vunpack.i.l.bf16 %v9288_v8  ;;  %v4807_v6 = vunpack.i.l.bf16 %v9289_v40  ;;  %9291 = vst [vmem:[#allocation55_spill] sm:$0xff] %v7406_v10  ;;  %v5993_v63 = vld [vmem:[%s8815_s0 + $0x70] sm:$0xff]   ;;  %v5994_v57 = vld [vmem:[%s8815_s0 + $0x78] sm:$0xff]   ;;  %v7416_v3 = vmax.f32 %v9292_v27, %v4767_v50  ;;  %v9298_v27 = vld [vmem:[#allocation58_spill] sm:$0xff] }
 0x179   :  { %9281 = vst [vmem:[#allocation20_spill] sm:$0xff] %v7386_v25  ;;  %9283 = vst [vmem:[#allocation138_spill] sm:$0xff] %v7394_v22  ;;  %v4813_v61 = vunpack.i.h.bf16 %v9288_v8  ;;  %v4808_v1 = vunpack.i.h.bf16 %v9289_v40  ;;  %v9295_v22 = vld [vmem:[#allocation50_spill] sm:$0xff]  ;;  %v4967_v25 = vunpack.i.l.bf16 %v6860_v29  ;;  %v7429_v50 = vmax.f32 %v9297_v38, %v4783_v39  ;;  %4497 = vmatprep.mubr.msk.bf16.mxu0 %vm272_vm1, %v5993_v63  ;;  %v7442_v39 = vpop.permute.xlu1 %5280  ;;  %v7444_v38 = vpop.permute.xlu0 %5275 }
 0x17a   :  { %9286 = vst [vmem:[#allocation21_spill] sm:$0xff] %v7398_v12  ;;  %9293 = vst [vmem:[#allocation56_spill] sm:$0xff] %v7416_v3  ;;  %v9294_v12 = vld [vmem:[#allocation57_spill] sm:$0xff]  ;;  %v4818_v40 = vunpack.i.h.bf16 %v9298_v27  ;;  %v4968_v3 = vunpack.i.h.bf16 %v6860_v29  ;;  %v9299_v10 = vunpack.c.l.bf16 %v9296_v52  ;;  %v1240_v36 = vmax.f32 %v7123_v20, %v4812_v30  ;;  %4498 = vmatmul.mubr.msk.bf16.gmra.mrb[28].mxu0 %vm272_vm1, %v5994_v57  ;;  %v9301_v30 = vld [vmem:[#allocation60_spill] sm:$0xff]  ;;  %5580 = vrot.lane.b32.xlu1 %v6310_v49, %s6030_s3 }
 0x17b   :  { %v4823_v58 = vunpack.i.h.bf16 %v9294_v12  ;;  %v4822_v8 = vunpack.i.l.bf16 %v9294_v12  ;;  %v1238_v31 = vmax.f32 %v7102_v24, %v4807_v6  ;;  %v1241_v29 = vmax.f32 %v7119_v42, %v4813_v61  ;;  %5575 = vrot.lane.b32.xlu0 %v6304_v53, %s6029_s20 }
 0x17c   :  { %v7437_v32 = vmax.f32 %v9299_v10, %v4782_v44  ;;  %v1239_v12 = vmax.f32 %v7098_v43, %v4808_v1  ;;  %v5128_v10 = vunpack.i.h.bf16 %v7010_v14  ;;  %v4817_v20 = vunpack.i.l.bf16 %v9298_v27  ;;  %v9300_v43 = vld [vmem:[#allocation59_spill] sm:$0xff] }
 0x17d   :  { %v7450_v52 = vmax.f32 %v7106_v35, %v4823_v58  ;;  %v1494_v24 = vmax.f32 %v1238_v31, %v4967_v25  ;;  %v7459_v6 = vmax.f32 %v7115_v15, %v4822_v8  ;;  %v7462_v42 = vmax.f32 %v7088_v19, %v4818_v40  ;;  %v5291_v56 = vpop.permute.xlu1 %5290  ;;  %v5286_v63 = vpop.permute.xlu0 %5285 }
 0x17e   :  { %v4833_v35 = vunpack.i.h.bf16 %v9300_v43  ;;  %v1495_v44 = vmax.f32 %v1239_v12, %v4968_v3  ;;  %v4832_v14 = vunpack.i.l.bf16 %v9300_v43  ;;  %v4828_v58 = vunpack.i.h.bf16 %v9301_v30  ;;  %5590 = vrot.lane.b32.xlu1 %v6310_v49, %s6031_s21  ;;  %v5996_v49 = vld [vmem:[%s8815_s0 + $0x88] sm:$0xff]  }
 0x17f   :  { %v4827_v31 = vunpack.i.l.bf16 %v9301_v30  ;;  %v1750_v25 = vmax.f32 %v1494_v24, %v5127_v51  ;;  %v5293_v61 = vunpack.i.h.bf16 %v5291_v56  ;;  %v5288_v1 = vunpack.i.h.bf16 %v5286_v63  ;;  %5585 = vrot.lane.b32.xlu0 %v6304_v53, %s6028_s19 }
 0x180   :  { %v1751_v57 = vmax.f32 %v1495_v44, %v5128_v10  ;;  %v5287_v15 = vunpack.i.l.bf16 %v5286_v63  ;;  %v1242_v8 = vmax.f32 %v7094_v5, %v4817_v20  ;;  %v5292_v19 = vunpack.i.l.bf16 %v5291_v56 }
 0x181   :  { %v4973_v3 = vunpack.i.h.bf16 %v6858_v55  ;;  %v4972_v27 = vunpack.i.l.bf16 %v6858_v55  ;;  %v7476_v12 = vmax.f32 %v7134_v17, %v4833_v35  ;;  %v7479_v10 = vmax.f32 %v7149_v0, %v4832_v14  ;;  %v5301_v24 = vpop.permute.xlu1 %5300  ;;  %v5296_v43 = vpop.permute.xlu0 %5295  ;;  %v5995_v35 = vld [vmem:[%s8815_s0 + $0x80] sm:$0xff]  }
 0x182   :  { %v2006_v51 = vmax.f32 %v1750_v25, %v5287_v15  ;;  %v2007_v40 = vmax.f32 %v1751_v57, %v5288_v1  ;;  %v7482_v5 = vmax.f32 %v7165_v45, %v4827_v31  ;;  %v7485_v20 = vmax.f32 %v7156_v2, %v4828_v58  ;;  %4501 = vmatprep.mubr.msk.bf16.mxu0 %vm272_vm1, %v5995_v35 }
 0x183   :  { %v5303_v44 = vunpack.i.h.bf16 %v5301_v24  ;;  %v5302_v30 = vunpack.i.l.bf16 %v5301_v24  ;;  %v5133_v55 = vunpack.i.h.bf16 %v7008_v26  ;;  %v5132_v25 = vunpack.i.l.bf16 %v7008_v26  ;;  %5600 = vrot.lane.b32.xlu1 %v6304_v53, %s6030_s3  ;;  %5595 = vrot.lane.b32.xlu0 %v6339_v59, %s6029_s20 }
 0x184   :  { %v2263_v56 = vmax.f32 %v2007_v40, %v5293_v61  ;;  %v2262_v17 = vmax.f32 %v2006_v51, %v5292_v19  ;;  %v1496_v0 = vmax.f32 %v1240_v36, %v4972_v27  ;;  %v1497_v45 = vmax.f32 %v1241_v29, %v4973_v3  ;;  %4502 = vmatmul.mubr.msk.bf16.gmra.mrb[32].mxu0 %vm272_vm1, %v5996_v49  ;;  %v9302_v51 = vld [vmem:[#allocation61_spill] sm:$0xff] }
 0x185   :  { %v4977_v2 = vunpack.i.l.bf16 %v6868_v46  ;;  %v5298_v14 = vunpack.i.h.bf16 %v5296_v43  ;;  %v5297_v58 = vunpack.i.l.bf16 %v5296_v43  ;;  %v5311_v31 = vpop.permute.xlu1 %5310  ;;  %v5306_v63 = vpop.permute.xlu0 %5305  ;;  %v4843_v40 = vunpack.i.h.bf16 %v9302_v51  ;;  %v9303_v43 = vld [vmem:[#allocation62_spill] sm:$0xff] }
 0x186   :  { %v2519_v26 = vmax.f32 %v2263_v56, %v5303_v44  ;;  %v5313_v57 = vunpack.i.h.bf16 %v5311_v31  ;;  %v5312_v61 = vunpack.i.l.bf16 %v5311_v31  ;;  %v2518_v1 = vmax.f32 %v2262_v17, %v5302_v30 }
 0x187   :  { %v1752_v36 = vmax.f32 %v1496_v0, %v5132_v25  ;;  %v1753_v29 = vmax.f32 %v1497_v45, %v5133_v55  ;;  %v5308_v19 = vunpack.i.h.bf16 %v5306_v63  ;;  %v5307_v3 = vunpack.i.l.bf16 %v5306_v63  ;;  %5610 = vrot.lane.b32.xlu1 %v6304_v53, %s6031_s21  ;;  %5605 = vrot.lane.b32.xlu0 %v6339_v59, %s6028_s19 }
 0x188   :  { %v2775_v15 = vmax.f32 %v2519_v26, %v5313_v57  ;;  %v2774_v27 = vmax.f32 %v2518_v1, %v5312_v61  ;;  %v4842_v24 = vunpack.i.l.bf16 %v9302_v51  ;;  %v4838_v44 = vunpack.i.h.bf16 %v9303_v43 }
 0x189   :  { %v4978_v30 = vunpack.i.h.bf16 %v6868_v46  ;;  %v5321_v56 = vpop.permute.xlu1 %5320  ;;  %v5316_v55 = vpop.permute.xlu0 %5315  ;;  %v2008_v25 = vmax.f32 %v1752_v36, %v5297_v58  ;;  %v2009_v17 = vmax.f32 %v1753_v29, %v5298_v14  ;;  %v5138_v35 = vunpack.i.h.bf16 %v7018_v48 }
 0x18a   :  { %v5323_v0 = vunpack.i.h.bf16 %v5321_v56  ;;  %v5322_v45 = vunpack.i.l.bf16 %v5321_v56  ;;  %4535 = vmatprep.mubr.msk.f32.mxu1 %vm2839_vm3, %v2774_v27  ;;  %v5137_v31 = vunpack.i.l.bf16 %v7018_v48  ;;  %v4982_v46 = vunpack.i.l.bf16 %v6866_v47 }
 0x18b   :  { %v1498_v63 = vmax.f32 %v1242_v8, %v4977_v2  ;;  %v2264_v49 = vmax.f32 %v2008_v25, %v5307_v3  ;;  %v2265_v58 = vmax.f32 %v2009_v17, %v5308_v19  ;;  %4536 = vmatmul.mubr.msk.f32.vlgmr.msra.gmra.mrb[0].mxu1 %vm2839_vm3, %v2775_v15  ;;  %v1499_v14 = vmax.f32 %v7462_v42, %v4978_v30 }
 0x18c   :  { %v5318_v26 = vunpack.i.h.bf16 %v5316_v55  ;;  %v5317_v57 = vunpack.i.l.bf16 %v5316_v55  ;;  %v4983_v27 = vunpack.i.h.bf16 %v6866_v47  ;;  %5620 = vrot.lane.b32.xlu1 %v6339_v59, %s6030_s3  ;;  %5615 = vrot.lane.b32.xlu0 %v6328_v60, %s6029_s20  ;;  %v7526_v19 = vmax.f32 %v7169_v9, %v4843_v40 }
 0x18d   :  { %v5331_v61 = vpop.permute.xlu1 %5330  ;;  %v5326_v1 = vpop.permute.xlu0 %5325  ;;  %v2520_v48 = vmax.f32 %v2264_v49, %v5322_v45  ;;  %v2521_v36 = vmax.f32 %v2265_v58, %v5323_v0  ;;  %v1754_v51 = vmax.f32 %v1498_v63, %v5137_v31  ;;  %v1755_v56 = vmax.f32 %v1499_v14, %v5138_v35 }
 0x18e   :  { %v5333_v29 = vunpack.i.h.bf16 %v5331_v61  ;;  %v5332_v53 = vunpack.i.l.bf16 %v5331_v61  ;;  %v5328_v2 = vunpack.i.h.bf16 %v5326_v1  ;;  %v5327_v15 = vunpack.i.l.bf16 %v5326_v1 }
 0x18f   :  { %v7529_v3 = vmax.f32 %v7173_v62, %v4842_v24  ;;  %v4837_v47 = vunpack.i.l.bf16 %v9303_v43  ;;  %v1500_v30 = vmax.f32 %v7459_v6, %v4982_v46  ;;  %v2010_v17 = vmax.f32 %v1754_v51, %v5317_v57 }
 0x190   :  { %v2776_v8 = vmax.f32 %v2520_v48, %v5332_v53  ;;  %v2777_v42 = vmax.f32 %v2521_v36, %v5333_v29  ;;  %v2011_v0 = vmax.f32 %v1755_v56, %v5318_v26  ;;  %v5143_v31 = vunpack.i.h.bf16 %v7016_v11  ;;  %5630 = vrot.lane.b32.xlu1 %v6339_v59, %s6031_s21  ;;  %5625 = vrot.lane.b32.xlu0 %v6328_v60, %s6028_s19  ;;  %v5998_v59 = vld [vmem:[%s8815_s0 + $0x98] sm:$0xff]   ;;  %v9304_v56 = vld [vmem:[#allocation63_spill] sm:$0xff] }
 0x191   :  { %v5341_v55 = vpop.permute.xlu1 %5340  ;;  %v5336_v25 = vpop.permute.xlu0 %5335  ;;  %v5142_v9 = vunpack.i.l.bf16 %v7016_v11  ;;  %v1501_v62 = vmax.f32 %v7450_v52, %v4983_v27  ;;  %v2266_v6 = vmax.f32 %v2010_v17, %v5327_v15  ;;  %v5997_v11 = vld [vmem:[%s8815_s0 + $0x90] sm:$0xff]   ;;  %v4987_v57 = vunpack.i.l.bf16 %v6879_v4 }
 0x192   :  { %v5343_v45 = vunpack.i.h.bf16 %v5341_v55  ;;  %v5342_v35 = vunpack.i.l.bf16 %v5341_v55  ;;  %4538 = vmatprep.mubr.msk.f32.mxu1 %vm2839_vm3, %v2776_v8  ;;  %v2267_v40 = vmax.f32 %v2011_v0, %v5328_v2  ;;  %v5338_v24 = vunpack.i.h.bf16 %v5336_v25  ;;  %4505 = vmatprep.mubr.msk.bf16.mxu0 %vm272_vm1, %v5997_v11 }
 0x193   :  { %4539 = vmatmul.mubr.msk.f32.gmra.mrb[2].mxu1 %vm2839_vm3, %v2777_v42  ;;  %v5337_v46 = vunpack.i.l.bf16 %v5336_v25  ;;  %v1756_v61 = vmax.f32 %v1500_v30, %v5142_v9  ;;  %v1757_v1 = vmax.f32 %v1501_v62, %v5143_v31  ;;  %v7555_v27 = vmax.f32 %v7181_v34, %v4837_v47  ;;  %4506 = vmatmul.mubr.msk.bf16.gmra.mrb[36].mxu0 %vm272_vm1, %v5998_v59 }
 0x194   :  { %v2522_v58 = vmax.f32 %v2266_v6, %v5342_v35  ;;  %v2523_v14 = vmax.f32 %v2267_v40, %v5343_v45  ;;  %5640 = vrot.lane.b32.xlu1 %v6328_v60, %s6030_s3  ;;  %5635 = vrot.lane.b32.xlu0 %v6370_v33, %s6029_s20  ;;  %v7560_v51 = vmax.f32 %v7177_v16, %v4838_v44  ;;  %v4853_v8 = vunpack.i.h.bf16 %v9304_v56 }
 0x195   :  { %v5351_v63 = vpop.permute.xlu1 %5350  ;;  %v5346_v49 = vpop.permute.xlu0 %5345  ;;  %v4988_v42 = vunpack.i.h.bf16 %v6879_v4  ;;  %v2013_v30 = vmax.f32 %v1757_v1, %v5338_v24  ;;  %v2012_v55 = vmax.f32 %v1756_v61, %v5337_v46  ;;  %v5148_v34 = vunpack.i.h.bf16 %v7026_v18  ;;  %v9305_v4 = vld [vmem:[#allocation87_spill] sm:$0xff] }
 0x196   :  { %v5353_v26 = vunpack.i.h.bf16 %v5351_v63  ;;  %v5352_v52 = vunpack.i.l.bf16 %v5351_v63  ;;  %v5348_v29 = vunpack.i.h.bf16 %v5346_v49  ;;  %v5347_v53 = vunpack.i.l.bf16 %v5346_v49 }
 0x197   :  { %v5147_v43 = vunpack.i.l.bf16 %v7026_v18  ;;  %v4992_v16 = vunpack.i.l.bf16 %v9305_v4  ;;  %v1502_v44 = vmax.f32 %v7482_v5, %v4987_v57  ;;  %v1503_v45 = vmax.f32 %v7485_v20, %v4988_v42  ;;  %v9306_v5 = vld [vmem:[#allocation15_spill] sm:$0xff]  ;;  %v9308_v42 = vld [vmem:[#allocation114_spill] sm:$0xff] }
 0x198   :  { %v2778_v48 = vmax.f32 %v2522_v58, %v5352_v52  ;;  %v2779_v36 = vmax.f32 %v2523_v14, %v5353_v26  ;;  %5650 = vrot.lane.b32.xlu1 %v6328_v60, %s6031_s21  ;;  %5645 = vrot.lane.b32.xlu0 %v6370_v33, %s6028_s19  ;;  %v2268_v47 = vmax.f32 %v2012_v55, %v5347_v53  ;;  %v4993_v24 = vunpack.i.h.bf16 %v9305_v4  ;;  %v9307_v14 = vld [vmem:[#allocation64_spill] sm:$0xff]  ;;  %v5999_v4 = vld [vmem:[%s8815_s0 + $0xa0] sm:$0xff]  }
 0x199   :  { %v5361_v2 = vpop.permute.xlu1 %5360  ;;  %v5356_v15 = vpop.permute.xlu0 %5355  ;;  %v2269_v0 = vmax.f32 %v2013_v30, %v5348_v29  ;;  %v1758_v46 = vmax.f32 %v1502_v44, %v5147_v43  ;;  %v1759_v63 = vmax.f32 %v1503_v45, %v5148_v34  ;;  %v4852_v58 = vunpack.i.l.bf16 %v9304_v56  ;;  %4509 = vmatprep.mubr.msk.bf16.mxu0 %vm272_vm1, %v5999_v4  ;;  %v9314_v4 = vld [vmem:[#allocation127_spill] sm:$0xff] }
 0x19a   :  { %v5363_v25 = vunpack.i.h.bf16 %v5361_v2  ;;  %v5362_v17 = vunpack.i.l.bf16 %v5361_v2  ;;  %4541 = vmatprep.mubr.msk.f32.mxu1 %vm2839_vm3, %v2778_v48  ;;  %v5358_v35 = vunpack.i.h.bf16 %v5356_v15  ;;  %v5357_v31 = vunpack.i.l.bf16 %v5356_v15 }
 0x19b   :  { %4542 = vmatmul.mubr.msk.f32.gmra.mrb[4].mxu1 %vm2839_vm3, %v2779_v36  ;;  %v4848_v26 = vunpack.i.h.bf16 %v9307_v14  ;;  %v4847_v52 = vunpack.i.l.bf16 %v9307_v14  ;;  %v1504_v57 = vmax.f32 %v7479_v10, %v4992_v16  ;;  %v5153_v2 = vunpack.i.h.bf16 %v9308_v42 }
 0x19c   :  { %v2524_v62 = vmax.f32 %v2268_v47, %v5362_v17  ;;  %v2525_v6 = vmax.f32 %v2269_v0, %v5363_v25  ;;  %5660 = vrot.lane.b32.xlu1 %v6370_v33, %s6030_s3  ;;  %5655 = vrot.lane.b32.xlu0 %v9306_v5, %s6029_s20  ;;  %v2014_v48 = vmax.f32 %v1758_v46, %v5357_v31  ;;  %v5152_v15 = vunpack.i.l.bf16 %v9308_v42  ;;  %v9309_v0 = vld [vmem:[#allocation89_spill] sm:$0xff] }
 0x19d   :  { %v5371_v9 = vpop.permute.xlu1 %5370  ;;  %v5366_v18 = vpop.permute.xlu0 %5365  ;;  %v2015_v36 = vmax.f32 %v1759_v63, %v5358_v35  ;;  %v1505_v10 = vmax.f32 %v7476_v12, %v4993_v24  ;;  %v4997_v45 = vunpack.i.l.bf16 %v9309_v0  ;;  %v7612_v24 = vmax.f32 %v7189_v7, %v4852_v58 }
 0x19e   :  { %v5373_v60 = vunpack.i.h.bf16 %v5371_v9  ;;  %v5372_v40 = vunpack.i.l.bf16 %v5371_v9  ;;  %v5368_v11 = vunpack.i.h.bf16 %v5366_v18  ;;  %v5367_v59 = vunpack.i.l.bf16 %v5366_v18  ;;  %v9310_v9 = vld [vmem:[#allocation19_spill] sm:$0xff] }
 0x19f   :  { %v1760_v35 = vmax.f32 %v1504_v57, %v5152_v15  ;;  %v1761_v31 = vmax.f32 %v1505_v10, %v5153_v2  ;;  %v7615_v46 = vmax.f32 %v7201_v28, %v4847_v52  ;;  %v4998_v63 = vunpack.i.h.bf16 %v9309_v0  ;;  %v9312_v28 = vld [vmem:[#allocation88_spill] sm:$0xff] }
 0x1a0   :  { %v2780_v49 = vmax.f32 %v2524_v62, %v5372_v40  ;;  %v2781_v20 = vmax.f32 %v2525_v6, %v5373_v60  ;;  %5670 = vrot.lane.b32.xlu1 %v6370_v33, %s6031_s21  ;;  %5665 = vrot.lane.b32.xlu0 %v9306_v5, %s6028_s19  ;;  %v2270_v30 = vmax.f32 %v2014_v48, %v5367_v59  ;;  %v6000_v33 = vld [vmem:[%s8815_s0 + $0xa8] sm:$0xff]  }
 0x1a1   :  { %v5381_v61 = vpop.permute.xlu1 %5380  ;;  %v5376_v1 = vpop.permute.xlu0 %5375  ;;  %v2271_v55 = vmax.f32 %v2015_v36, %v5368_v11  ;;  %v7609_v40 = vmax.f32 %v7185_v54, %v4853_v8  ;;  %4510 = vmatmul.mubr.msk.bf16.gmra.mrb[40].mxu0 %vm272_vm1, %v6000_v33  ;;  %v9311_v54 = vld [vmem:[#allocation116_spill] sm:$0xff]  ;;  %v5002_v8 = vunpack.i.l.bf16 %v9312_v28  ;;  %v1506_v58 = vmax.f32 %v7555_v27, %v4997_v45  ;;  %v9313_v27 = vld [vmem:[#allocation18_spill] sm:$0xff] }
 0x1a2   :  { %v5383_v29 = vunpack.i.h.bf16 %v5381_v61  ;;  %v5382_v53 = vunpack.i.l.bf16 %v5381_v61  ;;  %4544 = vmatprep.mubr.msk.f32.mxu1 %vm2839_vm3, %v2780_v49  ;;  %v5378_v25 = vunpack.i.h.bf16 %v5376_v1  ;;  %v5377_v17 = vunpack.i.l.bf16 %v5376_v1 }
 0x1a3   :  { %4545 = vmatmul.mubr.msk.f32.gmra.mrb[6].mxu1 %vm2839_vm3, %v2781_v20  ;;  %v5158_v56 = vunpack.i.h.bf16 %v9311_v54  ;;  %v5157_v7 = vunpack.i.l.bf16 %v9311_v54  ;;  %v1507_v48 = vmax.f32 %v7560_v51, %v4998_v63  ;;  %v1255_v33 = vmax.f32 %v9314_v4, %v4848_v26 }
 0x1a4   :  { %v2526_v16 = vmax.f32 %v2270_v30, %v5382_v53  ;;  %v2527_v44 = vmax.f32 %v2271_v55, %v5383_v29  ;;  %5680 = vrot.lane.b32.xlu1 %v9306_v5, %s6030_s3  ;;  %5675 = vrot.lane.b32.xlu0 %v9310_v9, %s6029_s20  ;;  %v2017_v11 = vmax.f32 %v1761_v31, %v5378_v25  ;;  %v5003_v30 = vunpack.i.h.bf16 %v9312_v28 }
 0x1a5   :  { %v5391_v34 = vpop.permute.xlu1 %5390  ;;  %v5386_v43 = vpop.permute.xlu0 %5385  ;;  %v2016_v59 = vmax.f32 %v1760_v35, %v5377_v17  ;;  %v1762_v55 = vmax.f32 %v1506_v58, %v5157_v7  ;;  %v1763_v25 = vmax.f32 %v1507_v48, %v5158_v56  ;;  %v9317_v7 = vld [vmem:[#allocation91_spill] sm:$0xff] }
 0x1a6   :  { %v5393_v47 = vunpack.i.h.bf16 %v5391_v34  ;;  %v5392_v12 = vunpack.i.l.bf16 %v5391_v34  ;;  %v5388_v6 = vunpack.i.h.bf16 %v5386_v43  ;;  %v5387_v60 = vunpack.i.l.bf16 %v5386_v43 }
 0x1a7   :  { %v5007_v28 = vunpack.i.l.bf16 %v9317_v7 }
 0x1a8   :  { %v2782_v18 = vmax.f32 %v2526_v16, %v5392_v12  ;;  %v2783_v62 = vmax.f32 %v2527_v44, %v5393_v47  ;;  %5690 = vrot.lane.b32.xlu1 %v9306_v5, %s6031_s21  ;;  %5685 = vrot.lane.b32.xlu0 %v9310_v9, %s6028_s19  ;;  %v2272_v52 = vmax.f32 %v2016_v59, %v5387_v60  ;;  %v9315_v16 = vld [vmem:[#allocation65_spill] sm:$0xff] }
 0x1a9   :  { %v5401_v49 = vpop.permute.xlu1 %5400  ;;  %v5396_v20 = vpop.permute.xlu0 %5395  ;;  %v2273_v1 = vmax.f32 %v2017_v11, %v5388_v6  ;;  %v4863_v44 = vunpack.i.h.bf16 %v9315_v16  ;;  %v4862_v47 = vunpack.i.l.bf16 %v9315_v16  ;;  %v1508_v12 = vmax.f32 %v7529_v3, %v5002_v8  ;;  %v9316_v6 = vld [vmem:[#allocation115_spill] sm:$0xff] }
 0x1aa   :  { %v5403_v57 = vunpack.i.h.bf16 %v5401_v49  ;;  %v5402_v61 = vunpack.i.l.bf16 %v5401_v49  ;;  %4547 = vmatprep.mubr.msk.f32.mxu1 %vm2839_vm3, %v2782_v18  ;;  %v5398_v36 = vunpack.i.h.bf16 %v5396_v20  ;;  %v5397_v29 = vunpack.i.l.bf16 %v5396_v20 }
 0x1ab   :  { %4548 = vmatmul.mubr.msk.f32.gmra.mrb[8].mxu1 %vm2839_vm3, %v2783_v62  ;;  %v5163_v60 = vunpack.i.h.bf16 %v9316_v6  ;;  %v5162_v14 = vunpack.i.l.bf16 %v9316_v6  ;;  %v1509_v3 = vmax.f32 %v7526_v19, %v5003_v30 }
 0x1ac   :  { %v2528_v2 = vmax.f32 %v2272_v52, %v5402_v61  ;;  %v2529_v15 = vmax.f32 %v2273_v1, %v5403_v57  ;;  %5700 = vrot.lane.b32.xlu1 %v9310_v9, %s6030_s3  ;;  %5695 = vrot.lane.b32.xlu0 %v9313_v27, %s6029_s20  ;;  %v2018_v35 = vmax.f32 %v1762_v55, %v5397_v29  ;;  %v6001_v57 = vld [vmem:[%s8815_s0 + $0xb0] sm:$0xff]  }
 0x1ad   :  { %v5411_v53 = vpop.permute.xlu1 %5410  ;;  %v5406_v42 = vpop.permute.xlu0 %5405  ;;  %v2019_v31 = vmax.f32 %v1763_v25, %v5398_v36  ;;  %v1764_v8 = vmax.f32 %v1508_v12, %v5162_v14  ;;  %v1765_v58 = vmax.f32 %v1509_v3, %v5163_v60  ;;  %v9318_v52 = vld [vmem:[#allocation23_spill] sm:$0xff]  ;;  %4513 = vmatprep.mubr.msk.bf16.mxu0 %vm272_vm1, %v6001_v57 }
 0x1ae   :  { %v5413_v5 = vunpack.i.h.bf16 %v5411_v53  ;;  %v5412_v10 = vunpack.i.l.bf16 %v5411_v53  ;;  %v5408_v34 = vunpack.i.h.bf16 %v5406_v42  ;;  %v5407_v43 = vunpack.i.l.bf16 %v5406_v42  ;;  %v9319_v53 = vld [vmem:[#allocation130_spill] sm:$0xff] }
 0x1af   :  { %v7663_v42 = vmax.f32 %v9319_v53, %v4863_v44  ;;  %v9322_v44 = vld [vmem:[#allocation131_spill] sm:$0xff]  ;;  %v6004_v53 = vld [vmem:[%s8815_s0 + $0xc8] sm:$0xff]  }
 0x1b0   :  { %v2784_v17 = vmax.f32 %v2528_v2, %v5412_v10  ;;  %v2785_v51 = vmax.f32 %v2529_v15, %v5413_v5  ;;  %5710 = vrot.lane.b32.xlu1 %v9310_v9, %s6031_s21  ;;  %5705 = vrot.lane.b32.xlu0 %v9313_v27, %s6028_s19  ;;  %v2274_v26 = vmax.f32 %v2018_v35, %v5407_v43  ;;  %v6002_v9 = vld [vmem:[%s8815_s0 + $0xb8] sm:$0xff]   ;;  %v9320_v2 = vld [vmem:[#allocation66_spill] sm:$0xff]  ;;  %v5008_v10 = vunpack.i.h.bf16 %v9317_v7 }
 0x1b1   :  { %v5421_v0 = vpop.permute.xlu1 %5420  ;;  %v5416_v45 = vpop.permute.xlu0 %5415  ;;  %v2275_v63 = vmax.f32 %v2019_v31, %v5408_v34  ;;  %v4858_v15 = vunpack.i.h.bf16 %v9320_v2  ;;  %v4857_v5 = vunpack.i.l.bf16 %v9320_v2  ;;  %4514 = vmatmul.mubr.msk.bf16.gmra.mrb[44].mxu0 %vm272_vm1, %v6002_v9  ;;  %v9321_v43 = vld [vmem:[#allocation118_spill] sm:$0xff]  ;;  %v7677_v12 = vmax.f32 %v9322_v44, %v4862_v47  ;;  %v9327_v2 = vld [vmem:[#allocation132_spill] sm:$0xff] }
 0x1b2   :  { %v5423_v18 = vunpack.i.h.bf16 %v5421_v0  ;;  %v5422_v62 = vunpack.i.l.bf16 %v5421_v0  ;;  %4550 = vmatprep.mubr.msk.f32.mxu1 %vm2839_vm3, %v2784_v17  ;;  %v5418_v49 = vunpack.i.h.bf16 %v5416_v45  ;;  %v5417_v20 = vunpack.i.l.bf16 %v5416_v45  ;;  %v9325_v9 = vld [vmem:[#allocation134_spill] sm:$0xff] }
 0x1b3   :  { %4551 = vmatmul.mubr.msk.f32.gmra.mrb[10].mxu1 %vm2839_vm3, %v2785_v51  ;;  %v5168_v4 = vunpack.i.h.bf16 %v9321_v43  ;;  %v5167_v16 = vunpack.i.l.bf16 %v9321_v43  ;;  %v1510_v0 = vmax.f32 %v7615_v46, %v5007_v28  ;;  %v1511_v31 = vmax.f32 %v1255_v33, %v5008_v10  ;;  %v9324_v46 = vld [vmem:[#allocation22_spill] sm:$0xff] }
 0x1b4   :  { %v2530_v61 = vmax.f32 %v2274_v26, %v5422_v62  ;;  %v2531_v54 = vmax.f32 %v2275_v63, %v5423_v18  ;;  %5720 = vrot.lane.b32.xlu1 %v9313_v27, %s6030_s3  ;;  %5715 = vrot.lane.b32.xlu0 %v9318_v52, %s6029_s20  ;;  %v2021_v25 = vmax.f32 %v1765_v58, %v5418_v49  ;;  %v9323_v63 = vld [vmem:[#allocation90_spill] sm:$0xff] }
 0x1b5   :  { %v5431_v11 = vpop.permute.xlu1 %5430  ;;  %v5426_v59 = vpop.permute.xlu0 %5425  ;;  %v2020_v17 = vmax.f32 %v1764_v8, %v5417_v20  ;;  %v5012_v49 = vunpack.i.l.bf16 %v9323_v63  ;;  %v1766_v20 = vmax.f32 %v1510_v0, %v5167_v16  ;;  %v1767_v47 = vmax.f32 %v1511_v31, %v5168_v4 }
 0x1b6   :  { %v5433_v56 = vunpack.i.h.bf16 %v5431_v11  ;;  %v5432_v19 = vunpack.i.l.bf16 %v5431_v11  ;;  %v5428_v36 = vunpack.i.h.bf16 %v5426_v59  ;;  %v5427_v29 = vunpack.i.l.bf16 %v5426_v59 }
 0x1b7   :  { %v1512_v10 = vmax.f32 %v7612_v24, %v5012_v49 }
 0x1b8   :  { %v2786_v1 = vmax.f32 %v2530_v61, %v5432_v19  ;;  %v2787_v48 = vmax.f32 %v2531_v54, %v5433_v56  ;;  %5730 = vrot.lane.b32.xlu1 %v9313_v27, %s6031_s21  ;;  %5725 = vrot.lane.b32.xlu0 %v9318_v52, %s6028_s19  ;;  %v2276_v45 = vmax.f32 %v2020_v17, %v5427_v29  ;;  %v5013_v54 = vunpack.i.h.bf16 %v9323_v63  ;;  %v6003_v29 = vld [vmem:[%s8815_s0 + $0xc0] sm:$0xff]  }
 0x1b9   :  { %v5441_v30 = vpop.permute.xlu1 %5440  ;;  %v5436_v55 = vpop.permute.xlu0 %5435  ;;  %v2277_v35 = vmax.f32 %v2021_v25, %v5428_v36  ;;  %v1258_v61 = vmax.f32 %v9325_v9, %v4857_v5  ;;  %v1259_v5 = vmax.f32 %v9327_v2, %v4858_v15  ;;  %4517 = vmatprep.mubr.msk.bf16.mxu0 %vm272_vm1, %v6003_v29  ;;  %v9328_v15 = vld [vmem:[#allocation93_spill] sm:$0xff] }
 0x1ba   :  { %v5443_v51 = vunpack.i.h.bf16 %v5441_v30  ;;  %v5442_v34 = vunpack.i.l.bf16 %v5441_v30  ;;  %4553 = vmatprep.mubr.msk.f32.mxu1 %vm2839_vm3, %v2786_v1  ;;  %v5438_v18 = vunpack.i.h.bf16 %v5436_v55  ;;  %v5437_v62 = vunpack.i.l.bf16 %v5436_v55  ;;  %v9326_v1 = vld [vmem:[#allocation117_spill] sm:$0xff]  ;;  %4518 = vmatmul.mubr.msk.bf16.gmra.mrb[48].mxu0 %vm272_vm1, %v6004_v53 }
 0x1bb   :  { %4554 = vmatmul.mubr.msk.f32.gmra.mrb[12].mxu1 %vm2839_vm3, %v2787_v48  ;;  %v5173_v48 = vunpack.i.h.bf16 %v9326_v1  ;;  %v5172_v36 = vunpack.i.l.bf16 %v9326_v1  ;;  %v5017_v24 = vunpack.i.l.bf16 %v9328_v15 }
 0x1bc   :  { %v2532_v14 = vmax.f32 %v2276_v45, %v5442_v34  ;;  %v2533_v3 = vmax.f32 %v2277_v35, %v5443_v51  ;;  %5740 = vrot.lane.b32.xlu1 %v9318_v52, %s6030_s3  ;;  %5735 = vrot.lane.b32.xlu0 %v9324_v46, %s6029_s20  ;;  %v2022_v7 = vmax.f32 %v1766_v20, %v5437_v62 }
 0x1bd   :  { %v5451_v6 = vpop.permute.xlu1 %5450  ;;  %v5446_v60 = vpop.permute.xlu0 %5445  ;;  %v2023_v28 = vmax.f32 %v1767_v47, %v5438_v18  ;;  %v1768_v0 = vmax.f32 %v1512_v10, %v5172_v36 }
 0x1be   :  { %v5453_v27 = vunpack.i.h.bf16 %v5451_v6  ;;  %v5452_v26 = vunpack.i.l.bf16 %v5451_v6  ;;  %v5448_v59 = vunpack.i.h.bf16 %v5446_v60  ;;  %v5447_v57 = vunpack.i.l.bf16 %v5446_v60  ;;  %v9330_v6 = vld [vmem:[#allocation67_spill] sm:$0xff] }
 0x1bf   :  { %v4873_v60 = vunpack.i.h.bf16 %v9330_v6 }
 0x1c0   :  { %v2788_v11 = vmax.f32 %v2532_v14, %v5452_v26  ;;  %v2789_v33 = vmax.f32 %v2533_v3, %v5453_v27  ;;  %5750 = vrot.lane.b32.xlu1 %v9318_v52, %s6031_s21  ;;  %5745 = vrot.lane.b32.xlu0 %v9324_v46, %s6028_s19  ;;  %v2278_v30 = vmax.f32 %v2022_v7, %v5447_v57  ;;  %v4872_v14 = vunpack.i.l.bf16 %v9330_v6  ;;  %v9331_v3 = vld [vmem:[#allocation92_spill] sm:$0xff] }
 0x1c1   :  { %v5461_v56 = vpop.permute.xlu1 %5460  ;;  %v5456_v19 = vpop.permute.xlu0 %5455  ;;  %v2279_v55 = vmax.f32 %v2023_v28, %v5448_v59  ;;  %v1513_v52 = vmax.f32 %v7609_v40, %v5013_v54  ;;  %v9329_v40 = vld [vmem:[#allocation27_spill] sm:$0xff]  ;;  %v5023_v27 = vunpack.i.h.bf16 %v9331_v3  ;;  %v5018_v26 = vunpack.i.h.bf16 %v9328_v15  ;;  %v9332_v59 = vld [vmem:[#allocation120_spill] sm:$0xff] }
 0x1c2   :  { %v5463_v8 = vunpack.i.h.bf16 %v5461_v56  ;;  %v5462_v58 = vunpack.i.l.bf16 %v5461_v56  ;;  %4556 = vmatprep.mubr.msk.f32.mxu1 %vm2839_vm3, %v2788_v11  ;;  %v5458_v25 = vunpack.i.h.bf16 %v5456_v19  ;;  %v5457_v17 = vunpack.i.l.bf16 %v5456_v19 }
 0x1c3   :  { %4557 = vmatmul.mubr.msk.f32.gmra.mrb[14].mxu1 %vm2839_vm3, %v2789_v33  ;;  %v1769_v45 = vmax.f32 %v1513_v52, %v5173_v48  ;;  %v5178_v57 = vunpack.i.h.bf16 %v9332_v59  ;;  %v5177_v9 = vunpack.i.l.bf16 %v9332_v59  ;;  %v5022_v54 = vunpack.i.l.bf16 %v9331_v3 }
 0x1c4   :  { %v2534_v43 = vmax.f32 %v2278_v30, %v5462_v58  ;;  %v2535_v4 = vmax.f32 %v2279_v55, %v5463_v8  ;;  %5760 = vrot.lane.b32.xlu1 %v9324_v46, %s6030_s3  ;;  %5755 = vrot.lane.b32.xlu0 %v9329_v40, %s6029_s20  ;;  %v2024_v47 = vmax.f32 %v1768_v0, %v5457_v17  ;;  %v9334_v17 = vld [vmem:[#allocation39_spill] sm:$0xff] }
 0x1c5   :  { %v5471_v51 = vpop.permute.xlu1 %5470  ;;  %v5466_v34 = vpop.permute.xlu0 %5465  ;;  %v2025_v20 = vmax.f32 %v1769_v45, %v5458_v25  ;;  %v1514_v56 = vmax.f32 %v1258_v61, %v5017_v24  ;;  %v1515_v28 = vmax.f32 %v1259_v5, %v5018_v26 }
 0x1c6   :  { %v5473_v16 = vunpack.i.h.bf16 %v5471_v51  ;;  %v5472_v44 = vunpack.i.l.bf16 %v5471_v51  ;;  %v5468_v18 = vunpack.i.h.bf16 %v5466_v34  ;;  %v5467_v62 = vunpack.i.l.bf16 %v5466_v34  ;;  %v9335_v34 = vld [vmem:[#allocation68_spill] sm:$0xff] }
 0x1c7   :  { %v1770_v30 = vmax.f32 %v1514_v56, %v5177_v9  ;;  %v1771_v55 = vmax.f32 %v1515_v28, %v5178_v57  ;;  %v7731_v51 = vmax.f32 %v9334_v17, %v4873_v60  ;;  %v9338_v57 = vld [vmem:[#allocation31_spill] sm:$0xff]  ;;  %v9339_v28 = vld [vmem:[#allocation5_spill] sm:$0xff] }
 0x1c8   :  { %v2790_v35 = vmax.f32 %v2534_v43, %v5472_v44  ;;  %v2791_v31 = vmax.f32 %v2535_v4, %v5473_v16  ;;  %5770 = vrot.lane.b32.xlu1 %v9324_v46, %s6031_s21  ;;  %5765 = vrot.lane.b32.xlu0 %v9329_v40, %s6028_s19  ;;  %v2280_v19 = vmax.f32 %v2024_v47, %v5467_v62  ;;  %v9333_v46 = vld [vmem:[#allocation119_spill] sm:$0xff]  ;;  %v4868_v43 = vunpack.i.h.bf16 %v9335_v34 }
 0x1c9   :  { %v5481_v63 = vpop.permute.xlu1 %5480  ;;  %v5476_v49 = vpop.permute.xlu0 %5475  ;;  %v2281_v7 = vmax.f32 %v2025_v20, %v5468_v18  ;;  %v5182_v10 = vunpack.i.l.bf16 %v9333_v46  ;;  %v4867_v4 = vunpack.i.l.bf16 %v9335_v34  ;;  %v1516_v16 = vmax.f32 %v7677_v12, %v5022_v54  ;;  %v9336_v18 = vld [vmem:[#allocation26_spill] sm:$0xff] }
 0x1ca   :  { %v5483_v11 = vunpack.i.h.bf16 %v5481_v63  ;;  %v5482_v33 = vunpack.i.l.bf16 %v5481_v63  ;;  %4559 = vmatprep.mubr.msk.f32.mxu1 %vm2839_vm3, %v2790_v35  ;;  %v5478_v8 = vunpack.i.h.bf16 %v5476_v49  ;;  %v5477_v58 = vunpack.i.l.bf16 %v5476_v49  ;;  %v6006_v49 = vld [vmem:[%s8815_s0 + $0xd8] sm:$0xff]  }
 0x1cb   :  { %4560 = vmatmul.mubr.msk.f32.gmra.mrb[16].mxu1 %vm2839_vm3, %v2791_v31  ;;  %v5183_v31 = vunpack.i.h.bf16 %v9333_v46  ;;  %v1517_v12 = vmax.f32 %v7663_v42, %v5023_v27  ;;  %v1772_v62 = vmax.f32 %v1516_v16, %v5182_v10 }
 0x1cc   :  { %v2536_v36 = vmax.f32 %v2280_v19, %v5482_v33  ;;  %v2537_v29 = vmax.f32 %v2281_v7, %v5483_v11  ;;  %5780 = vrot.lane.b32.xlu1 %v9329_v40, %s6031_s21  ;;  %5775 = vrot.lane.b32.xlu0 %v9329_v40, %s6030_s3  ;;  %v2026_v24 = vmax.f32 %v1770_v30, %v5477_v58  ;;  %v9337_v11 = vld [vmem:[#allocation95_spill] sm:$0xff] }
 0x1cd   :  { %v5491_v1 = vpop.permute.xlu1 %5490  ;;  %v5486_v48 = vpop.permute.xlu0 %5485  ;;  %v2027_v0 = vmax.f32 %v1771_v55, %v5478_v8  ;;  %v7738_v40 = vmax.f32 %v7255_v37, %v4872_v14  ;;  %v6005_v14 = vld [vmem:[%s8815_s0 + $0xd0] sm:$0xff]   ;;  %v5027_v33 = vunpack.i.l.bf16 %v9337_v11  ;;  %v1773_v59 = vmax.f32 %v1517_v12, %v5183_v31 }
 0x1ce   :  { %v5493_v53 = vunpack.i.h.bf16 %v5491_v1  ;;  %v5492_v2 = vunpack.i.l.bf16 %v5491_v1  ;;  %v5488_v52 = vunpack.i.h.bf16 %v5486_v48  ;;  %v5487_v25 = vunpack.i.l.bf16 %v5486_v48  ;;  %4521 = vmatprep.mubr.msk.bf16.mxu0 %vm272_vm1, %v6005_v14  ;;  %v9340_v1 = vld [vmem:[#allocation122_spill] sm:$0xff]  ;;  %v7773_v34 = vpop.f32.mrb[0].mxu0 }
 0x1cf   :  { %v1262_v7 = vmax.f32 %v7266_v23, %v4867_v4  ;;  %v1263_v8 = vmax.f32 %v9339_v28, %v4868_v43  ;;  %v5028_v58 = vunpack.i.h.bf16 %v9337_v11  ;;  %v5187_v48 = vunpack.i.l.bf16 %v9340_v1  ;;  %4522 = vmatmul.mubr.msk.bf16.gmra.mrb[52].mxu0 %vm272_vm1, %v6006_v49  ;;  %v9341_v23 = vld [vmem:[#allocation69_spill] sm:$0xff] }
 0x1d0   :  { %v2792_v61 = vmax.f32 %v2536_v36, %v5492_v2  ;;  %v2793_v5 = vmax.f32 %v2537_v29, %v5493_v53  ;;  %5790 = vrot.lane.b32.xlu1 %v9336_v18, %s6028_s19  ;;  %5785 = vrot.lane.b32.xlu0 %v9336_v18, %s6029_s20  ;;  %v2282_v6 = vmax.f32 %v2026_v24, %v5487_v25  ;;  %v5188_v55 = vunpack.i.h.bf16 %v9340_v1 }
 0x1d1   :  { %v5501_v44 = vpop.permute.xlu1 %5500  ;;  %v5496_v15 = vpop.permute.xlu0 %5495  ;;  %v2283_v60 = vmax.f32 %v2027_v0, %v5488_v52  ;;  %v1518_v30 = vmax.f32 %v1262_v7, %v5027_v33  ;;  %v1519_v43 = vmax.f32 %v1263_v8, %v5028_v58  ;;  %v4882_v49 = vunpack.i.l.bf16 %v9341_v23  ;;  %v9346_v58 = vld [vmem:[#allocation97_spill] sm:$0xff] }
 0x1d2   :  { %v5503_v45 = vunpack.i.h.bf16 %v5501_v44  ;;  %v5502_v35 = vunpack.i.l.bf16 %v5501_v44  ;;  %4562 = vmatprep.mubr.msk.f32.mxu1 %vm2839_vm3, %v2792_v61  ;;  %v5498_v3 = vunpack.i.h.bf16 %v5496_v15  ;;  %v5497_v26 = vunpack.i.l.bf16 %v5496_v15 }
 0x1d3   :  { %4563 = vmatmul.mubr.msk.f32.gmra.mrb[18].mxu1 %vm2839_vm3, %v2793_v5  ;;  %v4883_v61 = vunpack.i.h.bf16 %v9341_v23  ;;  %v9342_v5 = vld [vmem:[#allocation94_spill] sm:$0xff]  ;;  %v1774_v4 = vmax.f32 %v1518_v30, %v5187_v48  ;;  %v5037_v1 = vunpack.i.l.bf16 %v9346_v58 }
 0x1d4   :  { %v2538_v20 = vmax.f32 %v2282_v6, %v5502_v35  ;;  %v2539_v47 = vmax.f32 %v2283_v60, %v5503_v45  ;;  %5800 = vrot.lane.b32.xlu1 %v9336_v18, %s6030_s3  ;;  %5795 = vrot.lane.b32.xlu0 %v9338_v57, %s6029_s20  ;;  %v2029_v53 = vmax.f32 %v1773_v59, %v5498_v3  ;;  %v5033_v52 = vunpack.i.h.bf16 %v9342_v5  ;;  %v9343_v6 = vld [vmem:[#allocation30_spill] sm:$0xff] }
 0x1d5   :  { %v5511_v63 = vpop.permute.xlu1 %5510  ;;  %v5506_v37 = vpop.permute.xlu0 %5505  ;;  %v2028_v2 = vmax.f32 %v1772_v62, %v5497_v26  ;;  %v5032_v12 = vunpack.i.l.bf16 %v9342_v5  ;;  %v1775_v62 = vmax.f32 %v1519_v43, %v5188_v55 }
 0x1d6   :  { %v5513_v42 = vunpack.i.h.bf16 %v5511_v63  ;;  %v5512_v27 = vunpack.i.l.bf16 %v5511_v63  ;;  %v5508_v56 = vunpack.i.h.bf16 %v5506_v37  ;;  %v5507_v19 = vunpack.i.l.bf16 %v5506_v37 }
 0x1d7   :  { %v1520_v7 = vmax.f32 %v7738_v40, %v5032_v12  ;;  %v1521_v8 = vmax.f32 %v7731_v51, %v5033_v52  ;;  %v9347_v52 = vld [vmem:[#allocation35_spill] sm:$0xff] }
 0x1d8   :  { %v2794_v9 = vmax.f32 %v2538_v20, %v5512_v27  ;;  %v2795_v54 = vmax.f32 %v2539_v47, %v5513_v42  ;;  %5810 = vrot.lane.b32.xlu1 %v9336_v18, %s6031_s21  ;;  %5805 = vrot.lane.b32.xlu0 %v9338_v57, %s6028_s19  ;;  %v2284_v25 = vmax.f32 %v2028_v2, %v5507_v19  ;;  %v7775_v18 = vpop.f32.mrb[1].mxu0  ;;  %v9344_v20 = vld [vmem:[#allocation70_spill] sm:$0xff]  ;;  %v9345_v27 = vld [vmem:[#allocation121_spill] sm:$0xff] }
 0x1d9   :  { %v5521_v36 = vpop.permute.xlu1 %5520  ;;  %v5516_v29 = vpop.permute.xlu0 %5515  ;;  %v2285_v17 = vmax.f32 %v2029_v53, %v5508_v56  ;;  %v4878_v47 = vunpack.i.h.bf16 %v9344_v20  ;;  %v4877_v42 = vunpack.i.l.bf16 %v9344_v20  ;;  %v5192_v11 = vunpack.i.l.bf16 %v9345_v27 }
 0x1da   :  { %v5523_v46 = vunpack.i.h.bf16 %v5521_v36  ;;  %v5522_v10 = vunpack.i.l.bf16 %v5521_v36  ;;  %4565 = vmatprep.mubr.msk.f32.mxu1 %vm2839_vm3, %v2794_v9  ;;  %v5518_v16 = vunpack.i.h.bf16 %v5516_v29  ;;  %v5517_v44 = vunpack.i.l.bf16 %v5516_v29  ;;  %v7782_v60 = vpop.f32.mrb[2].mxu0 }
 0x1db   :  { %4566 = vmatmul.mubr.msk.f32.gmra.mrb[20].mxu1 %vm2839_vm3, %v2795_v54  ;;  %v7784_v14 = vpop.f32.mrb[3].mxu0  ;;  %v5193_v28 = vunpack.i.h.bf16 %v9345_v27  ;;  %v1776_v29 = vmax.f32 %v1520_v7, %v5192_v11 }
 0x1dc   :  { %v2540_v0 = vmax.f32 %v2284_v25, %v5522_v10  ;;  %v2541_v45 = vmax.f32 %v2285_v17, %v5523_v46  ;;  %5820 = vrot.lane.b32.xlu1 %v9338_v57, %s6030_s3  ;;  %5815 = vrot.lane.b32.xlu0 %v9343_v6, %s6029_s20  ;;  %v2030_v9 = vmax.f32 %v1774_v4, %v5517_v44  ;;  %v6008_v25 = vld [vmem:[%s8815_s0 + $0xe8] sm:$0xff]  }
 0x1dd   :  { %v5531_v15 = vpop.permute.xlu1 %5530  ;;  %v5526_v24 = vpop.permute.xlu0 %5525  ;;  %v2031_v54 = vmax.f32 %v1775_v62, %v5518_v16  ;;  %v1777_v51 = vmax.f32 %v1521_v8, %v5193_v28  ;;  %v1266_v44 = vmax.f32 %v7287_v21, %v4877_v42  ;;  %v9350_v21 = vld [vmem:[#allocation40_spill] sm:$0xff] }
 0x1de   :  { %v5533_v35 = vunpack.i.h.bf16 %v5531_v15  ;;  %v5532_v31 = vunpack.i.l.bf16 %v5531_v15  ;;  %v5528_v63 = vunpack.i.h.bf16 %v5526_v24  ;;  %v5527_v37 = vunpack.i.l.bf16 %v5526_v24  ;;  %v9348_v15 = vld [vmem:[#allocation41_spill] sm:$0xff]  ;;  %v9351_v42 = vld [vmem:[#allocation96_spill] sm:$0xff] }
 0x1df   :  { %v1267_v24 = vmax.f32 %v9348_v15, %v4878_v47  ;;  %v1269_v47 = vmax.f32 %v9350_v21, %v4883_v61  ;;  %v5043_v27 = vunpack.i.h.bf16 %v9351_v42  ;;  %v5042_v61 = vunpack.i.l.bf16 %v9351_v42  ;;  %v6009_v21 = vld [vmem:[%s8815_s0 + $0xf0] sm:$0xff]  }
 0x1e0   :  { %v2796_v3 = vmax.f32 %v2540_v0, %v5532_v31  ;;  %v2797_v26 = vmax.f32 %v2541_v45, %v5533_v35  ;;  %5830 = vrot.lane.b32.xlu1 %v9338_v57, %s6031_s21  ;;  %5825 = vrot.lane.b32.xlu0 %v9343_v6, %s6028_s19  ;;  %v2286_v48 = vmax.f32 %v2030_v9, %v5527_v37  ;;  %v6007_v57 = vld [vmem:[%s8815_s0 + $0xe0] sm:$0xff]   ;;  %v5038_v0 = vunpack.i.h.bf16 %v9346_v58  ;;  %v9349_v45 = vld [vmem:[#allocation124_spill] sm:$0xff] }
 0x1e1   :  { %v5541_v33 = vpop.permute.xlu1 %5540  ;;  %v5536_v59 = vpop.permute.xlu0 %5535  ;;  %v2287_v36 = vmax.f32 %v2031_v54, %v5528_v63  ;;  %4525 = vmatprep.mubr.msk.bf16.mxu0 %vm272_vm1, %v6007_v57  ;;  %v5197_v35 = vunpack.i.l.bf16 %v9349_v45  ;;  %v1522_v37 = vmax.f32 %v1266_v44, %v5037_v1  ;;  %v5198_v20 = vunpack.i.h.bf16 %v9349_v45 }
 0x1e2   :  { %v5543_v56 = vunpack.i.h.bf16 %v5541_v33  ;;  %v5542_v19 = vunpack.i.l.bf16 %v5541_v33  ;;  %4568 = vmatprep.mubr.msk.f32.mxu1 %vm2839_vm3, %v2796_v3  ;;  %v5538_v53 = vunpack.i.h.bf16 %v5536_v59  ;;  %v5537_v2 = vunpack.i.l.bf16 %v5536_v59  ;;  %4526 = vmatmul.mubr.msk.bf16.gmra.mrb[56].mxu0 %vm272_vm1, %v6008_v25  ;;  %v7827_v59 = vpop.f32.mrb[4].mxu0 }
 0x1e3   :  { %4569 = vmatmul.mubr.msk.f32.gmra.mrb[22].mxu1 %vm2839_vm3, %v2797_v26  ;;  %v1523_v9 = vmax.f32 %v1267_v24, %v5038_v0  ;;  %v1778_v54 = vmax.f32 %v1522_v37, %v5197_v35  ;;  %v1525_v23 = vmax.f32 %v1269_v47, %v5043_v27  ;;  %v9357_v27 = vld [vmem:[#allocation37_spill] sm:$0xff]  ;;  %4529 = vmatprep.mubr.msk.bf16.mxu0 %vm272_vm1, %v6009_v21 }
 0x1e4   :  { %v2542_v10 = vmax.f32 %v2286_v48, %v5542_v19  ;;  %v2543_v30 = vmax.f32 %v2287_v36, %v5543_v56  ;;  %5840 = vrot.lane.b32.xlu1 %v9343_v6, %s6030_s3  ;;  %5835 = vrot.lane.b32.xlu0 %v9347_v52, %s6029_s20  ;;  %v2033_v62 = vmax.f32 %v1777_v51, %v5538_v53  ;;  %v7829_v48 = vpop.f32.mrb[5].mxu0 }
 0x1e5   :  { %v5551_v40 = vpop.permute.xlu1 %5550  ;;  %v5546_v46 = vpop.permute.xlu0 %5545  ;;  %v2032_v3 = vmax.f32 %v1776_v29, %v5537_v2  ;;  %v1779_v36 = vmax.f32 %v1523_v9, %v5198_v20  ;;  %v9352_v29 = vld [vmem:[#allocation34_spill] sm:$0xff]  ;;  %v6010_v9 = vld [vmem:[%s8815_s0 + $0xf8] sm:$0xff]  }
 0x1e6   :  { %v5553_v55 = vunpack.i.h.bf16 %v5551_v40  ;;  %v5552_v5 = vunpack.i.l.bf16 %v5551_v40  ;;  %v5548_v4 = vunpack.i.h.bf16 %v5546_v46  ;;  %v5547_v16 = vunpack.i.l.bf16 %v5546_v46  ;;  %v7836_v53 = vpop.f32.mrb[6].mxu0 }
 0x1e8   :  { %v2798_v17 = vmax.f32 %v2542_v10, %v5552_v5  ;;  %v2799_v43 = vmax.f32 %v2543_v30, %v5553_v55  ;;  %5850 = vrot.lane.b32.xlu1 %v9343_v6, %s6031_s21  ;;  %5845 = vrot.lane.b32.xlu0 %v9347_v52, %s6028_s19  ;;  %v2288_v11 = vmax.f32 %v2032_v3, %v5547_v16  ;;  %v7838_v10 = vpop.f32.mrb[7].mxu0  ;;  %v9353_v30 = vld [vmem:[#allocation6_spill] sm:$0xff]  ;;  %v9354_v5 = vld [vmem:[#allocation72_spill] sm:$0xff] }
 0x1e9   :  { %v5561_v31 = vpop.permute.xlu1 %5560  ;;  %v5556_v12 = vpop.permute.xlu0 %5555  ;;  %v2289_v33 = vmax.f32 %v2033_v62, %v5548_v4  ;;  %v1268_v55 = vmax.f32 %v9353_v30, %v4882_v49  ;;  %v4888_v51 = vunpack.i.h.bf16 %v9354_v5  ;;  %v4887_v25 = vunpack.i.l.bf16 %v9354_v5  ;;  %v9356_v49 = vld [vmem:[#allocation99_spill] sm:$0xff] }
 0x1ea   :  { %v5563_v26 = vunpack.i.h.bf16 %v5561_v31  ;;  %v5562_v63 = vunpack.i.l.bf16 %v5561_v31  ;;  %4571 = vmatprep.mubr.msk.f32.mxu1 %vm2839_vm3, %v2798_v17  ;;  %v5558_v56 = vunpack.i.h.bf16 %v5556_v12  ;;  %v5557_v19 = vunpack.i.l.bf16 %v5556_v12  ;;  %v9355_v17 = vld [vmem:[#allocation123_spill] sm:$0xff]  ;;  %4530 = vmatmul.mubr.msk.bf16.gmra.mrb[60].mxu0 %vm272_vm1, %v6010_v9 }
 0x1eb   :  { %4572 = vmatmul.mubr.msk.f32.gmra.mrb[24].mxu1 %vm2839_vm3, %v2799_v43  ;;  %v5202_v43 = vunpack.i.l.bf16 %v9355_v17  ;;  %v1524_v45 = vmax.f32 %v1268_v55, %v5042_v61  ;;  %v5203_v35 = vunpack.i.h.bf16 %v9355_v17  ;;  %v5047_v31 = vunpack.i.l.bf16 %v9356_v49  ;;  %v9360_v61 = vld [vmem:[#allocation126_spill] sm:$0xff]  ;;  %v9364_v9 = vld [vmem:[#allocation135_spill] sm:$0xff] }
 0x1ec   :  { %v2544_v28 = vmax.f32 %v2288_v11, %v5562_v63  ;;  %v2545_v8 = vmax.f32 %v2289_v33, %v5563_v26  ;;  %5860 = vrot.lane.b32.xlu1 %v9347_v52, %s6030_s3  ;;  %5855 = vrot.lane.b32.xlu0 %v9352_v29, %s6029_s20  ;;  %v2034_v44 = vmax.f32 %v1778_v54, %v5557_v19  ;;  %v5208_v17 = vunpack.i.h.bf16 %v9360_v61 }
 0x1ed   :  { %v5571_v6 = vpop.permute.xlu1 %5570  ;;  %v5566_v7 = vpop.permute.xlu0 %5565  ;;  %v2035_v15 = vmax.f32 %v1779_v36, %v5558_v56  ;;  %v1780_v3 = vmax.f32 %v1524_v45, %v5202_v43  ;;  %v1781_v47 = vmax.f32 %v1525_v23, %v5203_v35  ;;  %v5207_v36 = vunpack.i.l.bf16 %v9360_v61 }
 0x1ee   :  { %v5573_v58 = vunpack.i.h.bf16 %v5571_v6  ;;  %v5572_v1 = vunpack.i.l.bf16 %v5571_v6  ;;  %v5568_v46 = vunpack.i.h.bf16 %v5566_v7  ;;  %v5567_v57 = vunpack.i.l.bf16 %v5566_v7  ;;  %v9358_v7 = vld [vmem:[#allocation42_spill] sm:$0xff] }
 0x1f0   :  { %v2800_v2 = vmax.f32 %v2544_v28, %v5572_v1  ;;  %v2801_v40 = vmax.f32 %v2545_v8, %v5573_v58  ;;  %5870 = vrot.lane.b32.xlu1 %v9347_v52, %s6031_s21  ;;  %5865 = vrot.lane.b32.xlu0 %v9352_v29, %s6028_s19  ;;  %v2290_v12 = vmax.f32 %v2034_v44, %v5567_v57  ;;  %v9359_v8 = vld [vmem:[#allocation10_spill] sm:$0xff]  ;;  %v5048_v1 = vunpack.i.h.bf16 %v9356_v49  ;;  %v7879_v44 = vpop.f32.mrb[8].mxu0 }
 0x1f1   :  { %v5581_v4 = vpop.permute.xlu1 %5580  ;;  %v5576_v16 = vpop.permute.xlu0 %5575  ;;  %v2291_v62 = vmax.f32 %v2035_v15, %v5568_v46  ;;  %v1270_v28 = vmax.f32 %v9358_v7, %v4887_v25  ;;  %v1271_v58 = vmax.f32 %v9359_v8, %v4888_v51  ;;  %v9361_v51 = vld [vmem:[#allocation71_spill] sm:$0xff] }
 0x1f2   :  { %v5583_v24 = vunpack.i.h.bf16 %v5581_v4  ;;  %v5582_v0 = vunpack.i.l.bf16 %v5581_v4  ;;  %4574 = vmatprep.mubr.msk.f32.mxu1 %vm2839_vm3, %v2800_v2  ;;  %v5578_v26 = vunpack.i.h.bf16 %v5576_v16  ;;  %v5577_v63 = vunpack.i.l.bf16 %v5576_v16 }
 0x1f3   :  { %4575 = vmatmul.mubr.msk.f32.gmra.mrb[26].mxu1 %vm2839_vm3, %v2801_v40  ;;  %v1526_v5 = vmax.f32 %v1270_v28, %v5047_v31  ;;  %v4893_v25 = vunpack.i.h.bf16 %v9361_v51  ;;  %v4892_v43 = vunpack.i.l.bf16 %v9361_v51  ;;  %v1527_v15 = vmax.f32 %v1271_v58, %v5048_v1 }
 0x1f4   :  { %v2546_v52 = vmax.f32 %v2290_v12, %v5582_v0  ;;  %v2547_v42 = vmax.f32 %v2291_v62, %v5583_v24  ;;  %5880 = vrot.lane.b32.xlu1 %v9352_v29, %s6030_s3  ;;  %5875 = vrot.lane.b32.xlu0 %v9357_v27, %s6029_s20  ;;  %v2037_v46 = vmax.f32 %v1781_v47, %v5578_v26  ;;  %v7881_v62 = vpop.f32.mrb[9].mxu0 }
 0x1f5   :  { %v5591_v37 = vpop.permute.xlu1 %5590  ;;  %v5586_v20 = vpop.permute.xlu0 %5585  ;;  %v2036_v57 = vmax.f32 %v1780_v3, %v5577_v63  ;;  %v1782_v24 = vmax.f32 %v1526_v5, %v5207_v36  ;;  %v4777_v3 = vunpack.i.l.bf16 %v9295_v22  ;;  %v1783_v26 = vmax.f32 %v1527_v15, %v5208_v17  ;;  %v9362_v63 = vld [vmem:[#allocation36_spill] sm:$0xff]  ;;  %v9366_v36 = vld [vmem:[#allocation125_spill] sm:$0xff] }
 0x1f6   :  { %v5593_v11 = vunpack.i.h.bf16 %v5591_v37  ;;  %v5592_v33 = vunpack.i.l.bf16 %v5591_v37  ;;  %v5588_v19 = vunpack.i.h.bf16 %v5586_v20  ;;  %v5587_v6 = vunpack.i.l.bf16 %v5586_v20  ;;  %v7888_v37 = vpop.f32.mrb[10].mxu0 }
 0x1f8   :  { %v2802_v54 = vmax.f32 %v2546_v52, %v5592_v33  ;;  %v2803_v56 = vmax.f32 %v2547_v42, %v5593_v11  ;;  %5890 = vrot.lane.b32.xlu1 %v9352_v29, %s6031_s21  ;;  %5885 = vrot.lane.b32.xlu0 %v9357_v27, %s6028_s19  ;;  %v2292_v4 = vmax.f32 %v2036_v57, %v5587_v6  ;;  %v7890_v11 = vpop.f32.mrb[11].mxu0  ;;  %v9363_v33 = vld [vmem:[#allocation9_spill] sm:$0xff] }
 0x1f9   :  { %v5601_v2 = vpop.permute.xlu1 %5600  ;;  %v5596_v40 = vpop.permute.xlu0 %5595  ;;  %v2293_v16 = vmax.f32 %v2037_v46, %v5588_v19  ;;  %v1273_v47 = vmax.f32 %v9363_v33, %v4893_v25  ;;  %v9367_v46 = vunpack.i.h.bf16 %v9295_v22  ;;  %v9368_v57 = vld [vmem:[#allocation25_spill] sm:$0xff] }
 0x1fa   :  { %v5603_v30 = vunpack.i.h.bf16 %v5601_v2  ;;  %v5602_v55 = vunpack.i.l.bf16 %v5601_v2  ;;  %4577 = vmatprep.mubr.msk.f32.mxu1 %vm2839_vm3, %v2802_v54  ;;  %v5598_v0 = vunpack.i.h.bf16 %v5596_v40  ;;  %v5597_v45 = vunpack.i.l.bf16 %v5596_v40 }
 0x1fb   :  { %4578 = vmatmul.mubr.msk.f32.gmra.mrb[28].mxu1 %vm2839_vm3, %v2803_v56  ;;  %v1272_v54 = vmax.f32 %v9364_v9, %v4892_v43  ;;  %v9365_v56 = vld [vmem:[#allocation98_spill] sm:$0xff]  ;;  %v5213_v2 = vunpack.i.h.bf16 %v9366_v36  ;;  %v5212_v40 = vunpack.i.l.bf16 %v9366_v36  ;;  %v9370_v5 = vunpack.c.l.bf16 %v9368_v57  ;;  %v9376_v36 = vld [vmem:[#allocation129_spill] sm:$0xff] }
 0x1fc   :  { %v2548_v29 = vmax.f32 %v2292_v4, %v5602_v55  ;;  %v2549_v49 = vmax.f32 %v2293_v16, %v5603_v30  ;;  %5900 = vrot.lane.b32.xlu1 %v9357_v27, %s6030_s3  ;;  %5895 = vrot.lane.b32.xlu0 %v9362_v63, %s6029_s20  ;;  %v5053_v19 = vunpack.i.h.bf16 %v9365_v56  ;;  %v5052_v6 = vunpack.i.l.bf16 %v9365_v56 }
 0x1fd   :  { %v5611_v35 = vpop.permute.xlu1 %5610  ;;  %v5606_v23 = vpop.permute.xlu0 %5605  ;;  %v2038_v8 = vmax.f32 %v1782_v24, %v5597_v45  ;;  %v2039_v58 = vmax.f32 %v1783_v26, %v5598_v0  ;;  %v9369_v30 = vunpack.c.h.bf16 %v9368_v57  ;;  %v7911_v17 = vmax.f32 %v9370_v5, %v4777_v3 }
 0x1fe   :  { %v5613_v31 = vunpack.i.h.bf16 %v5611_v35  ;;  %v5612_v12 = vunpack.i.l.bf16 %v5611_v35  ;;  %v5608_v52 = vunpack.i.h.bf16 %v5606_v23  ;;  %v5607_v42 = vunpack.i.l.bf16 %v5606_v23  ;;  %v9371_v23 = vld [vmem:[#allocation74_spill] sm:$0xff] }
 0x1ff   :  { %v7907_v55 = vmax.f32 %v9369_v30, %v9367_v46  ;;  %v1528_v43 = vmax.f32 %v1272_v54, %v5052_v6  ;;  %v1529_v4 = vmax.f32 %v1273_v47, %v5053_v19  ;;  %v9373_v47 = vld [vmem:[#allocation101_spill] sm:$0xff]  ;;  %v9377_v46 = vld [vmem:[#allocation52_spill] sm:$0xff] }
 0x200   :  { %v2804_v20 = vmax.f32 %v2548_v29, %v5612_v12  ;;  %v2805_v21 = vmax.f32 %v2549_v49, %v5613_v31  ;;  %5910 = vrot.lane.b32.xlu1 %v9357_v27, %s6031_s21  ;;  %5905 = vrot.lane.b32.xlu0 %v9362_v63, %s6028_s19  ;;  %v2294_v51 = vmax.f32 %v2038_v8, %v5607_v42  ;;  %v4898_v29 = vunpack.i.h.bf16 %v9371_v23 }
 0x201   :  { %v5621_v7 = vpop.permute.xlu1 %5620  ;;  %v5616_v28 = vpop.permute.xlu0 %5615  ;;  %v2295_v25 = vmax.f32 %v2039_v58, %v5608_v52  ;;  %v4897_v49 = vunpack.i.l.bf16 %v9371_v23  ;;  %v1784_v31 = vmax.f32 %v1528_v43, %v5212_v40  ;;  %v1785_v12 = vmax.f32 %v1529_v4, %v5213_v2  ;;  %v9372_v52 = vld [vmem:[#allocation51_spill] sm:$0xff] }
 0x202   :  { %v5623_v1 = vunpack.i.h.bf16 %v5621_v7  ;;  %v5622_v61 = vunpack.i.l.bf16 %v5621_v7  ;;  %4580 = vmatprep.mubr.msk.f32.mxu1 %vm2839_vm3, %v2804_v20  ;;  %v5618_v27 = vunpack.i.h.bf16 %v5616_v28  ;;  %v5617_v16 = vunpack.i.l.bf16 %v5616_v28 }
 0x203   :  { %4581 = vmatmul.mubr.msk.f32.gmra.mrb[30].mxu1 %vm2839_vm3, %v2805_v21  ;;  %v4793_v42 = vunpack.i.h.bf16 %v9372_v52  ;;  %v4792_v33 = vunpack.i.l.bf16 %v9372_v52  ;;  %v5058_v9 = vunpack.i.h.bf16 %v9373_v47  ;;  %v5057_v54 = vunpack.i.l.bf16 %v9373_v47 }
 0x204   :  { %v2550_v0 = vmax.f32 %v2294_v51, %v5622_v61  ;;  %v2551_v22 = vmax.f32 %v2295_v25, %v5623_v1  ;;  %5915 = vrot.lane.b32.xlu0 %v9362_v63, %s6030_s3  ;;  %5920 = vrot.lane.b32.xlu1 %v9362_v63, %s6031_s21  ;;  %v2041_v6 = vmax.f32 %v1785_v12, %v5618_v27  ;;  %v9374_v63 = vld [vmem:[#allocation12_spill] sm:$0xff]  ;;  %v9375_v1 = vld [vmem:[#allocation46_spill] sm:$0xff]  ;;  %v5218_v2 = vunpack.i.h.bf16 %v9376_v36  ;;  %v7932_v25 = vpop.f32.mrb[12].mxu0 }
 0x205   :  { %v5631_v15 = vpop.permute.xlu1 %5630  ;;  %v5626_v24 = vpop.permute.xlu0 %5625  ;;  %v2040_v7 = vmax.f32 %v1784_v31, %v5617_v16  ;;  %v1274_v58 = vmax.f32 %v9374_v63, %v4897_v49  ;;  %v1275_v61 = vmax.f32 %v9375_v1, %v4898_v29  ;;  %v5217_v40 = vunpack.i.l.bf16 %v9376_v36  ;;  %9378 = vst [vmem:[#allocation57_spill] sm:$0xff] %v7932_v25  ;;  %v9380_v29 = vld [vmem:[#allocation73_spill] sm:$0xff] }
 0x206   :  { %v5633_v45 = vunpack.i.h.bf16 %v5631_v15  ;;  %v5632_v35 = vunpack.i.l.bf16 %v5631_v15  ;;  %v5628_v20 = vunpack.i.h.bf16 %v5626_v24  ;;  %v5627_v21 = vunpack.i.l.bf16 %v5626_v24  ;;  %v7934_v23 = vpop.f32.mrb[13].mxu0 }
 0x207   :  { %v4788_v57 = vunpack.i.h.bf16 %v9377_v46  ;;  %v4787_v30 = vunpack.i.l.bf16 %v9377_v46  ;;  %v1530_v43 = vmax.f32 %v1274_v58, %v5057_v54  ;;  %v1531_v4 = vmax.f32 %v1275_v61, %v5058_v9  ;;  %9379 = vst [vmem:[#allocation50_spill] sm:$0xff] %v7934_v23  ;;  %v9382_v54 = vld [vmem:[#allocation28_spill] sm:$0xff]  ;;  %v9386_v46 = vld [vmem:[#allocation11_spill] sm:$0xff] }
 0x208   :  { %v2806_v3 = vmax.f32 %v2550_v0, %v5632_v35  ;;  %v2807_v26 = vmax.f32 %v2551_v22, %v5633_v45  ;;  %v2296_v5 = vmax.f32 %v2040_v7, %v5627_v21  ;;  %v2297_v51 = vmax.f32 %v2041_v6, %v5628_v20 }
 0x209   :  { %v5641_v56 = vpop.permute.xlu1 %5640  ;;  %v5636_v19 = vpop.permute.xlu0 %5635  ;;  %v4903_v49 = vunpack.i.h.bf16 %v9380_v29  ;;  %v4902_v31 = vunpack.i.l.bf16 %v9380_v29  ;;  %v1786_v12 = vmax.f32 %v1530_v43, %v5217_v40  ;;  %v9384_v6 = vunpack.c.l.bf16 %v9382_v54  ;;  %v9388_v43 = vld [vmem:[#allocation128_spill] sm:$0xff] }
 0x20a   :  { %v5643_v28 = vunpack.i.h.bf16 %v5641_v56  ;;  %v5642_v8 = vunpack.i.l.bf16 %v5641_v56  ;;  %4583 = vmatprep.mubr.msk.f32.mxu1 %vm2839_vm3, %v2806_v3  ;;  %v5638_v27 = vunpack.i.h.bf16 %v5636_v19  ;;  %v5637_v16 = vunpack.i.l.bf16 %v5636_v19 }
 0x20b   :  { %4584 = vmatmul.mubr.msk.f32.gmra.mrb[32].mxu1 %vm2839_vm3, %v2807_v26  ;;  %v1787_v3 = vmax.f32 %v1531_v4, %v5218_v2  ;;  %v7938_v26 = vpop.f32.mrb[14].mxu0  ;;  %v9383_v56 = vunpack.c.h.bf16 %v9382_v54  ;;  %v7948_v7 = vmax.f32 %v9384_v6, %v4792_v33  ;;  %v5223_v4 = vunpack.i.h.bf16 %v9388_v43  ;;  %v9392_v6 = vld [vmem:[#allocation76_spill] sm:$0xff] }
 0x20c   :  { %v2552_v0 = vmax.f32 %v2296_v5, %v5642_v8  ;;  %v2553_v22 = vmax.f32 %v2297_v51, %v5643_v28  ;;  %9381 = vst [vmem:[#allocation24_spill] sm:$0xff] %v7938_v26  ;;  %v7940_v9 = vpop.f32.mrb[15].mxu0  ;;  %v9385_v28 = vld [vmem:[#allocation100_spill] sm:$0xff]  ;;  %v2042_v61 = vmax.f32 %v1786_v12, %v5637_v16  ;;  %v1277_v5 = vmax.f32 %v9386_v46, %v4903_v49 }
 0x20d   :  { %v5651_v15 = vpop.permute.xlu1 %5650  ;;  %v5646_v24 = vpop.permute.xlu0 %5645  ;;  %v7944_v19 = vmax.f32 %v9383_v56, %v4793_v42  ;;  %v5063_v8 = vunpack.i.h.bf16 %v9385_v28  ;;  %v5062_v63 = vunpack.i.l.bf16 %v9385_v28  ;;  %v2043_v36 = vmax.f32 %v1787_v3, %v5638_v27  ;;  %v9387_v42 = vld [vmem:[#allocation45_spill] sm:$0xff] }
 0x20e   :  { %v5653_v45 = vunpack.i.h.bf16 %v5651_v15  ;;  %v5652_v35 = vunpack.i.l.bf16 %v5651_v15  ;;  %v5648_v52 = vunpack.i.h.bf16 %v5646_v24  ;;  %v5647_v47 = vunpack.i.l.bf16 %v5646_v24  ;;  %v9389_v15 = vld [vmem:[#allocation29_spill] sm:$0xff] }
 0x20f   :  { %v1276_v51 = vmax.f32 %v9387_v42, %v4902_v31  ;;  %v5222_v33 = vunpack.i.l.bf16 %v9388_v43  ;;  %v9390_v24 = vunpack.c.h.bf16 %v9389_v15  ;;  %v9391_v27 = vunpack.c.l.bf16 %v9389_v15 }
 0x210   :  { %v2808_v20 = vmax.f32 %v2552_v0, %v5652_v35  ;;  %v2809_v21 = vmax.f32 %v2553_v22, %v5653_v45  ;;  %v2298_v22 = vmax.f32 %v2042_v61, %v5647_v47  ;;  %v2299_v45 = vmax.f32 %v2043_v36, %v5648_v52  ;;  %v9394_v61 = vld [vmem:[#allocation103_spill] sm:$0xff] }
 0x211   :  { %v5661_v58 = vpop.permute.xlu1 %5660  ;;  %v5656_v1 = vpop.permute.xlu0 %5655  ;;  %v7960_v0 = vmax.f32 %v9390_v24, %v4788_v57  ;;  %v7964_v16 = vmax.f32 %v9391_v27, %v4787_v30  ;;  %v1532_v35 = vmax.f32 %v1276_v51, %v5062_v63  ;;  %v1533_v29 = vmax.f32 %v1277_v5, %v5063_v8  ;;  %v9393_v63 = vld [vmem:[#allocation53_spill] sm:$0xff] }
 0x212   :  { %v5663_v2 = vunpack.i.h.bf16 %v5661_v58  ;;  %v5662_v40 = vunpack.i.l.bf16 %v5661_v58  ;;  %4586 = vmatprep.mubr.msk.f32.mxu1 %vm2839_vm3, %v2808_v20  ;;  %v5658_v49 = vunpack.i.h.bf16 %v5656_v1  ;;  %v5657_v31 = vunpack.i.l.bf16 %v5656_v1  ;;  %v9395_v27 = vld [vmem:[#allocation133_spill] sm:$0xff] }
 0x213   :  { %4587 = vmatmul.mubr.msk.f32.gmra.mrb[34].mxu1 %vm2839_vm3, %v2809_v21  ;;  %v4908_v28 = vunpack.i.h.bf16 %v9392_v6  ;;  %v4907_v57 = vunpack.i.l.bf16 %v9392_v6  ;;  %v1788_v58 = vmax.f32 %v1532_v35, %v5222_v33  ;;  %v1789_v46 = vmax.f32 %v1533_v29, %v5223_v4  ;;  %v9396_v35 = vld [vmem:[#allocation54_spill] sm:$0xff] }
 0x214   :  { %v2554_v20 = vmax.f32 %v2298_v22, %v5662_v40  ;;  %v2555_v54 = vmax.f32 %v2299_v45, %v5663_v2  ;;  %v4803_v8 = vunpack.i.h.bf16 %v9393_v63  ;;  %v4802_v1 = vunpack.i.l.bf16 %v9393_v63 }
 0x215   :  { %v5671_v12 = vpop.permute.xlu1 %5670  ;;  %v5666_v3 = vpop.permute.xlu0 %5665  ;;  %v5068_v36 = vunpack.i.h.bf16 %v9394_v61  ;;  %v5067_v2 = vunpack.i.l.bf16 %v9394_v61  ;;  %v2045_v51 = vmax.f32 %v1789_v46, %v5658_v49  ;;  %v2044_v43 = vmax.f32 %v1788_v58, %v5657_v31 }
 0x216   :  { %v5673_v56 = vunpack.i.h.bf16 %v5671_v12  ;;  %v5672_v21 = vunpack.i.l.bf16 %v5671_v12  ;;  %v5668_v47 = vunpack.i.h.bf16 %v5666_v3  ;;  %v5667_v52 = vunpack.i.l.bf16 %v5666_v3  ;;  %v7980_v3 = vpop.f32.mrb[16].mxu0 }
 0x217   :  { %v1278_v4 = vmax.f32 %v7361_v13, %v4907_v57  ;;  %v1279_v33 = vmax.f32 %v7357_v41, %v4908_v28  ;;  %v5228_v22 = vunpack.i.h.bf16 %v9395_v27  ;;  %v5227_v45 = vunpack.i.l.bf16 %v9395_v27  ;;  %9397 = vst [vmem:[#allocation58_spill] sm:$0xff] %v7980_v3  ;;  %v7982_v46 = vpop.f32.mrb[17].mxu0  ;;  %v9405_v27 = vld [vmem:[#allocation102_spill] sm:$0xff] }
 0x218   :  { %v2810_v30 = vmax.f32 %v2554_v20, %v5672_v21  ;;  %v2811_v42 = vmax.f32 %v2555_v54, %v5673_v56  ;;  %v4798_v29 = vunpack.i.h.bf16 %v9396_v35  ;;  %v4797_v12 = vunpack.i.l.bf16 %v9396_v35  ;;  %9398 = vst [vmem:[#allocation59_spill] sm:$0xff] %v7982_v46  ;;  %v7986_v61 = vpop.f32.mrb[18].mxu0  ;;  %v9412_v3 = vld [vmem:[#allocation78_spill] sm:$0xff] }
 0x219   :  { %v5681_v40 = vpop.permute.xlu1 %5680  ;;  %v5676_v5 = vpop.permute.xlu0 %5675  ;;  %v2300_v49 = vmax.f32 %v2044_v43, %v5667_v52  ;;  %v2301_v31 = vmax.f32 %v2045_v51, %v5668_v47  ;;  %v1534_v20 = vmax.f32 %v1278_v4, %v5067_v2  ;;  %v1535_v54 = vmax.f32 %v1279_v33, %v5068_v36  ;;  %9400 = vst [vmem:[#allocation60_spill] sm:$0xff] %v7986_v61  ;;  %v9402_v43 = vld [vmem:[#allocation32_spill] sm:$0xff] }
 0x21a   :  { %v5683_v15 = vunpack.i.h.bf16 %v5681_v40  ;;  %v5682_v24 = vunpack.i.l.bf16 %v5681_v40  ;;  %4589 = vmatprep.mubr.msk.f32.mxu1 %vm2839_vm3, %v2810_v30  ;;  %v5678_v56 = vunpack.i.h.bf16 %v5676_v5  ;;  %v5677_v13 = vunpack.i.l.bf16 %v5676_v5  ;;  %v9399_v30 = vld [vmem:[#allocation75_spill] sm:$0xff]  ;;  %v7988_v51 = vpop.f32.mrb[19].mxu0 }
 0x21b   :  { %4590 = vmatmul.mubr.msk.f32.gmra.mrb[36].mxu1 %vm2839_vm3, %v2811_v42  ;;  %v4913_v42 = vunpack.i.h.bf16 %v9399_v30  ;;  %v4912_v63 = vunpack.i.l.bf16 %v9399_v30  ;;  %v1790_v52 = vmax.f32 %v1534_v20, %v5227_v45  ;;  %v1791_v47 = vmax.f32 %v1535_v54, %v5228_v22  ;;  %9401 = vst [vmem:[#allocation61_spill] sm:$0xff] %v7988_v51  ;;  %v9409_v30 = vld [vmem:[#allocation33_spill] sm:$0xff] }
 0x21c   :  { %v2556_v6 = vmax.f32 %v2300_v49, %v5682_v24  ;;  %v2557_v28 = vmax.f32 %v2301_v31, %v5683_v15  ;;  %v9403_v15 = vunpack.c.h.bf16 %v9402_v43  ;;  %v9404_v4 = vunpack.c.l.bf16 %v9402_v43 }
 0x21d   :  { %v5691_v21 = vpop.permute.xlu1 %5690  ;;  %v5686_v41 = vpop.permute.xlu0 %5685  ;;  %v5073_v35 = vunpack.i.h.bf16 %v9405_v27  ;;  %v5072_v22 = vunpack.i.l.bf16 %v9405_v27  ;;  %v2046_v31 = vmax.f32 %v1790_v52, %v5677_v13  ;;  %v2047_v20 = vmax.f32 %v1791_v47, %v5678_v56 }
 0x21e   :  { %v5693_v57 = vunpack.i.h.bf16 %v5691_v21  ;;  %v5692_v58 = vunpack.i.l.bf16 %v5691_v21  ;;  %v5688_v40 = vunpack.i.h.bf16 %v5686_v41  ;;  %v5687_v5 = vunpack.i.l.bf16 %v5686_v41  ;;  %v9406_v41 = vld [vmem:[#allocation47_spill] sm:$0xff] }
 0x21f   :  { %v7992_v24 = vmax.f32 %v9403_v15, %v4803_v8  ;;  %v7996_v33 = vmax.f32 %v9404_v4, %v4802_v1  ;;  %v9407_v8 = vld [vmem:[#allocation13_spill] sm:$0xff]  ;;  %v9410_v43 = vunpack.c.h.bf16 %v9409_v30  ;;  %v9411_v56 = vunpack.c.l.bf16 %v9409_v30 }
 0x220   :  { %v2812_v2 = vmax.f32 %v2556_v6, %v5692_v58  ;;  %v2813_v36 = vmax.f32 %v2557_v28, %v5693_v57  ;;  %v1281_v6 = vmax.f32 %v9406_v41, %v4913_v42  ;;  %v1280_v28 = vmax.f32 %v9407_v8, %v4912_v63  ;;  %v9408_v57 = vld [vmem:[#allocation38_spill] sm:$0xff] }
 0x221   :  { %v5701_v45 = vpop.permute.xlu1 %5700  ;;  %v5696_v49 = vpop.permute.xlu0 %5695  ;;  %v5233_v58 = vunpack.i.h.bf16 %v9408_v57  ;;  %v5232_v1 = vunpack.i.l.bf16 %v9408_v57  ;;  %v8008_v15 = vmax.f32 %v9410_v43, %v4798_v29  ;;  %v8012_v13 = vmax.f32 %v9411_v56, %v4797_v12 }
 0x222   :  { %v5703_v54 = vunpack.i.h.bf16 %v5701_v45  ;;  %v5702_v21 = vunpack.i.l.bf16 %v5701_v45  ;;  %4592 = vmatprep.mubr.msk.f32.mxu1 %vm2839_vm3, %v2812_v2  ;;  %v2302_v52 = vmax.f32 %v2046_v31, %v5687_v5  ;;  %v2303_v47 = vmax.f32 %v2047_v20, %v5688_v40  ;;  %v9414_v31 = vld [vmem:[#allocation105_spill] sm:$0xff] }
 0x223   :  { %4593 = vmatmul.mubr.msk.f32.gmra.mrb[38].mxu1 %vm2839_vm3, %v2813_v36  ;;  %v1536_v2 = vmax.f32 %v1280_v28, %v5072_v22  ;;  %v1537_v42 = vmax.f32 %v1281_v6, %v5073_v35  ;;  %v5698_v4 = vunpack.i.h.bf16 %v5696_v49  ;;  %v5697_v63 = vunpack.i.l.bf16 %v5696_v49  ;;  %v9413_v22 = vld [vmem:[#allocation77_spill] sm:$0xff] }
 0x224   :  { %v2558_v41 = vmax.f32 %v2302_v52, %v5702_v21  ;;  %v2559_v8 = vmax.f32 %v2303_v47, %v5703_v54  ;;  %v4918_v61 = vunpack.i.h.bf16 %v9412_v3  ;;  %v4917_v29 = vunpack.i.l.bf16 %v9412_v3 }
 0x225   :  { %v5711_v27 = vpop.permute.xlu1 %5710  ;;  %v5706_v45 = vpop.permute.xlu0 %5705  ;;  %v1792_v43 = vmax.f32 %v1536_v2, %v5232_v1  ;;  %v1793_v30 = vmax.f32 %v1537_v42, %v5233_v58  ;;  %v4923_v35 = vunpack.i.h.bf16 %v9413_v22  ;;  %v4922_v49 = vunpack.i.l.bf16 %v9413_v22  ;;  %v9415_v58 = vld [vmem:[#allocation137_spill] sm:$0xff] }
 0x226   :  { %v5713_v57 = vunpack.i.h.bf16 %v5711_v27  ;;  %v5712_v36 = vunpack.i.l.bf16 %v5711_v27  ;;  %v5708_v5 = vunpack.i.h.bf16 %v5706_v45  ;;  %v5707_v40 = vunpack.i.l.bf16 %v5706_v45  ;;  %v9416_v2 = vld [vmem:[#allocation17_spill] sm:$0xff]  ;;  %v9417_v27 = vld [vmem:[#allocation8_spill] sm:$0xff] }
 0x227   :  { %v5078_v20 = vunpack.i.h.bf16 %v9414_v31  ;;  %v5077_v54 = vunpack.i.l.bf16 %v9414_v31  ;;  %v2049_v28 = vmax.f32 %v1793_v30, %v5698_v4  ;;  %v2048_v52 = vmax.f32 %v1792_v43, %v5697_v63  ;;  %v8028_v43 = vpop.f32.mrb[20].mxu0 }
 0x228   :  { %v2814_v12 = vmax.f32 %v2558_v41, %v5712_v36  ;;  %v2815_v56 = vmax.f32 %v2559_v8, %v5713_v57  ;;  %v1282_v1 = vmax.f32 %v9415_v58, %v4917_v29  ;;  %v1283_v42 = vmax.f32 %v9416_v2, %v4918_v61  ;;  %v9418_v8 = vld [vmem:[#allocation79_spill] sm:$0xff]  ;;  %9419 = vst [vmem:[#allocation62_spill] sm:$0xff] %v8028_v43  ;;  %v8030_v46 = vpop.f32.mrb[21].mxu0 }
 0x229   :  { %v5721_v21 = vpop.permute.xlu1 %5720  ;;  %v5716_v6 = vpop.permute.xlu0 %5715  ;;  %v5238_v45 = vunpack.i.h.bf16 %v9417_v27  ;;  %v5237_v41 = vunpack.i.l.bf16 %v9417_v27  ;;  %v4933_v57 = vunpack.i.h.bf16 %v9418_v8  ;;  %v4932_v36 = vunpack.i.l.bf16 %v9418_v8  ;;  %9420 = vst [vmem:[#allocation63_spill] sm:$0xff] %v8030_v46 }
 0x22a   :  { %v5723_v47 = vunpack.i.h.bf16 %v5721_v21  ;;  %v5722_v3 = vunpack.i.l.bf16 %v5721_v21  ;;  %4595 = vmatprep.mubr.msk.f32.mxu1 %vm2839_vm3, %v2814_v12  ;;  %v2304_v4 = vmax.f32 %v2048_v52, %v5707_v40  ;;  %v2305_v63 = vmax.f32 %v2049_v28, %v5708_v5  ;;  %v8034_v28 = vpop.f32.mrb[22].mxu0 }
 0x22b   :  { %4596 = vmatmul.mubr.msk.f32.gmra.mrb[40].mxu1 %vm2839_vm3, %v2815_v56  ;;  %v1538_v30 = vmax.f32 %v1282_v1, %v5077_v54  ;;  %v1539_v12 = vmax.f32 %v1283_v42, %v5078_v20  ;;  %v5718_v22 = vunpack.i.h.bf16 %v5716_v6  ;;  %v5717_v29 = vunpack.i.l.bf16 %v5716_v6  ;;  %v9421_v56 = vld [vmem:[#allocation104_spill] sm:$0xff]  ;;  %9422 = vst [vmem:[#allocation87_spill] sm:$0xff] %v8034_v28  ;;  %v8036_v1 = vpop.f32.mrb[23].mxu0 }
 0x22c   :  { %v2560_v21 = vmax.f32 %v2304_v4, %v5722_v3  ;;  %v2561_v58 = vmax.f32 %v2305_v63, %v5723_v47  ;;  %v5083_v51 = vunpack.i.h.bf16 %v9421_v56  ;;  %v5082_v8 = vunpack.i.l.bf16 %v9421_v56  ;;  %9423 = vst [vmem:[#allocation15_spill] sm:$0xff] %v8036_v1  ;;  %v9424_v3 = vld [vmem:[#allocation48_spill] sm:$0xff] }
 0x22d   :  { %v5731_v31 = vpop.permute.xlu1 %5730  ;;  %v5726_v61 = vpop.permute.xlu0 %5725  ;;  %v1794_v40 = vmax.f32 %v1538_v30, %v5237_v41  ;;  %v1795_v5 = vmax.f32 %v1539_v12, %v5238_v45  ;;  %v1285_v47 = vmax.f32 %v9424_v3, %v4923_v35  ;;  %v9425_v42 = vld [vmem:[#allocation136_spill] sm:$0xff]  ;;  %v9429_v35 = vld [vmem:[#allocation7_spill] sm:$0xff] }
 0x22e   :  { %v5733_v2 = vunpack.i.h.bf16 %v5731_v31  ;;  %v5732_v27 = vunpack.i.l.bf16 %v5731_v31  ;;  %v5728_v52 = vunpack.i.h.bf16 %v5726_v61  ;;  %v5727_v6 = vunpack.i.l.bf16 %v5726_v61  ;;  %v9426_v63 = vld [vmem:[#allocation80_spill] sm:$0xff] }
 0x22f   :  { %v1284_v4 = vmax.f32 %v9425_v42, %v4922_v49  ;;  %v4928_v31 = vunpack.i.h.bf16 %v9426_v63  ;;  %v4927_v43 = vunpack.i.l.bf16 %v9426_v63  ;;  %v2050_v41 = vmax.f32 %v1794_v40, %v5717_v29  ;;  %v9430_v40 = vld [vmem:[#allocation107_spill] sm:$0xff] }
 0x230   :  { %v2816_v54 = vmax.f32 %v2560_v21, %v5732_v27  ;;  %v2817_v20 = vmax.f32 %v2561_v58, %v5733_v2  ;;  %v2051_v45 = vmax.f32 %v1795_v5, %v5718_v22  ;;  %v9427_v21 = vld [vmem:[#allocation20_spill] sm:$0xff]  ;;  %v9428_v58 = vld [vmem:[#allocation138_spill] sm:$0xff]  ;;  %v5243_v49 = vunpack.i.h.bf16 %v9429_v35 }
 0x231   :  { %v5741_v46 = vpop.permute.xlu1 %5740  ;;  %v5736_v56 = vpop.permute.xlu0 %5735  ;;  %v8044_v61 = vmax.f32 %v9427_v21, %v4933_v57  ;;  %v8047_v2 = vmax.f32 %v9428_v58, %v4932_v36  ;;  %v5242_v27 = vunpack.i.l.bf16 %v9429_v35  ;;  %v1540_v3 = vmax.f32 %v1284_v4, %v5082_v8  ;;  %v9431_v8 = vld [vmem:[#allocation56_spill] sm:$0xff] }
 0x232   :  { %v5743_v30 = vunpack.i.h.bf16 %v5741_v46  ;;  %v5742_v12 = vunpack.i.l.bf16 %v5741_v46  ;;  %4598 = vmatprep.mubr.msk.f32.mxu1 %vm2839_vm3, %v2816_v54  ;;  %v1541_v42 = vmax.f32 %v1285_v47, %v5083_v51  ;;  %v2306_v29 = vmax.f32 %v2050_v41, %v5727_v6  ;;  %v9432_v6 = vld [vmem:[#allocation21_spill] sm:$0xff]  ;;  %v9433_v41 = vld [vmem:[#allocation44_spill] sm:$0xff] }
 0x233   :  { %4599 = vmatmul.mubr.msk.f32.gmra.mrb[42].mxu1 %vm2839_vm3, %v2817_v20  ;;  %v2307_v22 = vmax.f32 %v2051_v45, %v5728_v52  ;;  %v5088_v46 = vunpack.i.h.bf16 %v9430_v40  ;;  %v5087_v5 = vunpack.i.l.bf16 %v9430_v40  ;;  %v5738_v54 = vunpack.i.h.bf16 %v5736_v56 }
 0x234   :  { %v5737_v57 = vunpack.i.l.bf16 %v5736_v56  ;;  %v2562_v36 = vmax.f32 %v2306_v29, %v5742_v12  ;;  %v1796_v25 = vmax.f32 %v1540_v3, %v5242_v27  ;;  %v1797_v35 = vmax.f32 %v1541_v42, %v5243_v49 }
 0x235   :  { %v5751_v63 = vpop.permute.xlu1 %5750  ;;  %v5746_v21 = vpop.permute.xlu0 %5745  ;;  %v2563_v58 = vmax.f32 %v2307_v22, %v5743_v30  ;;  %v1286_v51 = vmax.f32 %v9431_v8, %v4927_v43  ;;  %v1287_v52 = vmax.f32 %v9432_v6, %v4928_v31  ;;  %v5248_v45 = vunpack.i.h.bf16 %v9433_v41 }
 0x236   :  { %v5753_v28 = vunpack.i.h.bf16 %v5751_v63  ;;  %v5752_v1 = vunpack.i.l.bf16 %v5751_v63  ;;  %v5748_v26 = vunpack.i.h.bf16 %v5746_v21  ;;  %v5747_v20 = vunpack.i.l.bf16 %v5746_v21 }
 0x237   :  { %v5247_v56 = vunpack.i.l.bf16 %v9433_v41  ;;  %v2053_v40 = vmax.f32 %v1797_v35, %v5738_v54  ;;  %v2052_v23 = vmax.f32 %v1796_v25, %v5737_v57  ;;  %v1542_v29 = vmax.f32 %v1286_v51, %v5087_v5  ;;  %v9435_v54 = vld [vmem:[#allocation82_spill] sm:$0xff]  ;;  %v8064_v5 = vpop.f32.mrb[24].mxu0 }
 0x238   :  { %v2818_v47 = vmax.f32 %v2562_v36, %v5752_v1  ;;  %v2819_v4 = vmax.f32 %v2563_v58, %v5753_v28  ;;  %v1543_v22 = vmax.f32 %v1287_v52, %v5088_v46  ;;  %v9434_v28 = vld [vmem:[#allocation81_spill] sm:$0xff]  ;;  %v4938_v25 = vunpack.i.h.bf16 %v9435_v54  ;;  %v8066_v6 = vpop.f32.mrb[25].mxu0  ;;  %v9436_v52 = vld [vmem:[#allocation83_spill] sm:$0xff] }
 0x239   :  { %v5761_v12 = vpop.permute.xlu1 %5760  ;;  %v5756_v30 = vpop.permute.xlu0 %5755  ;;  %v2308_v3 = vmax.f32 %v2052_v23, %v5747_v20  ;;  %v2309_v43 = vmax.f32 %v2053_v40, %v5748_v26  ;;  %v4943_v1 = vunpack.i.h.bf16 %v9434_v28  ;;  %v4942_v63 = vunpack.i.l.bf16 %v9434_v28 }
 0x23a   :  { %v5763_v27 = vunpack.i.h.bf16 %v5761_v12  ;;  %v5762_v49 = vunpack.i.l.bf16 %v5761_v12  ;;  %4601 = vmatprep.mubr.msk.f32.mxu1 %vm2839_vm3, %v2818_v47  ;;  %v5758_v42 = vunpack.i.h.bf16 %v5756_v30  ;;  %v5757_v31 = vunpack.i.l.bf16 %v5756_v30  ;;  %v8070_v12 = vpop.f32.mrb[26].mxu0 }
 0x23b   :  { %4602 = vmatmul.mubr.msk.f32.gmra.mrb[44].mxu1 %vm2839_vm3, %v2819_v4  ;;  %v4937_v57 = vunpack.i.l.bf16 %v9435_v54  ;;  %v1798_v46 = vmax.f32 %v1542_v29, %v5247_v56  ;;  %v1799_v21 = vmax.f32 %v1543_v22, %v5248_v45  ;;  %v4953_v47 = vunpack.i.h.bf16 %v9436_v52  ;;  %v9437_v56 = vld [vmem:[#allocation106_spill] sm:$0xff] }
 0x23c   :  { %v2564_v36 = vmax.f32 %v2308_v3, %v5762_v49  ;;  %v2565_v58 = vmax.f32 %v2309_v43, %v5763_v27  ;;  %v4952_v4 = vunpack.i.l.bf16 %v9436_v52  ;;  %v5093_v45 = vunpack.i.h.bf16 %v9437_v56  ;;  %v8074_v27 = vpop.f32.mrb[27].mxu0  ;;  %v9438_v49 = vld [vmem:[#allocation43_spill] sm:$0xff] }
 0x23d   :  { %v5771_v23 = vpop.permute.xlu1 %5770  ;;  %v5766_v26 = vpop.permute.xlu0 %5765  ;;  %v2054_v41 = vmax.f32 %v1798_v46, %v5757_v31  ;;  %v2055_v40 = vmax.f32 %v1799_v21, %v5758_v42  ;;  %v5092_v30 = vunpack.i.l.bf16 %v9437_v56  ;;  %v5253_v3 = vunpack.i.h.bf16 %v9438_v49 }
 0x23e   :  { %v5773_v35 = vunpack.i.h.bf16 %v5771_v23  ;;  %v5772_v20 = vunpack.i.l.bf16 %v5771_v23  ;;  %v5768_v8 = vunpack.i.h.bf16 %v5766_v26  ;;  %v5767_v51 = vunpack.i.l.bf16 %v5766_v26 }
 0x23f   :  { %v5252_v43 = vunpack.i.l.bf16 %v9438_v49  ;;  %v8080_v52 = vmax.f32 %v7429_v50, %v4943_v1  ;;  %v1290_v56 = vmax.f32 %v7911_v17, %v4937_v57  ;;  %v1291_v50 = vmax.f32 %v7907_v55, %v4938_v25  ;;  %v9441_v57 = vld [vmem:[#allocation109_spill] sm:$0xff] }
 0x240   :  { %v2820_v29 = vmax.f32 %v2564_v36, %v5772_v20  ;;  %v2821_v22 = vmax.f32 %v2565_v58, %v5773_v35  ;;  %v2310_v28 = vmax.f32 %v2054_v41, %v5767_v51  ;;  %v2311_v54 = vmax.f32 %v2055_v40, %v5768_v8  ;;  %v9439_v58 = vld [vmem:[#allocation84_spill] sm:$0xff] }
 0x241   :  { %v5781_v23 = vpop.permute.xlu1 %5780  ;;  %v5776_v26 = vpop.permute.xlu0 %5775  ;;  %v8083_v36 = vmax.f32 %v7437_v32, %v4942_v63  ;;  %v4948_v35 = vunpack.i.h.bf16 %v9439_v58  ;;  %v4947_v20 = vunpack.i.l.bf16 %v9439_v58  ;;  %v1544_v8 = vmax.f32 %v8047_v2, %v5092_v30 }
 0x242   :  { %v5783_v31 = vunpack.i.h.bf16 %v5781_v23  ;;  %v5782_v42 = vunpack.i.l.bf16 %v5781_v23  ;;  %v5778_v46 = vunpack.i.h.bf16 %v5776_v26  ;;  %v5777_v21 = vunpack.i.l.bf16 %v5776_v26  ;;  %4604 = vmatprep.mubr.msk.f32.mxu1 %vm2839_vm3, %v2820_v29 }
 0x243   :  { %4605 = vmatmul.mubr.msk.f32.gmra.mrb[46].mxu1 %vm2839_vm3, %v2821_v22  ;;  %v1545_v51 = vmax.f32 %v8044_v61, %v5093_v45  ;;  %v8093_v1 = vmax.f32 %v7944_v19, %v4953_v47  ;;  %v8096_v32 = vmax.f32 %v7948_v7, %v4952_v4  ;;  %v1800_v49 = vmax.f32 %v1544_v8, %v5252_v43  ;;  %v9440_v19 = vld [vmem:[#allocation85_spill] sm:$0xff] }
 0x244   :  { %v2566_v41 = vmax.f32 %v2310_v28, %v5777_v21  ;;  %v2567_v40 = vmax.f32 %v2311_v54, %v5778_v46  ;;  %v8099_v17 = vmax.f32 %v7964_v16, %v4947_v20  ;;  %v8102_v55 = vmax.f32 %v7960_v0, %v4948_v35  ;;  %v9442_v16 = vld [vmem:[#allocation86_spill] sm:$0xff]  ;;  %v9443_v21 = vld [vmem:[#allocation16_spill] sm:$0xff] }
 0x245   :  { %v5791_v63 = vpop.permute.xlu1 %5790  ;;  %v5786_v29 = vpop.permute.xlu0 %5785  ;;  %v1801_v22 = vmax.f32 %v1545_v51, %v5253_v3  ;;  %v4963_v25 = vunpack.i.h.bf16 %v9440_v19  ;;  %v4962_v7 = vunpack.i.l.bf16 %v9440_v19  ;;  %v5098_v47 = vunpack.i.h.bf16 %v9441_v57 }
 0x246   :  { %v2822_v23 = vmax.f32 %v2566_v41, %v5782_v42  ;;  %v2823_v2 = vmax.f32 %v2567_v40, %v5783_v31  ;;  %v5793_v30 = vunpack.i.h.bf16 %v5791_v63  ;;  %v5792_v61 = vunpack.i.l.bf16 %v5791_v63  ;;  %v9444_v40 = vld [vmem:[#allocation108_spill] sm:$0xff] }
 0x247   :  { %v5788_v45 = vunpack.i.h.bf16 %v5786_v29  ;;  %v5787_v28 = vunpack.i.l.bf16 %v5786_v29  ;;  %v5097_v4 = vunpack.i.l.bf16 %v9441_v57  ;;  %v4958_v31 = vunpack.i.h.bf16 %v9442_v16 }
 0x248   :  { %4607 = vmatprep.mubr.msk.f32.mxu1 %vm2839_vm3, %v2822_v23  ;;  %v4957_v0 = vunpack.i.l.bf16 %v9442_v16  ;;  %v5258_v58 = vunpack.i.h.bf16 %v9443_v21  ;;  %v5257_v35 = vunpack.i.l.bf16 %v9443_v21  ;;  %v8115_v51 = vmax.f32 %v7992_v24, %v4963_v25 }
 0x249   :  { %v2057_v3 = vmax.f32 %v1801_v22, %v5788_v45  ;;  %v2056_v43 = vmax.f32 %v1800_v49, %v5787_v28  ;;  %v5801_v54 = vpop.permute.xlu1 %5800  ;;  %v5796_v26 = vpop.permute.xlu0 %5795  ;;  %4608 = vmatmul.mubr.msk.f32.gmra.mrb[48].mxu1 %vm2839_vm3, %v2823_v2  ;;  %v8118_v41 = vmax.f32 %v7996_v33, %v4962_v7  ;;  %v5103_v63 = vunpack.i.h.bf16 %v9444_v40  ;;  %v9445_v33 = vld [vmem:[#allocation110_spill] sm:$0xff] }
 0x24a   :  { %v5803_v42 = vunpack.i.h.bf16 %v5801_v54  ;;  %v5802_v46 = vunpack.i.l.bf16 %v5801_v54  ;;  %v5102_v29 = vunpack.i.l.bf16 %v9444_v40  ;;  %v1546_v22 = vmax.f32 %v1290_v56, %v5097_v4 }
 0x24b   :  { %v2312_v20 = vmax.f32 %v2056_v43, %v5792_v61  ;;  %v2313_v8 = vmax.f32 %v2057_v3, %v5793_v30  ;;  %v1547_v23 = vmax.f32 %v1291_v50, %v5098_v47  ;;  %v5798_v2 = vunpack.i.h.bf16 %v5796_v26 }
 0x24c   :  { %v5797_v45 = vunpack.i.l.bf16 %v5796_v26  ;;  %v5113_v7 = vunpack.i.h.bf16 %v9445_v33  ;;  %v5112_v3 = vunpack.i.l.bf16 %v9445_v33  ;;  %v1802_v43 = vmax.f32 %v1546_v22, %v5257_v35 }
 0x24d   :  { %v8122_v49 = vpop.f32.mrb[28].mxu0  ;;  %v5811_v28 = vpop.permute.xlu1 %5810  ;;  %v2568_v61 = vmax.f32 %v2312_v20, %v5802_v46  ;;  %v2569_v30 = vmax.f32 %v2313_v8, %v5803_v42  ;;  %v1803_v54 = vmax.f32 %v1547_v23, %v5258_v58  ;;  %v1298_v42 = vmax.f32 %v8012_v13, %v4957_v0 }
 0x24e   :  { %v5806_v19 = vpop.permute.xlu0 %5805  ;;  %v5813_v57 = vunpack.i.h.bf16 %v5811_v28  ;;  %v5812_v24 = vunpack.i.l.bf16 %v5811_v28  ;;  %v8124_v25 = vpop.f32.mrb[29].mxu0  ;;  %v1299_v46 = vmax.f32 %v8008_v15, %v4958_v31  ;;  %v1548_v21 = vmax.f32 %v8083_v36, %v5102_v29  ;;  %v9446_v28 = vld [vmem:[#allocation111_spill] sm:$0xff] }
 0x24f   :  { %v8128_v16 = vpop.f32.mrb[30].mxu0  ;;  %v5808_v47 = vunpack.i.h.bf16 %v5806_v19  ;;  %v5807_v4 = vunpack.i.l.bf16 %v5806_v19  ;;  %v1549_v20 = vmax.f32 %v8080_v52, %v5103_v63  ;;  %v2058_v35 = vmax.f32 %v1802_v43, %v5797_v45  ;;  %v9448_v63 = vld [vmem:[#allocation112_spill] sm:$0xff] }
 0x250   :  { %v2824_v56 = vmax.f32 %v2568_v61, %v5812_v24  ;;  %v2825_v50 = vmax.f32 %v2569_v30, %v5813_v57  ;;  %v8130_v26 = vpop.f32.mrb[31].mxu0  ;;  %v2059_v58 = vmax.f32 %v1803_v54, %v5798_v2  ;;  %v5108_v19 = vunpack.i.h.bf16 %v9446_v28  ;;  %v9447_v30 = vld [vmem:[#allocation14_spill] sm:$0xff] }
 0x251   :  { %v5821_v8 = vpop.permute.xlu1 %5820  ;;  %v5107_v61 = vunpack.i.l.bf16 %v9446_v28  ;;  %v5263_v13 = vunpack.i.h.bf16 %v9447_v30  ;;  %v5262_v15 = vunpack.i.l.bf16 %v9447_v30  ;;  %v8143_v52 = vmax.f32 %v8096_v32, %v5112_v3 }
 0x252   :  { %v5816_v40 = vpop.permute.xlu0 %5815  ;;  %v5823_v22 = vunpack.i.h.bf16 %v5821_v8  ;;  %v5822_v23 = vunpack.i.l.bf16 %v5821_v8  ;;  %4610 = vmatprep.mubr.msk.f32.mxu1 %vm2839_vm3, %v2824_v56  ;;  %v8146_v36 = vmax.f32 %v8093_v1, %v5113_v7  ;;  %v2314_v31 = vmax.f32 %v2058_v35, %v5807_v4  ;;  %v9449_v8 = vld [vmem:[#allocation113_spill] sm:$0xff] }
 0x253   :  { %4611 = vmatmul.mubr.msk.f32.gmra.mrb[50].mxu1 %vm2839_vm3, %v2825_v50  ;;  %v2315_v0 = vmax.f32 %v2059_v58, %v5808_v47  ;;  %v5123_v29 = vunpack.i.h.bf16 %v9448_v63  ;;  %v5122_v2 = vunpack.i.l.bf16 %v9448_v63  ;;  %v5818_v45 = vunpack.i.h.bf16 %v5816_v40 }
 0x254   :  { %v5817_v57 = vunpack.i.l.bf16 %v5816_v40  ;;  %v2570_v43 = vmax.f32 %v2314_v31, %v5822_v23  ;;  %v5118_v32 = vunpack.i.h.bf16 %v9449_v8  ;;  %v5117_v3 = vunpack.i.l.bf16 %v9449_v8 }
 0x255   :  { %v5831_v24 = vpop.permute.xlu1 %5830  ;;  %v2571_v54 = vmax.f32 %v2315_v0, %v5823_v22  ;;  %v1804_v1 = vmax.f32 %v1548_v21, %v5262_v15  ;;  %v1805_v7 = vmax.f32 %v1549_v20, %v5263_v13  ;;  %v1550_v28 = vmax.f32 %v8099_v17, %v5107_v61  ;;  %v8163_v13 = vld [vmem:[%s8817_s2] ss:$0 sm:$0xff] }
 0x256   :  { %v5826_v33 = vpop.permute.xlu0 %5825  ;;  %v5833_v56 = vunpack.i.h.bf16 %v5831_v24  ;;  %v5832_v50 = vunpack.i.l.bf16 %v5831_v24  ;;  %v1551_v40 = vmax.f32 %v8102_v55, %v5108_v19  ;;  %v8155_v30 = vmax.f32 %v8118_v41, %v5122_v2  ;;  %v9450_v41 = vld [vmem:[#allocation55_spill] sm:$0xff]  ;;  %v9451_v15 = vld [vmem:[#allocation49_spill] sm:$0xff] }
 0x257   :  { %v5828_v35 = vunpack.i.h.bf16 %v5826_v33  ;;  %v5827_v58 = vunpack.i.l.bf16 %v5826_v33  ;;  %v8158_v22 = vmax.f32 %v8115_v51, %v5123_v29  ;;  %v2061_v0 = vmax.f32 %v1805_v7, %v5818_v45  ;;  %v8173_v61 = vpop.f32.mrb[32].mxu0 }
 0x258   :  { %v2826_v4 = vmax.f32 %v2570_v43, %v5832_v50  ;;  %v2827_v47 = vmax.f32 %v2571_v54, %v5833_v56  ;;  %v2060_v63 = vmax.f32 %v1804_v1, %v5817_v57  ;;  %v8166_v17 = vmax.f32 %v1298_v42, %v5117_v3  ;;  %v8177_v24 = vpop.f32.mrb[33].mxu0 }
 0x259   :  { %v5841_v23 = vpop.permute.xlu1 %5840  ;;  %v8168_v55 = vmax.f32 %v1299_v46, %v5118_v32  ;;  %v5268_v51 = vunpack.i.h.bf16 %v9450_v41  ;;  %v5267_v19 = vunpack.i.l.bf16 %v9450_v41  ;;  %v5273_v29 = vunpack.i.h.bf16 %v9451_v15  ;;  %v8187_v1 = vpop.f32.mrb[34].mxu0 }
 0x25a   :  { %v5836_v31 = vpop.permute.xlu0 %5835  ;;  %v5843_v21 = vunpack.i.h.bf16 %v5841_v23  ;;  %v5842_v20 = vunpack.i.l.bf16 %v5841_v23  ;;  %4613 = vmatprep.mubr.msk.f32.mxu1 %vm2839_vm3, %v2826_v4  ;;  %v5272_v2 = vunpack.i.l.bf16 %v9451_v15  ;;  %v2316_v45 = vmax.f32 %v2060_v63, %v5827_v58 }
 0x25b   :  { %4614 = vmatmul.mubr.msk.f32.gmra.mrb[52].mxu1 %vm2839_vm3, %v2827_v47  ;;  %v2317_v57 = vmax.f32 %v2061_v0, %v5828_v35  ;;  %v5838_v42 = vunpack.i.h.bf16 %v5836_v31  ;;  %v5837_v33 = vunpack.i.l.bf16 %v5836_v31  ;;  %v8181_v46 = vadd.f32 %v8163_v13, %v7775_v18  ;;  %v8192_v18 = vpop.f32.mrb[35].mxu0 }
 0x25c   :  { %v8185_v43 = vadd.f32 %v8163_v13, %v7784_v14  ;;  %v2572_v50 = vmax.f32 %v2316_v45, %v5842_v20  ;;  %v1806_v7 = vmax.f32 %v1550_v28, %v5267_v19  ;;  %v1807_v4 = vmax.f32 %v1551_v40, %v5268_v51 }
 0x25d   :  { %v5851_v54 = vpop.permute.xlu1 %5850  ;;  %v2573_v8 = vmax.f32 %v2317_v57, %v5843_v21  ;;  %v5282_v47 = vunpack.i.l.bf16 %v7442_v39  ;;  %v1808_v15 = vmax.f32 %v8143_v52, %v5272_v2  ;;  %v1809_v45 = vmax.f32 %v8146_v36, %v5273_v29 }
 0x25e   :  { %v5846_v56 = vpop.permute.xlu0 %5845  ;;  %v5853_v32 = vunpack.i.h.bf16 %v5851_v54  ;;  %v5852_v3 = vunpack.i.l.bf16 %v5851_v54  ;;  %v8190_v35 = vpop.f32.mrb[0].mxu1  ;;  %v2062_v20 = vmax.f32 %v1806_v7, %v5837_v33  ;;  %v2063_v41 = vmax.f32 %v1807_v4, %v5838_v42 }
 0x25f   :  { %v5848_v23 = vunpack.i.h.bf16 %v5846_v56  ;;  %v5847_v31 = vunpack.i.l.bf16 %v5846_v56  ;;  %v8194_v0 = vpop.f32.mrb[1].mxu1  ;;  %v3422_v63 = vmax.f32 %v8190_v35, %v8185_v43  ;;  %vm3551_vm5 = vcmp.gt.f32.partialorder %v8185_v43, %v8190_v35 }
 0x260   :  { %v2828_v58 = vmax.f32 %v2572_v50, %v5852_v3  ;;  %v2829_v14 = vmax.f32 %v2573_v8, %v5853_v32  ;;  %v3421_v28 = vmax.f32 %v8194_v0, %v8181_v46  ;;  %vm3550_vm6 = vcmp.gt.f32.partialorder %v8181_v46, %v8194_v0 }
 0x261   :  { %v5861_v40 = vpop.permute.xlu1 %5860  ;;  %v5283_v57 = vunpack.i.h.bf16 %v7442_v39  ;;  %v5278_v54 = vunpack.i.h.bf16 %v7444_v38  ;;  %3487 = vst.msk [vmem:[%s8819_s4 + $0x8] sm:$0xff] %vm3485_vm4, %v3422_v63  ;;  %v2318_v42 = vmax.f32 %v2062_v20, %v5847_v31  ;;  %v2319_v52 = vmax.f32 %v2063_v41, %v5848_v23 }
 0x262   :  { %v5856_v21 = vpop.permute.xlu0 %5855  ;;  %v5863_v51 = vunpack.i.h.bf16 %v5861_v40  ;;  %v5862_v19 = vunpack.i.l.bf16 %v5861_v40  ;;  %4616 = vmatprep.mubr.msk.f32.mxu1 %vm2839_vm3, %v2828_v58  ;;  %3486 = vst.msk [vmem:[%s8819_s4] sm:$0xff] %vm3485_vm4, %v3421_v28  ;;  %v8219_v39 = vmax.f32 %v8155_v30, %v5282_v47  ;;  %v5277_v29 = vunpack.i.l.bf16 %v7444_v38 }
 0x263   :  { %4617 = vmatmul.mubr.msk.f32.gmra.mrb[54].mxu1 %vm2839_vm3, %v2829_v14  ;;  %v5858_v2 = vunpack.i.h.bf16 %v5856_v21  ;;  %v5857_v36 = vunpack.i.l.bf16 %v5856_v21  ;;  %v8224_v33 = vadd.f32 %v7773_v34, %v8163_v13  ;;  %v8228_v56 = vadd.f32 %v7782_v60, %v8163_v13 }
 0x264   :  { %v2574_v32 = vmax.f32 %v2318_v42, %v5862_v19  ;;  %v2575_v3 = vmax.f32 %v2319_v52, %v5863_v51  ;;  %v8231_v58 = vmax.f32 %v8158_v22, %v5283_v57  ;;  %v1810_v21 = vmax.f32 %v8166_v17, %v5277_v29 }
 0x265   :  { %v5871_v50 = vpop.permute.xlu1 %5870  ;;  %v2065_v14 = vmax.f32 %v1809_v45, %v5858_v2  ;;  %v2064_v34 = vmax.f32 %v1808_v15, %v5857_v36  ;;  %v1811_v20 = vmax.f32 %v8168_v55, %v5278_v54  ;;  %v6032_v55 = vmov 0  }
 0x266   :  { %v5866_v8 = vpop.permute.xlu0 %5865  ;;  %v5873_v7 = vunpack.i.h.bf16 %v5871_v50  ;;  %v5872_v4 = vunpack.i.l.bf16 %v5871_v50  ;;  %v8233_v38 = vpop.f32.mrb[2].mxu1  ;;  %v4002_v57 = vsel %vm3551_vm5, 1, %v6032_v55  ;;  %v4001_v54 = vsel %vm3550_vm6, 1, %v6032_v55 }
 0x267   :  { %v5868_v30 = vunpack.i.h.bf16 %v5866_v8  ;;  %v5867_v47 = vunpack.i.l.bf16 %v5866_v8  ;;  %v8235_v63 = vpop.f32.mrb[3].mxu1  ;;  %v3424_v60 = vmax.f32 %v8233_v38, %v8228_v56  ;;  %vm3553_vm7 = vcmp.gt.f32.partialorder %v8228_v56, %v8233_v38  ;;  %v8269_v2 = vpop.f32.mrb[36].mxu0 }
 0x268   :  { %v2830_v23 = vmax.f32 %v2574_v32, %v5872_v4  ;;  %v2831_v31 = vmax.f32 %v2575_v3, %v5873_v7  ;;  %v3423_v22 = vmax.f32 %v8235_v63, %v8224_v33  ;;  %vm3552_vm8 = vcmp.gt.f32.partialorder %v8224_v33, %v8235_v63  ;;  %v8271_v46 = vpop.f32.mrb[37].mxu0 }
 0x269   :  { %v5881_v28 = vpop.permute.xlu1 %5880  ;;  %v2320_v19 = vmax.f32 %v2064_v34, %v5867_v47  ;;  %v2321_v15 = vmax.f32 %v2065_v14, %v5868_v30  ;;  %3489 = vst.msk [vmem:[%s8819_s4 + $0x18] sm:$0xff] %vm3485_vm4, %v3424_v60  ;;  %v424_v42 = vadd.f32 %v8163_v13, %v7829_v48  ;;  %v427_v52 = vadd.f32 %v8163_v13, %v7838_v10  ;;  %v8281_v14 = vpop.f32.mrb[38].mxu0 }
 0x26a   :  { %v5876_v40 = vpop.permute.xlu0 %5875  ;;  %v5883_v41 = vunpack.i.h.bf16 %v5881_v28  ;;  %v5882_v51 = vunpack.i.l.bf16 %v5881_v28  ;;  %4619 = vmatprep.mubr.msk.f32.mxu1 %vm2839_vm3, %v2830_v23  ;;  %3488 = vst.msk [vmem:[%s8819_s4 + $0x10] sm:$0xff] %vm3485_vm4, %v3423_v22  ;;  %v4066_v0 = vsel %vm3485_vm4, %v4002_v57, 0  ;;  %v4065_v48 = vsel %vm3485_vm4, %v4001_v54, 0  ;;  %v8283_v28 = vpop.f32.mrb[39].mxu0 }
 0x26b   :  { %v5878_v45 = vunpack.i.h.bf16 %v5876_v40  ;;  %v5877_v17 = vunpack.i.l.bf16 %v5876_v40  ;;  %4620 = vmatmul.mubr.msk.f32.gmra.mrb[56].mxu1 %vm2839_vm3, %v2831_v31  ;;  %v8277_v10 = vadd.f32 %v7827_v59, %v8163_v13  ;;  %v435_v30 = vadd.f32 %v7836_v53, %v8163_v13 }
 0x26c   :  { %v2576_v36 = vmax.f32 %v2320_v19, %v5882_v51  ;;  %v2577_v29 = vmax.f32 %v2321_v15, %v5883_v41  ;;  %v4004_v54 = vsel %vm3553_vm7, 1, %v6032_v55 }
 0x26d   :  { %v2066_v50 = vmax.f32 %v1810_v21, %v5877_v17  ;;  %v2067_v8 = vmax.f32 %v1811_v20, %v5878_v45  ;;  %v5891_v32 = vpop.permute.xlu1 %5890 }
 0x26e   :  { %v5886_v43 = vpop.permute.xlu0 %5885  ;;  %v5893_v35 = vunpack.i.h.bf16 %v5891_v32  ;;  %v5892_v3 = vunpack.i.l.bf16 %v5891_v32  ;;  %v4543_v47 = vpop.f32.mrb[4].mxu1 }
 0x26f   :  { %v5888_v7 = vunpack.i.h.bf16 %v5886_v43  ;;  %v5887_v4 = vunpack.i.l.bf16 %v5886_v43  ;;  %v3122_v22 = vpop.f32.mrb[5].mxu1  ;;  %v3426_v40 = vmax.f32 %v4543_v47, %v427_v52  ;;  %vm3555_vm9 = vcmp.gt.f32.partialorder %v427_v52, %v4543_v47 }
 0x270   :  { %v2832_v34 = vmax.f32 %v2576_v36, %v5892_v3  ;;  %v2833_v23 = vmax.f32 %v2577_v29, %v5893_v35  ;;  %v3425_v21 = vmax.f32 %v3122_v22, %v424_v42  ;;  %vm3554_vm10 = vcmp.gt.f32.partialorder %v424_v42, %v3122_v22 }
 0x271   :  { %v2322_v31 = vmax.f32 %v2066_v50, %v5887_v4  ;;  %v2323_v60 = vmax.f32 %v2067_v8, %v5888_v7  ;;  %v5901_v20 = vpop.permute.xlu1 %5900  ;;  %v4006_v41 = vsel %vm3555_vm9, 1, %v6032_v55  ;;  %v4005_v53 = vsel %vm3554_vm10, 1, %v6032_v55  ;;  %3491 = vst.msk [vmem:[%s8819_s4 + $0x28] sm:$0xff] %vm3485_vm4, %v3426_v40 }
 0x272   :  { %v5896_v59 = vpop.permute.xlu0 %5895  ;;  %v5903_v51 = vunpack.i.h.bf16 %v5901_v20  ;;  %v5902_v19 = vunpack.i.l.bf16 %v5901_v20  ;;  %4622 = vmatprep.mubr.msk.f32.mxu1 %vm2839_vm3, %v2832_v34  ;;  %v4071_v15 = vsel %vm3485_vm4, %v4006_v41, 0  ;;  %3490 = vst.msk [vmem:[%s8819_s4 + $0x20] sm:$0xff] %vm3485_vm4, %v3425_v21  ;;  %v4069_v45 = vsel %vm3485_vm4, %v4005_v53, 0 }
 0x273   :  { %v5898_v17 = vunpack.i.h.bf16 %v5896_v59  ;;  %v5897_v57 = vunpack.i.l.bf16 %v5896_v59  ;;  %4623 = vmatmul.mubr.msk.f32.gmra.mrb[58].mxu1 %vm2839_vm3, %v2833_v23  ;;  %v4003_v42 = vsel %vm3552_vm8, 1, %v6032_v55  ;;  %v4072_v52 = vadd.s32 %v4071_v15, %v4066_v0 }
 0x274   :  { %v8307_v36 = vadd.s32 %v4069_v45, %v4065_v48  ;;  %v2578_v29 = vmax.f32 %v2322_v31, %v5902_v19  ;;  %v2579_v50 = vmax.f32 %v2323_v60, %v5903_v51  ;;  %v4068_v4 = vsel %vm3485_vm4, %v4004_v54, 0  ;;  %v8331_v45 = vpop.f32.mrb[40].mxu0 }
 0x275   :  { %v2069_v8 = vmax.f32 %v8231_v58, %v5898_v17  ;;  %v2068_v32 = vmax.f32 %v8219_v39, %v5897_v57  ;;  %v5911_v43 = vpop.permute.xlu1 %5910  ;;  %v4067_v33 = vsel %vm3485_vm4, %v4003_v42, 0  ;;  %v443_v0 = vadd.f32 %v8163_v13, %v7890_v11  ;;  %v8335_v57 = vpop.f32.mrb[41].mxu0 }
 0x276   :  { %v5906_v35 = vpop.permute.xlu0 %5905  ;;  %v5913_v3 = vunpack.i.h.bf16 %v5911_v43  ;;  %v5912_v7 = vunpack.i.l.bf16 %v5911_v43  ;;  %v4546_v63 = vpop.f32.mrb[6].mxu1  ;;  %v440_v17 = vadd.f32 %v8163_v13, %v7881_v62 }
 0x277   :  { %v5908_v56 = vunpack.i.h.bf16 %v5906_v35  ;;  %v5907_v38 = vunpack.i.l.bf16 %v5906_v35  ;;  %v3132_v23 = vpop.f32.mrb[7].mxu1  ;;  %v3428_v39 = vmax.f32 %v4546_v63, %v435_v30  ;;  %vm3557_vm11 = vcmp.gt.f32.partialorder %v435_v30, %v4546_v63 }
 0x278   :  { %v2834_v48 = vmax.f32 %v2578_v29, %v5912_v7  ;;  %v2835_v47 = vmax.f32 %v2579_v50, %v5913_v3  ;;  %v3427_v31 = vmax.f32 %v3132_v23, %v8277_v10  ;;  %vm3556_vm12 = vcmp.gt.f32.partialorder %v8277_v10, %v3132_v23  ;;  %v8337_v29 = vpop.f32.mrb[42].mxu0 }
 0x279   :  { %v2324_v34 = vmax.f32 %v2068_v32, %v5907_v38  ;;  %v2325_v58 = vmax.f32 %v2069_v8, %v5908_v56  ;;  %v5921_v22 = vpop.permute.xlu1 %5920  ;;  %v4008_v40 = vsel %vm3557_vm11, 1, %v6032_v55  ;;  %v4007_v21 = vsel %vm3556_vm12, 1, %v6032_v55  ;;  %3493 = vst.msk [vmem:[%s8819_s4 + $0x38] sm:$0xff] %vm3485_vm4, %v3428_v39  ;;  %v8339_v8 = vpop.f32.mrb[43].mxu0 }
 0x27a   :  { %v5916_v60 = vpop.permute.xlu0 %5915  ;;  %4625 = vmatprep.mubr.msk.f32.mxu1 %vm2839_vm3, %v2834_v48  ;;  %v4075_v11 = vsel %vm3485_vm4, %v4008_v40, 0  ;;  %3492 = vst.msk [vmem:[%s8819_s4 + $0x30] sm:$0xff] %vm3485_vm4, %v3427_v31  ;;  %v4073_v10 = vsel %vm3485_vm4, %v4007_v21, 0  ;;  %v5923_v30 = vunpack.i.h.bf16 %v5921_v22  ;;  %v5922_v41 = vunpack.i.l.bf16 %v5921_v22 }
 0x27b   :  { %v5918_v20 = vunpack.i.h.bf16 %v5916_v60  ;;  %v5917_v59 = vunpack.i.l.bf16 %v5916_v60  ;;  %4626 = vmatmul.mubr.msk.f32.gmra.mrb[60].mxu1 %vm2839_vm3, %v2835_v47  ;;  %v4076_v53 = vadd.s32 %v4075_v11, %v4068_v4  ;;  %v4074_v51 = vadd.s32 %v4073_v10, %v4067_v33  ;;  %v9452_v60 = vld [vmem:[#allocation50_spill] sm:$0xff] }
 0x27c   :  { %v451_v4 = vadd.f32 %v7888_v37, %v8163_v13  ;;  %v448_v63 = vadd.f32 %v7879_v44, %v8163_v13  ;;  %v459_v39 = vadd.f32 %v8163_v13, %v7940_v9  ;;  %v456_v22 = vadd.f32 %v8163_v13, %v9452_v60 }
 0x27d   :  { %v2580_v19 = vmax.f32 %v2324_v34, %v5917_v59  ;;  %v2581_v15 = vmax.f32 %v2325_v58, %v5918_v20 }
 0x27e   :  { %v4549_v50 = vpop.f32.mrb[8].mxu1 }
 0x27f   :  { %v2836_v54 = vmax.f32 %v2580_v19, %v5922_v41  ;;  %v2837_v42 = vmax.f32 %v2581_v15, %v5923_v30  ;;  %v3430_v32 = vmax.f32 %v4549_v50, %v443_v0  ;;  %vm3559_vm13 = vcmp.gt.f32.partialorder %v443_v0, %v4549_v50  ;;  %v3142_v43 = vpop.f32.mrb[9].mxu1  ;;  %v9453_v15 = vld [vmem:[#allocation24_spill] sm:$0xff] }
 0x280   :  { %v4010_v35 = vsel %vm3559_vm13, 1, %v6032_v55  ;;  %v3429_v3 = vmax.f32 %v3142_v43, %v440_v17  ;;  %vm3558_vm14 = vcmp.gt.f32.partialorder %v440_v17, %v3142_v43  ;;  %v467_v17 = vadd.f32 %v9453_v15, %v8163_v13 }
 0x281   :  { %4628 = vmatprep.mubr.msk.f32.mxu1 %vm2839_vm3, %v2836_v54  ;;  %3495 = vst.msk [vmem:[%s8819_s4 + $0x48] sm:$0xff] %vm3485_vm4, %v3430_v32  ;;  %v4079_v62 = vsel %vm3485_vm4, %v4010_v35, 0  ;;  %v4009_v7 = vsel %vm3558_vm14, 1, %v6032_v55 }
 0x282   :  { %4629 = vmatmul.mubr.msk.f32.gmra.mrb[62].mxu1 %vm2839_vm3, %v2837_v42  ;;  %v4080_v56 = vadd.s32 %v4079_v62, %v4072_v52  ;;  %3494 = vst.msk [vmem:[%s8819_s4 + $0x40] sm:$0xff] %vm3485_vm4, %v3429_v3  ;;  %v4077_v38 = vsel %vm3485_vm4, %v4009_v7, 0  ;;  %v9454_v42 = vld [vmem:[#allocation57_spill] sm:$0xff] }
 0x283   :  { %v4078_v33 = vadd.s32 %v4077_v38, %v8307_v36  ;;  %v464_v50 = vadd.f32 %v9454_v42, %v8163_v13 }
 0x284   :  { %v8374_v31 = vpop.f32.mrb[44].mxu0 }
 0x285   :  { %v8378_v40 = vpop.f32.mrb[45].mxu0 }
 0x286   :  { %v4552_v0 = vpop.f32.mrb[10].mxu1  ;;  %v8380_v21 = vpop.f32.mrb[46].mxu0 }
 0x287   :  { %v3432_v48 = vmax.f32 %v4552_v0, %v451_v4  ;;  %vm3561_vm15 = vcmp.gt.f32.partialorder %v451_v4, %v4552_v0  ;;  %v3152_v47 = vpop.f32.mrb[11].mxu1  ;;  %v8382_v59 = vpop.f32.mrb[47].mxu0 }
 0x288   :  { %v4012_v52 = vsel %vm3561_vm15, 1, %v6032_v55  ;;  %v3431_v34 = vmax.f32 %v3152_v47, %v448_v63  ;;  %vm3560_vm0 = vcmp.gt.f32.partialorder %v448_v63, %v3152_v47  ;;  %v9455_v47 = vld [vmem:[#allocation61_spill] sm:$0xff] }
 0x289   :  { %3497 = vst.msk [vmem:[%s8819_s4 + $0x58] sm:$0xff] %vm3485_vm4, %v3432_v48  ;;  %v4083_v37 = vsel %vm3485_vm4, %v4012_v52, 0  ;;  %v4011_v36 = vsel %vm3560_vm0, 1, %v6032_v55  ;;  %v475_v52 = vadd.f32 %v8163_v13, %v9455_v47 }
 0x28a   :  { %v4084_v58 = vadd.s32 %v4083_v37, %v4076_v53  ;;  %3496 = vst.msk [vmem:[%s8819_s4 + $0x50] sm:$0xff] %vm3485_vm4, %v3431_v34  ;;  %v4081_v44 = vsel %vm3485_vm4, %v4011_v36, 0  ;;  %v9456_v37 = vld [vmem:[#allocation59_spill] sm:$0xff] }
 0x28b   :  { %v4082_v23 = vadd.s32 %v4081_v44, %v4074_v51  ;;  %v472_v36 = vadd.f32 %v8163_v13, %v9456_v37 }
 0x28d   :  { %v8401_v7 = vpop.f32.mrb[48].mxu0 }
 0x28e   :  { %v4555_v20 = vpop.f32.mrb[12].mxu1  ;;  %v8409_v4 = vpop.f32.mrb[49].mxu0 }
 0x28f   :  { %v3434_v11 = vmax.f32 %v4555_v20, %v459_v39  ;;  %vm3563_vm1 = vcmp.gt.f32.partialorder %v459_v39, %v4555_v20  ;;  %v3162_v10 = vpop.f32.mrb[13].mxu1  ;;  %v8416_v0 = vpop.f32.mrb[50].mxu0 }
 0x290   :  { %v4014_v30 = vsel %vm3563_vm1, 1, %v6032_v55  ;;  %v3433_v41 = vmax.f32 %v3162_v10, %v456_v22  ;;  %vm3562_vm2 = vcmp.gt.f32.partialorder %v456_v22, %v3162_v10  ;;  %v8420_v34 = vpop.f32.mrb[51].mxu0 }
 0x291   :  { %3499 = vst.msk [vmem:[%s8819_s4 + $0x68] sm:$0xff] %vm3485_vm4, %v3434_v11  ;;  %v4087_v9 = vsel %vm3485_vm4, %v4014_v30, 0  ;;  %v4013_v53 = vsel %vm3562_vm2, 1, %v6032_v55  ;;  %v9457_v30 = vld [vmem:[#allocation60_spill] sm:$0xff] }
 0x292   :  { %v4088_v51 = vadd.s32 %v4087_v9, %v4080_v56  ;;  %3498 = vst.msk [vmem:[%s8819_s4 + $0x60] sm:$0xff] %vm3485_vm4, %v3433_v41  ;;  %v4085_v19 = vsel %vm3485_vm4, %v4013_v53, 0  ;;  %v483_v41 = vadd.f32 %v9457_v30, %v8163_v13  ;;  %v9458_v53 = vld [vmem:[#allocation58_spill] sm:$0xff] }
 0x293   :  { %v4086_v54 = vadd.s32 %v4085_v19, %v4078_v33  ;;  %v480_v19 = vadd.f32 %v9458_v53, %v8163_v13  ;;  %v9462_v53 = vld [vmem:[#allocation62_spill] sm:$0xff] }
 0x296   :  { %v4558_v32 = vpop.f32.mrb[14].mxu1 }
 0x297   :  { %v3436_v43 = vmax.f32 %v4558_v32, %v467_v17  ;;  %vm3565_vm3 = vcmp.gt.f32.partialorder %v467_v17, %v4558_v32  ;;  %v3172_v35 = vpop.f32.mrb[15].mxu1 }
 0x298   :  { %v4016_v3 = vsel %vm3565_vm3, 1, %v6032_v55  ;;  %v3435_v62 = vmax.f32 %v3172_v35, %v464_v50  ;;  %vm3564_vm5 = vcmp.gt.f32.partialorder %v464_v50, %v3172_v35 }
 0x299   :  { %3501 = vst.msk [vmem:[%s8819_s4 + $0x78] sm:$0xff] %vm3485_vm4, %v3436_v43  ;;  %v4091_v56 = vsel %vm3485_vm4, %v4016_v3, 0  ;;  %v4015_v38 = vsel %vm3564_vm5, 1, %v6032_v55 }
 0x29a   :  { %v4092_v33 = vadd.s32 %v4091_v56, %v4084_v58  ;;  %3500 = vst.msk [vmem:[%s8819_s4 + $0x70] sm:$0xff] %vm3485_vm4, %v3435_v62  ;;  %v4089_v63 = vsel %vm3485_vm4, %v4015_v38, 0  ;;  %v9459_v62 = vld [vmem:[#allocation15_spill] sm:$0xff] }
 0x29b   :  { %v4090_v48 = vadd.s32 %v4089_v63, %v4082_v23  ;;  %v491_v56 = vadd.f32 %v8163_v13, %v9459_v62  ;;  %v9460_v63 = vld [vmem:[#allocation63_spill] sm:$0xff]  ;;  %v507_v62 = vadd.f32 %v8163_v13, %v8074_v27 }
 0x29c   :  { %v488_v47 = vadd.f32 %v8163_v13, %v9460_v63  ;;  %v504_v63 = vadd.f32 %v8163_v13, %v8066_v6 }
 0x29e   :  { %v4561_v44 = vpop.f32.mrb[16].mxu1 }
 0x29f   :  { %v3438_v58 = vmax.f32 %v4561_v44, %v475_v52  ;;  %vm3567_vm6 = vcmp.gt.f32.partialorder %v475_v52, %v4561_v44  ;;  %v3182_v39 = vpop.f32.mrb[17].mxu1 }
 0x2a0   :  { %v4018_v60 = vsel %vm3567_vm6, 1, %v6032_v55  ;;  %v3437_v22 = vmax.f32 %v3182_v39, %v472_v36  ;;  %vm3566_vm7 = vcmp.gt.f32.partialorder %v472_v36, %v3182_v39 }
 0x2a1   :  { %3503 = vst.msk [vmem:[%s8819_s4 + $0x88] sm:$0xff] %vm3485_vm4, %v3438_v58  ;;  %v4095_v23 = vsel %vm3485_vm4, %v4018_v60, 0  ;;  %v4017_v20 = vsel %vm3566_vm7, 1, %v6032_v55 }
 0x2a2   :  { %v4096_v11 = vadd.s32 %v4095_v23, %v4088_v51  ;;  %3502 = vst.msk [vmem:[%s8819_s4 + $0x80] sm:$0xff] %vm3485_vm4, %v3437_v22  ;;  %v4093_v10 = vsel %vm3485_vm4, %v4017_v20, 0  ;;  %v8454_v38 = vpop.f32.mrb[52].mxu0 }
 0x2a3   :  { %v4094_v9 = vadd.s32 %v4093_v10, %v4086_v54  ;;  %v8458_v52 = vpop.f32.mrb[53].mxu0  ;;  %v9461_v10 = vld [vmem:[#allocation87_spill] sm:$0xff] }
 0x2a4   :  { %v8460_v37 = vpop.f32.mrb[54].mxu0  ;;  %v499_v30 = vadd.f32 %v9461_v10, %v8163_v13 }
 0x2a5   :  { %v8462_v36 = vpop.f32.mrb[55].mxu0 }
 0x2a6   :  { %v4564_v15 = vpop.f32.mrb[18].mxu1 }
 0x2a7   :  { %v3440_v17 = vmax.f32 %v4564_v15, %v483_v41  ;;  %vm3569_vm8 = vcmp.gt.f32.partialorder %v483_v41, %v4564_v15  ;;  %v3192_v42 = vpop.f32.mrb[19].mxu1 }
 0x2a8   :  { %v4020_v51 = vsel %vm3569_vm8, 1, %v6032_v55  ;;  %v3439_v50 = vmax.f32 %v3192_v42, %v480_v19  ;;  %vm3568_vm9 = vcmp.gt.f32.partialorder %v480_v19, %v3192_v42  ;;  %v496_v19 = vadd.f32 %v9462_v53, %v8163_v13 }
 0x2a9   :  { %3505 = vst.msk [vmem:[%s8819_s4 + $0x98] sm:$0xff] %vm3485_vm4, %v3440_v17  ;;  %v4099_v32 = vsel %vm3485_vm4, %v4020_v51, 0  ;;  %v4019_v54 = vsel %vm3568_vm9, 1, %v6032_v55 }
 0x2aa   :  { %v4100_v43 = vadd.s32 %v4099_v32, %v4092_v33  ;;  %3504 = vst.msk [vmem:[%s8819_s4 + $0x90] sm:$0xff] %vm3485_vm4, %v3439_v50  ;;  %v4097_v35 = vsel %vm3485_vm4, %v4019_v54, 0 }
 0x2ab   :  { %v4098_v3 = vadd.s32 %v4097_v35, %v4090_v48 }
 0x2ae   :  { %v4567_v33 = vpop.f32.mrb[20].mxu1 }
 0x2af   :  { %v3442_v44 = vmax.f32 %v4567_v33, %v491_v56  ;;  %vm3571_vm10 = vcmp.gt.f32.partialorder %v491_v56, %v4567_v33  ;;  %v3202_v58 = vpop.f32.mrb[21].mxu1 }
 0x2b0   :  { %v4022_v48 = vsel %vm3571_vm10, 1, %v6032_v55  ;;  %v3441_v39 = vmax.f32 %v3202_v58, %v488_v47  ;;  %vm3570_vm11 = vcmp.gt.f32.partialorder %v488_v47, %v3202_v58 }
 0x2b1   :  { %3507 = vst.msk [vmem:[%s8819_s4 + $0xa8] sm:$0xff] %vm3485_vm4, %v3442_v44  ;;  %v4103_v60 = vsel %vm3485_vm4, %v4022_v48, 0  ;;  %v4021_v22 = vsel %vm3570_vm11, 1, %v6032_v55 }
 0x2b2   :  { %v4104_v23 = vadd.s32 %v4103_v60, %v4096_v11  ;;  %3506 = vst.msk [vmem:[%s8819_s4 + $0xa0] sm:$0xff] %vm3485_vm4, %v3441_v39  ;;  %v4101_v20 = vsel %vm3485_vm4, %v4021_v22, 0 }
 0x2b3   :  { %v4102_v41 = vadd.s32 %v4101_v20, %v4094_v9  ;;  %v515_v20 = vadd.f32 %v8070_v12, %v8163_v13 }
 0x2b5   :  { %v8494_v56 = vpop.f32.mrb[56].mxu0 }
 0x2b6   :  { %v4570_v15 = vpop.f32.mrb[22].mxu1  ;;  %v8498_v47 = vpop.f32.mrb[57].mxu0 }
 0x2b7   :  { %v3444_v17 = vmax.f32 %v4570_v15, %v499_v30  ;;  %vm3573_vm12 = vcmp.gt.f32.partialorder %v499_v30, %v4570_v15  ;;  %v3212_v42 = vpop.f32.mrb[23].mxu1  ;;  %v8500_v33 = vpop.f32.mrb[58].mxu0  ;;  %v512_v30 = vadd.f32 %v8064_v5, %v8163_v13 }
 0x2b8   :  { %v4024_v11 = vsel %vm3573_vm12, 1, %v6032_v55  ;;  %v3443_v51 = vmax.f32 %v3212_v42, %v496_v19  ;;  %vm3572_vm13 = vcmp.gt.f32.partialorder %v496_v19, %v3212_v42  ;;  %v8502_v44 = vpop.f32.mrb[59].mxu0 }
 0x2b9   :  { %3509 = vst.msk [vmem:[%s8819_s4 + $0xb8] sm:$0xff] %vm3485_vm4, %v3444_v17  ;;  %v4107_v50 = vsel %vm3485_vm4, %v4024_v11, 0  ;;  %v4023_v9 = vsel %vm3572_vm13, 1, %v6032_v55 }
 0x2ba   :  { %v4108_v32 = vadd.s32 %v4107_v50, %v4100_v43  ;;  %3508 = vst.msk [vmem:[%s8819_s4 + $0xb0] sm:$0xff] %vm3485_vm4, %v3443_v51  ;;  %v4105_v54 = vsel %vm3485_vm4, %v4023_v9, 0  ;;  %v523_v51 = vadd.f32 %v8163_v13, %v8130_v26  ;;  %v520_v9 = vadd.f32 %v8163_v13, %v8124_v25 }
 0x2bb   :  { %v4106_v35 = vadd.s32 %v4105_v54, %v4098_v3 }
 0x2bd   :  { %v8534_v50 = vpop.f32.mrb[60].mxu0 }
 0x2be   :  { %v4573_v43 = vpop.f32.mrb[24].mxu1  ;;  %v8538_v54 = vpop.f32.mrb[61].mxu0 }
 0x2bf   :  { %v3446_v58 = vmax.f32 %v4573_v43, %v507_v62  ;;  %vm3575_vm14 = vcmp.gt.f32.partialorder %v507_v62, %v4573_v43  ;;  %v3222_v48 = vpop.f32.mrb[25].mxu1  ;;  %v8540_v62 = vpop.f32.mrb[62].mxu0 }
 0x2c0   :  { %v4026_v3 = vsel %vm3575_vm14, 1, %v6032_v55  ;;  %v3445_v39 = vmax.f32 %v3222_v48, %v504_v63  ;;  %vm3574_vm15 = vcmp.gt.f32.partialorder %v504_v63, %v3222_v48  ;;  %v8542_v63 = vpop.f32.mrb[63].mxu0 }
 0x2c1   :  { %3511 = vst.msk [vmem:[%s8819_s4 + $0xc8] sm:$0xff] %vm3485_vm4, %v3446_v58  ;;  %v4111_v6 = vsel %vm3485_vm4, %v4026_v3, 0  ;;  %v4025_v27 = vsel %vm3574_vm15, 1, %v6032_v55 }
 0x2c2   :  { %v4112_v60 = vadd.s32 %v4111_v6, %v4104_v23  ;;  %3510 = vst.msk [vmem:[%s8819_s4 + $0xc0] sm:$0xff] %vm3485_vm4, %v3445_v39  ;;  %v4109_v22 = vsel %vm3485_vm4, %v4025_v27, 0  ;;  %v531_v6 = vadd.f32 %v8128_v16, %v8163_v13 }
 0x2c3   :  { %v4110_v10 = vadd.s32 %v4109_v22, %v4102_v41  ;;  %v528_v22 = vadd.f32 %v8122_v49, %v8163_v13 }
 0x2c6   :  { %v4576_v53 = vpop.f32.mrb[26].mxu1 }
 0x2c7   :  { %v3448_v19 = vmax.f32 %v4576_v53, %v515_v20  ;;  %vm3577_vm0 = vcmp.gt.f32.partialorder %v515_v20, %v4576_v53  ;;  %v3232_v15 = vpop.f32.mrb[27].mxu1 }
 0x2c8   :  { %v4028_v23 = vsel %vm3577_vm0, 1, %v6032_v55  ;;  %v3447_v17 = vmax.f32 %v3232_v15, %v512_v30  ;;  %vm3576_vm1 = vcmp.gt.f32.partialorder %v512_v30, %v3232_v15 }
 0x2c9   :  { %3513 = vst.msk [vmem:[%s8819_s4 + $0xd8] sm:$0xff] %vm3485_vm4, %v3448_v19  ;;  %v4115_v42 = vsel %vm3485_vm4, %v4028_v23, 0  ;;  %v4027_v12 = vsel %vm3576_vm1, 1, %v6032_v55  ;;  %v539_v23 = vadd.f32 %v8163_v13, %v8192_v18 }
 0x2ca   :  { %v4116_v41 = vadd.s32 %v4115_v42, %v4108_v32  ;;  %3512 = vst.msk [vmem:[%s8819_s4 + $0xd0] sm:$0xff] %vm3485_vm4, %v3447_v17  ;;  %v4113_v5 = vsel %vm3485_vm4, %v4027_v12, 0  ;;  %v536_v42 = vadd.f32 %v8163_v13, %v8177_v24 }
 0x2cb   :  { %v4114_v11 = vadd.s32 %v4113_v5, %v4106_v35 }
 0x2ce   :  { %v4579_v32 = vpop.f32.mrb[28].mxu1 }
 0x2cf   :  { %v3450_v43 = vmax.f32 %v4579_v32, %v523_v51  ;;  %vm3579_vm2 = vcmp.gt.f32.partialorder %v523_v51, %v4579_v32  ;;  %v3242_v58 = vpop.f32.mrb[29].mxu1 }
 0x2d0   :  { %v4030_v35 = vsel %vm3579_vm2, 1, %v6032_v55  ;;  %v3449_v48 = vmax.f32 %v3242_v58, %v520_v9  ;;  %vm3578_vm3 = vcmp.gt.f32.partialorder %v520_v9, %v3242_v58 }
 0x2d1   :  { %3515 = vst.msk [vmem:[%s8819_s4 + $0xe8] sm:$0xff] %vm3485_vm4, %v3450_v43  ;;  %v4119_v25 = vsel %vm3485_vm4, %v4030_v35, 0  ;;  %v4029_v26 = vsel %vm3578_vm3, 1, %v6032_v55  ;;  %v547_v43 = vadd.f32 %v8187_v1, %v8163_v13  ;;  %v544_v35 = vadd.f32 %v8173_v61, %v8163_v13 }
 0x2d2   :  { %v4120_v3 = vadd.s32 %v4119_v25, %v4112_v60  ;;  %3514 = vst.msk [vmem:[%s8819_s4 + $0xe0] sm:$0xff] %vm3485_vm4, %v3449_v48  ;;  %v4117_v39 = vsel %vm3485_vm4, %v4029_v26, 0 }
 0x2d3   :  { %v4118_v27 = vadd.s32 %v4117_v39, %v4110_v10 }
 0x2d6   :  { %v4582_v20 = vpop.f32.mrb[30].mxu1 }
 0x2d7   :  { %v3452_v30 = vmax.f32 %v4582_v20, %v531_v6  ;;  %vm3581_vm5 = vcmp.gt.f32.partialorder %v531_v6, %v4582_v20  ;;  %v3252_v53 = vpop.f32.mrb[31].mxu1  ;;  %v555_v20 = vadd.f32 %v8163_v13, %v8283_v28 }
 0x2d8   :  { %v4032_v60 = vsel %vm3581_vm5, 1, %v6032_v55  ;;  %v3451_v19 = vmax.f32 %v3252_v53, %v528_v22  ;;  %vm3580_vm6 = vcmp.gt.f32.partialorder %v528_v22, %v3252_v53 }
 0x2d9   :  { %3517 = vst.msk [vmem:[%s8819_s4 + $0xf8] sm:$0xff] %vm3485_vm4, %v3452_v30  ;;  %v4123_v15 = vsel %vm3485_vm4, %v4032_v60, 0  ;;  %v4031_v16 = vsel %vm3580_vm6, 1, %v6032_v55  ;;  %v552_v30 = vadd.f32 %v8163_v13, %v8271_v46 }
 0x2da   :  { %v4124_v10 = vadd.s32 %v4123_v15, %v4116_v41  ;;  %3516 = vst.msk [vmem:[%s8819_s4 + $0xf0] sm:$0xff] %vm3485_vm4, %v3451_v19  ;;  %v4121_v49 = vsel %vm3485_vm4, %v4031_v16, 0 }
 0x2db   :  { %v4122_v17 = vadd.s32 %v4121_v49, %v4114_v11 }
 0x2de   :  { %v4585_v12 = vpop.f32.mrb[32].mxu1 }
 0x2df   :  { %v3454_v5 = vmax.f32 %v4585_v12, %v539_v23  ;;  %vm3583_vm7 = vcmp.gt.f32.partialorder %v539_v23, %v4585_v12  ;;  %v3262_v51 = vpop.f32.mrb[33].mxu1  ;;  %v563_v23 = vadd.f32 %v8281_v14, %v8163_v13 }
 0x2e0   :  { %v4034_v41 = vsel %vm3583_vm7, 1, %v6032_v55  ;;  %v3453_v9 = vmax.f32 %v3262_v51, %v536_v42  ;;  %vm3582_vm8 = vcmp.gt.f32.partialorder %v536_v42, %v3262_v51  ;;  %v560_v42 = vadd.f32 %v8269_v2, %v8163_v13 }
 0x2e1   :  { %3519 = vst.msk [vmem:[%s8819_s4 + $0x108] sm:$0xff] %vm3485_vm4, %v3454_v5  ;;  %v4127_v32 = vsel %vm3485_vm4, %v4034_v41, 0  ;;  %v4033_v18 = vsel %vm3582_vm8, 1, %v6032_v55 }
 0x2e2   :  { %v4128_v11 = vadd.s32 %v4127_v32, %v4120_v3  ;;  %3518 = vst.msk [vmem:[%s8819_s4 + $0x100] sm:$0xff] %vm3485_vm4, %v3453_v9  ;;  %v4125_v24 = vsel %vm3485_vm4, %v4033_v18, 0 }
 0x2e3   :  { %v4126_v58 = vadd.s32 %v4125_v24, %v4118_v27  ;;  %v571_v24 = vadd.f32 %v8163_v13, %v8339_v8 }
 0x2e6   :  { %v4588_v48 = vpop.f32.mrb[34].mxu1 }
 0x2e7   :  { %v3456_v25 = vmax.f32 %v4588_v48, %v547_v43  ;;  %vm3585_vm9 = vcmp.gt.f32.partialorder %v547_v43, %v4588_v48  ;;  %v3272_v26 = vpop.f32.mrb[35].mxu1  ;;  %v568_v43 = vadd.f32 %v8163_v13, %v8335_v57 }
 0x2e8   :  { %v4036_v3 = vsel %vm3585_vm9, 1, %v6032_v55  ;;  %v3455_v39 = vmax.f32 %v3272_v26, %v544_v35  ;;  %vm3584_vm10 = vcmp.gt.f32.partialorder %v544_v35, %v3272_v26 }
 0x2e9   :  { %3521 = vst.msk [vmem:[%s8819_s4 + $0x118] sm:$0xff] %vm3485_vm4, %v3456_v25  ;;  %v4131_v6 = vsel %vm3485_vm4, %v4036_v3, 0  ;;  %v4035_v1 = vsel %vm3584_vm10, 1, %v6032_v55 }
 0x2ea   :  { %v4132_v27 = vadd.s32 %v4131_v6, %v4124_v10  ;;  %3520 = vst.msk [vmem:[%s8819_s4 + $0x110] sm:$0xff] %vm3485_vm4, %v3455_v39  ;;  %v4129_v61 = vsel %vm3485_vm4, %v4035_v1, 0  ;;  %v579_v6 = vadd.f32 %v8337_v29, %v8163_v13 }
 0x2eb   :  { %v4130_v22 = vadd.s32 %v4129_v61, %v4122_v17 }
 0x2ee   :  { %v4591_v53 = vpop.f32.mrb[36].mxu1 }
 0x2ef   :  { %v3458_v60 = vmax.f32 %v4591_v53, %v555_v20  ;;  %vm3587_vm11 = vcmp.gt.f32.partialorder %v555_v20, %v4591_v53  ;;  %v3282_v19 = vpop.f32.mrb[37].mxu1 }
 0x2f0   :  { %v4038_v15 = vsel %vm3587_vm11, 1, %v6032_v55  ;;  %v3457_v16 = vmax.f32 %v3282_v19, %v552_v30  ;;  %vm3586_vm12 = vcmp.gt.f32.partialorder %v552_v30, %v3282_v19 }
 0x2f1   :  { %3523 = vst.msk [vmem:[%s8819_s4 + $0x128] sm:$0xff] %vm3485_vm4, %v3458_v60  ;;  %v4135_v10 = vsel %vm3485_vm4, %v4038_v15, 0  ;;  %v4037_v28 = vsel %vm3586_vm12, 1, %v6032_v55 }
 0x2f2   :  { %v4136_v49 = vadd.s32 %v4135_v10, %v4128_v11  ;;  %3522 = vst.msk [vmem:[%s8819_s4 + $0x120] sm:$0xff] %vm3485_vm4, %v3457_v16  ;;  %v4133_v46 = vsel %vm3485_vm4, %v4037_v28, 0  ;;  %v587_v16 = vadd.f32 %v8163_v13, %v8382_v59  ;;  %v584_v10 = vadd.f32 %v8163_v13, %v8378_v40 }
 0x2f3   :  { %v4134_v17 = vadd.s32 %v4133_v46, %v4126_v58 }
 0x2f6   :  { %v4594_v12 = vpop.f32.mrb[38].mxu1 }
 0x2f7   :  { %v3460_v5 = vmax.f32 %v4594_v12, %v563_v23  ;;  %vm3589_vm13 = vcmp.gt.f32.partialorder %v563_v23, %v4594_v12  ;;  %v3292_v51 = vpop.f32.mrb[39].mxu1 }
 0x2f8   :  { %v4040_v41 = vsel %vm3589_vm13, 1, %v6032_v55  ;;  %v3459_v9 = vmax.f32 %v3292_v51, %v560_v42  ;;  %vm3588_vm14 = vcmp.gt.f32.partialorder %v560_v42, %v3292_v51 }
 0x2f9   :  { %3525 = vst.msk [vmem:[%s8819_s4 + $0x138] sm:$0xff] %vm3485_vm4, %v3460_v5  ;;  %v4139_v32 = vsel %vm3485_vm4, %v4040_v41, 0  ;;  %v4039_v14 = vsel %vm3588_vm14, 1, %v6032_v55  ;;  %v8687_v5 = vld [vmem:[%s8817_s2] ss:$0 sm:$0xff] }
 0x2fa   :  { %v4140_v18 = vadd.s32 %v4139_v32, %v4132_v27  ;;  %3524 = vst.msk [vmem:[%s8819_s4 + $0x130] sm:$0xff] %vm3485_vm4, %v3459_v9  ;;  %v4137_v2 = vsel %vm3485_vm4, %v4039_v14, 0  ;;  %v576_v27 = vadd.f32 %v8331_v45, %v8163_v13  ;;  %v595_v51 = vadd.f32 %v8687_v5, %v8380_v21 }
 0x2fb   :  { %v4138_v11 = vadd.s32 %v4137_v2, %v4130_v22  ;;  %v592_v41 = vadd.f32 %v8687_v5, %v8374_v31  ;;  %v603_v31 = vadd.f32 %v8687_v5, %v8420_v34 }
 0x2fe   :  { %v4597_v58 = vpop.f32.mrb[40].mxu1 }
 0x2ff   :  { %v3462_v35 = vmax.f32 %v4597_v58, %v571_v24  ;;  %vm3591_vm15 = vcmp.gt.f32.partialorder %v571_v24, %v4597_v58  ;;  %v3302_v48 = vpop.f32.mrb[41].mxu1  ;;  %v600_v58 = vadd.f32 %v8687_v5, %v8409_v4 }
 0x300   :  { %v4042_v25 = vsel %vm3591_vm15, 1, %v6032_v55  ;;  %v3461_v26 = vmax.f32 %v3302_v48, %v568_v43  ;;  %vm3590_vm0 = vcmp.gt.f32.partialorder %v568_v43, %v3302_v48 }
 0x301   :  { %3527 = vst.msk [vmem:[%s8819_s4 + $0x148] sm:$0xff] %vm3485_vm4, %v3462_v35  ;;  %v4143_v3 = vsel %vm3485_vm4, %v4042_v25, 0  ;;  %v4041_v8 = vsel %vm3590_vm0, 1, %v6032_v55 }
 0x302   :  { %v4144_v39 = vadd.s32 %v4143_v3, %v4136_v49  ;;  %3526 = vst.msk [vmem:[%s8819_s4 + $0x140] sm:$0xff] %vm3485_vm4, %v3461_v26  ;;  %v4141_v57 = vsel %vm3485_vm4, %v4041_v8, 0 }
 0x303   :  { %v4142_v1 = vadd.s32 %v4141_v57, %v4134_v17 }
 0x306   :  { %v4600_v61 = vpop.f32.mrb[42].mxu1 }
 0x307   :  { %v3464_v22 = vmax.f32 %v4600_v61, %v579_v6  ;;  %vm3593_vm1 = vcmp.gt.f32.partialorder %v579_v6, %v4600_v61  ;;  %v3312_v20 = vpop.f32.mrb[43].mxu1  ;;  %v611_v6 = vadd.f32 %v8687_v5, %v8416_v0  ;;  %v616_v0 = vadd.f32 %v8687_v5, %v8458_v52 }
 0x308   :  { %v4044_v30 = vsel %vm3593_vm1, 1, %v6032_v55  ;;  %v3463_v53 = vmax.f32 %v3312_v20, %v576_v27  ;;  %vm3592_vm2 = vcmp.gt.f32.partialorder %v576_v27, %v3312_v20  ;;  %v608_v27 = vadd.f32 %v8687_v5, %v8401_v7 }
 0x309   :  { %3529 = vst.msk [vmem:[%s8819_s4 + $0x158] sm:$0xff] %vm3485_vm4, %v3464_v22  ;;  %v4147_v60 = vsel %vm3485_vm4, %v4044_v30, 0  ;;  %v4043_v29 = vsel %vm3592_vm2, 1, %v6032_v55  ;;  %v619_v7 = vadd.f32 %v8687_v5, %v8462_v36  ;;  %v627_v36 = vadd.f32 %v8687_v5, %v8460_v37 }
 0x30a   :  { %v4148_v19 = vadd.s32 %v4147_v60, %v4140_v18  ;;  %3528 = vst.msk [vmem:[%s8819_s4 + $0x150] sm:$0xff] %vm3485_vm4, %v3463_v53  ;;  %v4145_v45 = vsel %vm3485_vm4, %v4043_v29, 0  ;;  %v624_v52 = vadd.f32 %v8687_v5, %v8454_v38  ;;  %v635_v37 = vadd.f32 %v8687_v5, %v8502_v44 }
 0x30b   :  { %v4146_v15 = vadd.s32 %v4145_v45, %v4138_v11  ;;  %v632_v38 = vadd.f32 %v8687_v5, %v8498_v47  ;;  %v643_v44 = vadd.f32 %v8687_v5, %v8500_v33  ;;  %v640_v47 = vadd.f32 %v8687_v5, %v8494_v56 }
 0x30c   :  { %v651_v33 = vadd.f32 %v8687_v5, %v8542_v63  ;;  %v648_v56 = vadd.f32 %v8687_v5, %v8538_v54 }
 0x30e   :  { %v4603_v28 = vpop.f32.mrb[44].mxu1 }
 0x30f   :  { %v3466_v49 = vmax.f32 %v4603_v28, %v587_v16  ;;  %vm3595_vm3 = vcmp.gt.f32.partialorder %v587_v16, %v4603_v28  ;;  %v3322_v46 = vpop.f32.mrb[45].mxu1 }
 0x310   :  { %v4046_v23 = vsel %vm3595_vm3, 1, %v6032_v55  ;;  %v3465_v17 = vmax.f32 %v3322_v46, %v584_v10  ;;  %vm3594_vm5 = vcmp.gt.f32.partialorder %v584_v10, %v3322_v46 }
 0x311   :  { %3531 = vst.msk [vmem:[%s8819_s4 + $0x168] sm:$0xff] %vm3485_vm4, %v3466_v49  ;;  %v4151_v42 = vsel %vm3485_vm4, %v4046_v23, 0  ;;  %v4045_v59 = vsel %vm3594_vm5, 1, %v6032_v55 }
 0x312   :  { %v4152_v12 = vadd.s32 %v4151_v42, %v4144_v39  ;;  %3530 = vst.msk [vmem:[%s8819_s4 + $0x160] sm:$0xff] %vm3485_vm4, %v3465_v17  ;;  %v4149_v13 = vsel %vm3485_vm4, %v4045_v59, 0 }
 0x313   :  { %v4150_v40 = vadd.s32 %v4149_v13, %v4142_v1 }
 0x316   :  { %v4606_v9 = vpop.f32.mrb[46].mxu1 }
 0x317   :  { %v3468_v32 = vmax.f32 %v4606_v9, %v595_v51  ;;  %vm3597_vm6 = vcmp.gt.f32.partialorder %v595_v51, %v4606_v9  ;;  %v3332_v14 = vpop.f32.mrb[47].mxu1 }
 0x318   :  { %v4048_v18 = vsel %vm3597_vm6, 1, %v6032_v55  ;;  %v3467_v2 = vmax.f32 %v3332_v14, %v592_v41  ;;  %vm3596_vm7 = vcmp.gt.f32.partialorder %v592_v41, %v3332_v14 }
 0x319   :  { %3533 = vst.msk [vmem:[%s8819_s4 + $0x178] sm:$0xff] %vm3485_vm4, %v3468_v32  ;;  %v4155_v11 = vsel %vm3485_vm4, %v4048_v18, 0  ;;  %v4047_v21 = vsel %vm3596_vm7, 1, %v6032_v55  ;;  %v659_v18 = vadd.f32 %v8687_v5, %v8540_v62 }
 0x31a   :  { %v4156_v24 = vadd.s32 %v4155_v11, %v4148_v19  ;;  %3532 = vst.msk [vmem:[%s8819_s4 + $0x170] sm:$0xff] %vm3485_vm4, %v3467_v2  ;;  %v4153_v43 = vsel %vm3485_vm4, %v4047_v21, 0  ;;  %v656_v2 = vadd.f32 %v8687_v5, %v8534_v50 }
 0x31b   :  { %v4154_v35 = vadd.s32 %v4153_v43, %v4146_v15 }
 0x31c   :  { %v4609_v48 = vpop.f32.mrb[48].mxu1 }
 0x31d   :  { %v4190_v25 = vadd.s32 %v4156_v24, %v4154_v35  ;;  %v3470_v26 = vmax.f32 %v4609_v48, %v603_v31  ;;  %v3342_v3 = vpop.f32.mrb[49].mxu1 }
 0x31e   :  { %v3469_v8 = vmax.f32 %v3342_v3, %v600_v58  ;;  %vm3598_vm8 = vcmp.gt.f32.partialorder %v600_v58, %v3342_v3 }
 0x31f   :  { %3535 = vst.msk [vmem:[%s8819_s4 + $0x188] sm:$0xff] %vm3485_vm4, %v3470_v26  ;;  %v4049_v34 = vsel %vm3598_vm8, 1, %v6032_v55 }
 0x320   :  { %3534 = vst.msk [vmem:[%s8819_s4 + $0x180] sm:$0xff] %vm3485_vm4, %v3469_v8  ;;  %v4157_v4 = vsel %vm3485_vm4, %v4049_v34, 0 }
 0x321   :  { %v4158_v39 = vadd.s32 %v4157_v4, %v4150_v40 }
 0x323   :  { %v4189_v57 = vadd.s32 %v4158_v39, %v4152_v12 }
 0x325   :  { %v4191_v1 = vadd.s32 %v4190_v25, %v4189_v57 }
 0x326   :  { %v4612_v61 = vpop.f32.mrb[50].mxu1 }
 0x327   :  { %v3472_v22 = vmax.f32 %v4612_v61, %v611_v6  ;;  %v3352_v20 = vpop.f32.mrb[51].mxu1  ;;  %v4193_v55 = vshrl.u32 %v4191_v1, 16  ;;  %v4192_v30 = vand.u32 65535, %v4191_v1 }
 0x328   :  { %v3471_v53 = vmax.f32 %v3352_v20, %v608_v27 }
 0x329   :  { %3537 = vst.msk [vmem:[%s8819_s4 + $0x198] sm:$0xff] %vm3485_vm4, %v3472_v22  ;;  %v4195_v60 = vcvt.s32.f32 %v4193_v55  ;;  %v4194_v29 = vcvt.s32.f32 %v4192_v30 }
 0x32a   :  { %3536 = vst.msk [vmem:[%s8819_s4 + $0x190] sm:$0xff] %vm3485_vm4, %v3471_v53 }
 0x32b   :  { %4198 = vadd.xlane.f32.xlu0 %v4195_v60  ;;  %4196 = vadd.xlane.f32.xlu1 %v4194_v29 }
 0x32e   :  { %v4615_v19 = vpop.f32.mrb[52].mxu1 }
 0x32f   :  { %v3474_v45 = vmax.f32 %v4615_v19, %v619_v7  ;;  %v3362_v15 = vpop.f32.mrb[53].mxu1 }
 0x330   :  { %v3473_v16 = vmax.f32 %v3362_v15, %v616_v0 }
 0x331   :  { %3539 = vst.msk [vmem:[%s8819_s4 + $0x1a8] sm:$0xff] %vm3485_vm4, %v3474_v45 }
 0x332   :  { %3538 = vst.msk [vmem:[%s8819_s4 + $0x1a0] sm:$0xff] %vm3485_vm4, %v3473_v16 }
 0x336   :  { %v4618_v10 = vpop.f32.mrb[54].mxu1 }
 0x337   :  { %v3476_v28 = vmax.f32 %v4618_v10, %v627_v36  ;;  %v3372_v49 = vpop.f32.mrb[55].mxu1 }
 0x338   :  { %v3475_v46 = vmax.f32 %v3372_v49, %v624_v52 }
 0x339   :  { %3541 = vst.msk [vmem:[%s8819_s4 + $0x1b8] sm:$0xff] %vm3485_vm4, %v3476_v28 }
 0x33a   :  { %3540 = vst.msk [vmem:[%s8819_s4 + $0x1b0] sm:$0xff] %vm3485_vm4, %v3475_v46 }
 0x33e   :  { %v4621_v23 = vpop.f32.mrb[56].mxu1 }
 0x33f   :  { %v3478_v17 = vmax.f32 %v4621_v23, %v635_v37  ;;  %v3382_v42 = vpop.f32.mrb[57].mxu1 }
 0x340   :  { %v3477_v59 = vmax.f32 %v3382_v42, %v632_v38 }
 0x341   :  { %3543 = vst.msk [vmem:[%s8819_s4 + $0x1c8] sm:$0xff] %vm3485_vm4, %v3478_v17 }
 0x342   :  { %3542 = vst.msk [vmem:[%s8819_s4 + $0x1c0] sm:$0xff] %vm3485_vm4, %v3477_v59 }
 0x346   :  { %v4624_v12 = vpop.f32.mrb[58].mxu1 }
 0x347   :  { %v3480_v13 = vmax.f32 %v4624_v12, %v643_v44  ;;  %v3392_v40 = vpop.f32.mrb[59].mxu1 }
 0x348   :  { %v3479_v51 = vmax.f32 %v3392_v40, %v640_v47 }
 0x349   :  { %3545 = vst.msk [vmem:[%s8819_s4 + $0x1d8] sm:$0xff] %vm3485_vm4, %v3480_v13 }
 0x34a   :  { %3544 = vst.msk [vmem:[%s8819_s4 + $0x1d0] sm:$0xff] %vm3485_vm4, %v3479_v51 }
 0x34e   :  { %v4627_v41 = vpop.f32.mrb[60].mxu1 }
 0x34f   :  { %v3482_v9 = vmax.f32 %v4627_v41, %v651_v33  ;;  %v3402_v32 = vpop.f32.mrb[61].mxu1 }
 0x350   :  { %v3481_v14 = vmax.f32 %v3402_v32, %v648_v56 }
 0x351   :  { %3547 = vst.msk [vmem:[%s8819_s4 + $0x1e8] sm:$0xff] %vm3485_vm4, %v3482_v9 }
 0x352   :  { %3546 = vst.msk [vmem:[%s8819_s4 + $0x1e0] sm:$0xff] %vm3485_vm4, %v3481_v14 }
 0x355   :  { %v4630_v54 = vpop.f32.mrb[62].mxu1 }
 0x356   :  { %v3484_v63 = vmax.f32 %v4630_v54, %v659_v18  ;;  %v3412_v11 = vpop.f32.mrb[63].mxu1 }
 0x357   :  { %v3483_v21 = vmax.f32 %v3412_v11, %v656_v2 }
 0x358   :  { %3549 = vst.msk [vmem:[%s8819_s4 + $0x1f8] sm:$0xff] %vm3485_vm4, %v3484_v63 }
 0x359   :  { %3548 = vst.msk [vmem:[%s8819_s4 + $0x1f0] sm:$0xff] %vm3485_vm4, %v3483_v21 }
 0x3b8   :  { %v4199_v50 = vpop.xlane.xlu0 %4198  ;;  %v4197_v62 = vpop.xlane.xlu1 %4196 }
 0x3b9   :  { %v4201_v5 = vcvt.f32.s32 %v4199_v50  ;;  %v4200_v24 = vcvt.f32.s32 %v4197_v62 }
 0x3bb   :  { %v4202_v31 = vshll.u32 %v4201_v5, 16 }
 0x3bd   :  { %v4203_v43 = vadd.s32 %v4202_v31, %v4200_v24 }
 0x3bf   :  { %v4204_v58 = vrot.slane %v4203_v43, 4 }
 0x3c1   :  { %v4205_v35 = vadd.s32 %v4204_v58, %v4203_v43 }
 0x3c3   :  { %v4206_v48 = vrot.slane %v4205_v35, 2 }
 0x3c5   :  { %v4207_v25 = vadd.s32 %v4206_v48, %v4205_v35 }
 0x3c7   :  { %v4208_v26 = vrot.slane %v4207_v25, 1 }
 0x3c9   :  { %v4209_v3 = vadd.s32 %v4208_v26, %v4207_v25 }
 0x3cb   :  { %4632 = vpush %v4209_v3 }
 0x3fc   :  { %s4633_s12 = spop %4632 }
 0x3fd   :  { %4212 = sst [smem:[#allocation2]] %s4633_s12 }
 0x3fe   :  { %6021 = shalt.err (!%p6018_p2)
}
 0x3ff   :  { %s6033_s18 = smov [#allocation2]  }
 0x400   :  { %4222 = dma.smem_to_hbm %s6033_s18, 16, %s8820_s5, [#allocation3]  }
 0x401   :  { %6022 = dma.done.wait [#allocation3], 16  }
 0x402   :  { %6023 = vsyncadd [#allocation3], 4294967280 }
 0x403   :  { %4228 = sfence }
 0x404   :  { %4229 = vsyncpa [#allocation3], 1 }

</bundles_post_ra>
